<compile_context>
chip_gen: v6e
topology: v6e:2x2x1
jax: 0.10.0
libtpu: 0.0.40
codegen_flags: <defaults>
</compile_context>

<pallas_src>
import jax
import jax.numpy as jnp
from jax.experimental import pallas as pl
from jax.experimental.pallas import tpu as pltpu

# ---- Globals implied by the PyTorch module (I, P are module-level globals) ----
I_INSTR = 4            # I: number of instruments
P_PITCH = 32           # P: number of pitches
T_TIME = 8             # T: sequence length (time)
HIDDEN = 32            # hidden_size
N_LAYERS = 4           # -> n_layers // 2 == 2 residual Units
CHORD_NUM = 16
CHORD_DIM = 8
CHORD_NUM_PERTRACK = 2
BN_EPS = 1e-5
N_CONVS = 1 + 2 * (N_LAYERS // 2)   # initial conv + 2 convs per Unit = 5
TC = T_TIME * HIDDEN                # 256 lanes = (time, channel), lane-dense


def _vmem():
    return pl.BlockSpec(memory_space=pltpu.MemorySpace.VMEM)


# ----------------------------- the single fused kernel -----------------------------
def fused_net_kernel(y0_ref, wb_ref, g_ref, be_ref, wp_ref, o_ref):
    """Entire Net forward (up to and including conv_pitch_linear) in one kernel.

    y0_ref : (N*P, T*C) f32   input, rows=(n,pitch), lanes=(time,channel), ch 9..31 zero
    wb_ref : (5, 3*T*C, T*C) bf16  per-conv block-banded weights (time taps folded in;
                                   row blocks ordered [pitch-1, pitch, pitch+1])
    g_ref  : (5, C) f32   BatchNorm gammas
    be_ref : (5, C) f32   BatchNorm betas
    wp_ref : (P, P) bf16  conv_pitch_linear weight Wp[q, p]
    o_ref  : (N*P, T*C) f32  lane-dense output B[(n,q),(t,h)] = sum_p Wp[q,p]*y[(n,p),(t,h)]
    """
    NP, tc = y0_ref.shape                        # (64, 256)
    N = NP // P_PITCH
    m_stat = NP * T_TIME                         # N*T*P elements per channel (BN stats)
    inv_m = 1.0 / m_stat

    def conv_bn(x, layer):
        # x: (NP, tc) f32 -- lane-dense activation, rows=(n,p), lanes=(t,c).
        x3 = x.reshape(N, P_PITCH, tc)           # free: leading/sublane dim split
        zrow = jnp.zeros((N, 1, tc), jnp.float32)
        # two pitch taps = two sublane shifts with a zero boundary row (per batch)
        x_m = jnp.concatenate([zrow, x3[:, :P_PITCH - 1, :]], axis=1)   # pitch p-1
        x_p = jnp.concatenate([x3[:, 1:, :], zrow], axis=1)             # pitch p+1
        # 3-slab patch matrix; time taps live inside the banded weight
        patches = jnp.concatenate([x_m, x3, x_p], axis=-1).reshape(NP, 3 * tc)
        acc = jnp.dot(patches.astype(jnp.bfloat16), wb_ref[layer],
                      preferred_element_type=jnp.float32)               # (NP, tc) f32

        # --- BatchNorm (train-mode batch stats), full-lane reductions ---
        s_tc = jnp.sum(acc, axis=0, keepdims=True)                      # (1, tc)
        ss_tc = jnp.sum(acc * acc, axis=0, keepdims=True)               # (1, tc)
        s_c = s_tc[:, 0:HIDDEN]
        ss_c = ss_tc[:, 0:HIDDEN]
        for t in range(1, T_TIME):                                      # tiny time fold
            s_c = s_c + s_tc[:, t * HIDDEN:(t + 1) * HIDDEN]
            ss_c = ss_c + ss_tc[:, t * HIDDEN:(t + 1) * HIDDEN]
        mean = s_c * inv_m
        var = jnp.maximum(ss_c * inv_m - mean * mean, 0.0)              # clamp >= 0
        scale_c = g_ref[layer:layer + 1, :] * jax.lax.rsqrt(var + BN_EPS)
        shift_c = be_ref[layer:layer + 1, :] - mean * scale_c
        scale = jnp.concatenate([scale_c] * T_TIME, axis=-1)            # (1, tc)
        shift = jnp.concatenate([shift_c] * T_TIME, axis=-1)
        return acc * scale + shift                                      # pre-ReLU, f32

    # --- initial conv + BN + ReLU ---
    y = jnp.maximum(conv_bn(y0_ref[...], 0), 0.0)                       # (NP, tc)

    # --- residual Units (residual carried as the dense value already in hand) ---
    layer = 1
    for _ in range(N_LAYERS // 2):
        resid = y
        h = jnp.maximum(conv_bn(y, layer), 0.0)          # conv1 + bn1 + relu1
        z = conv_bn(h, layer + 1)                        # conv2 + bn2
        y = jnp.maximum(z + resid, 0.0)                  # + residual, relu2
        layer += 2

    # --- conv_pitch_linear (1x1 over pitch; pitch is the row axis -> tiny dots) ---
    y_b = y.astype(jnp.bfloat16)
    wp = wp_ref[...]
    for n in range(N):
        o_ref[n * P_PITCH:(n + 1) * P_PITCH, :] = jnp.dot(
            wp, y_b[n * P_PITCH:(n + 1) * P_PITCH, :],
            preferred_element_type=jnp.float32)


def fused_net(y0, kp):
    NP, tc = y0.shape
    return pl.pallas_call(
        fused_net_kernel,
        out_shape=jax.ShapeDtypeStruct((NP, tc), jnp.float32),
        in_specs=[_vmem()] * 5,
        out_specs=_vmem(),
    )(y0, kp["conv_w"], kp["bn_gamma"], kp["bn_beta"], kp["wp"])


# ----------------------------- parameters ----------------------------------------
def init_params(key):
    def nrm(k, shape, scale=0.1):
        return scale * jax.random.normal(k, shape, jnp.float32)

    keys = iter(jax.random.split(key, 64))
    cin0 = 2 * I_INSTR + 1
    p = {
        "chord_emb": nrm(next(keys), (CHORD_NUM, CHORD_DIM), 1.0),
        "chord_W": nrm(next(keys), (P_PITCH, CHORD_DIM * CHORD_NUM_PERTRACK)),
        "chord_b": nrm(next(keys), (P_PITCH,)),
        "init_w": nrm(next(keys), (3, 3, cin0, HIDDEN)),   # (dt, dp, Cin, Cout)
        # conv biases exist in the module but are exactly absorbed by train-mode
        # BatchNorm mean subtraction -> kept for fidelity, used only by the reference.
        "init_b": nrm(next(keys), (HIDDEN,)),
        "init_g": 1.0 + nrm(next(keys), (HIDDEN,)),
        "init_beta": nrm(next(keys), (HIDDEN,)),
        "units": [],
        "Wp": nrm(next(keys), (P_PITCH, P_PITCH)),          # conv_pitch_linear (q, p)
        "bp": nrm(next(keys), (P_PITCH,)),
        "Wd": nrm(next(keys), (I_INSTR, HIDDEN)),           # conv_instrument_downproj (i, h)
        "bd": nrm(next(keys), (I_INSTR,)),
    }
    for _ in range(N_LAYERS // 2):
        p["units"].append({
            "w1": nrm(next(keys), (3, 3, HIDDEN, HIDDEN)),
            "b1": nrm(next(keys), (HIDDEN,)),
            "g1": 1.0 + nrm(next(keys), (HIDDEN,)),
            "be1": nrm(next(keys), (HIDDEN,)),
            "w2": nrm(next(keys), (3, 3, HIDDEN, HIDDEN)),
            "b2": nrm(next(keys), (HIDDEN,)),
            "g2": 1.0 + nrm(next(keys), (HIDDEN,)),
            "be2": nrm(next(keys), (HIDDEN,)),
        })
    return p


def _band_time_weight(w):
    """(3,3,Cin,Cout) conv weight -> (3*T*C, T*C) block-banded matrix.

    Row index = dp*T*C + tin*C + ci (dp-major, matching the kernel's 3-slab
    patch concat), column index = tout*C + co.  Entry = W[dt=tin-tout+1, dp, ci, co]
    when |tin - tout| <= 1, else 0 -> time taps + time zero-padding folded in."""
    cin = w.shape[2]
    if cin < HIDDEN:
        w = jnp.pad(w, ((0, 0), (0, 0), (0, HIDDEN - cin), (0, 0)))
    tin = jnp.arange(T_TIME)[:, None, None]
    dt = jnp.arange(3)[None, :, None]
    tout = jnp.arange(T_TIME)[None, None, :]
    band = (tin == tout + dt - 1).astype(jnp.float32)        # (T, 3, T)
    wb = jnp.einsum("xdy,dpio->pxiyo", band, w)              # (3, T, C, T, C)
    return wb.reshape(3 * T_TIME * HIDDEN, T_TIME * HIDDEN)


def prepare_kernel_params(p):
    """One-time (hoisted) precompute of kernel-ready parameters."""
    ws = [p["init_w"]]
    gammas = [p["init_g"]]
    betas = [p["init_beta"]]
    for u in p["units"]:
        ws += [u["w1"], u["w2"]]
        gammas += [u["g1"], u["g2"]]
        betas += [u["be1"], u["be2"]]
    conv_w = jnp.stack([_band_time_weight(w) for w in ws]).astype(jnp.bfloat16)

    # Folded bias of the two trailing 1x1 convs:
    #   bias_iq[i, q] = bp[q] * sum_h Wd[i, h] + bd[i]
    bias_iq = jnp.sum(p["Wd"], axis=1)[:, None] * p["bp"][None, :] + p["bd"][:, None]

    return {
        "chord_emb": p["chord_emb"],
        "chord_Wt": p["chord_W"].T,        # (cdim*cnp, P)
        "chord_b": p["chord_b"],
        "conv_w": conv_w,                  # (5, 768, 256) bf16
        "bn_gamma": jnp.stack(gammas),     # (5, 32) f32
        "bn_beta": jnp.stack(betas),       # (5, 32) f32
        "wp": p["Wp"].astype(jnp.bfloat16),  # (32, 32)
        "Wd": p["Wd"],                     # (4, 32) f32 (wrapper tail)
        "bias_iq": bias_iq,                # (4, 32) f32
    }


# ----------------------------- forward --------------------------------------------
def net_forward(kparams, x, C, chord):
    """x: (N, I, T, P) float, C: (N, I, T) float, chord: (N, chord_num_pertrack) int32.
    Returns (N, I, T, P), matching the PyTorch Net.forward output layout."""
    N, _, T, P = x.shape

    # Input assembly (chord embedding gather + linear + channel concat) stays in XLA;
    # the wrapper hands the kernel its internal lane-dense layout directly.
    emb = jnp.take(kparams["chord_emb"], chord, axis=0).reshape(N, -1)
    chord_lin = emb @ kparams["chord_Wt"] + kparams["chord_b"]            # (N, P)

    part1 = C[:, :, :, None] * x                                          # (N, I, T, P)
    part2 = jnp.broadcast_to(C[:, :, :, None], part1.shape)               # (N, I, T, P)
    part3 = jnp.broadcast_to(chord_lin[:, None, None, :], (N, 1, T, P))
    ych = jnp.concatenate([part1, part2, part3], axis=1)                  # (N, 9, T, P)

    # kernel layout: rows=(n, p), lanes=(t, c) with channels zero-padded to HIDDEN
    y0 = jnp.transpose(ych, (0, 3, 2, 1))                                 # (N, P, T, 9)
    y0 = jnp.pad(y0, ((0, 0), (0, 0), (0, 0), (0, HIDDEN - ych.shape[1])))
    y0 = y0.reshape(N * P, T * HIDDEN).astype(jnp.float32)                # (N*P, 256)

    B = fused_net(y0, kparams)                                            # (N*P, T*C)

    # Tiny tail in XLA (free layout plumbing): instrument down-projection over the
    # 32 hidden channels + folded 1x1 biases + the inherent pitch<->time permute.
    B4 = B.reshape(N, P, T, HIDDEN)                                       # (n, q, t, h)
    out = jnp.einsum("nqth,ih->nitq", B4, kparams["Wd"])
    return out + kparams["bias_iq"][None, :, None, :]                     # (N, I, T, P)


# ----------------------------- pure-JAX reference ----------------------------------
def reference_forward(p, x, C, chord):
    """Straightforward XLA mirror of the PyTorch Net.forward (train-mode BN)."""
    N, _, T, P = x.shape
    emb = p["chord_emb"][chord].reshape(N, -1)
    chord_lin = emb @ p["chord_W"].T + p["chord_b"]
    part1 = C[:, :, :, None] * x
    part2 = jnp.broadcast_to(C[:, :, :, None], part1.shape)
    part3 = jnp.broadcast_to(chord_lin[:, None, None, :], (N, 1, T, P))
    y = jnp.concatenate([part1, part2, part3], axis=1)          # NCHW (N, 9, T, P)
    y = jnp.transpose(y, (0, 2, 3, 1))                          # NHWC (N, T, P, 9)

    def conv3(xh, w, b):                                        # w: (3, 3, Cin, Cout)
        xp = jnp.pad(xh, ((0, 0), (1, 1), (1, 1), (0, 0)))
        acc = jnp.zeros(xh.shape[:3] + (w.shape[-1],), jnp.float32)
        for dt in range(3):
            for dp in range(3):
                acc = acc + jnp.einsum("ntpc,cd->ntpd",
                                       xp[:, dt:dt + T, dp:dp + P, :], w[dt, dp])
        return acc + b

    def bn(xh, g, be):
        m = jnp.mean(xh, axis=(0, 1, 2))
        v = jnp.var(xh, axis=(0, 1, 2))
        return (xh - m) * (g * jax.lax.rsqrt(v + BN_EPS)) + be

    h = jnp.maximum(bn(conv3(y, p["init_w"], p["init_b"]), p["init_g"], p["init_beta"]), 0.0)
    for u in p["units"]:
        r = h
        h1 = jnp.maximum(bn(conv3(h, u["w1"], u["b1"]), u["g1"], u["be1"]), 0.0)
        h2 = bn(conv3(h1, u["w2"], u["b2"]), u["g2"], u["be2"])
        h = jnp.maximum(h2 + r, 0.0)
    out1 = jnp.einsum("qp,ntph->ntqh", p["Wp"], h) + p["bp"][None, None, :, None]
    out2 = jnp.einsum("ih,ntqh->nitq", p["Wd"], out1) + p["bd"][None, :, None, None]
    return out2


# ----------------------------- main ------------------------------------------------
if __name__ == "__main__":
    key = jax.random.PRNGKey(0)
    kp_, kx, kc, kch = jax.random.split(key, 4)

    params = init_params(kp_)
    kparams = prepare_kernel_params(params)      # hoisted, parameter-only precompute

    N = 2
    pitch_ids = jax.random.randint(kx, (N, I_INSTR, T_TIME), 0, P_PITCH)
    x = jax.nn.one_hot(pitch_ids, P_PITCH, dtype=jnp.float32)          # (N, I, T, P)
    C = jax.random.bernoulli(kc, 0.5, (N, I_INSTR, T_TIME)).astype(jnp.float32)
    chord = jax.random.randint(kch, (N, CHORD_NUM_PERTRACK), 0, CHORD_NUM,
                               dtype=jnp.int32)

    fwd = jax.jit(net_forward)
    out = jax.block_until_ready(fwd(kparams, x, C, chord))

    ref = jax.jit(reference_forward)(params, x, C, chord)
    err = float(jnp.max(jnp.abs(out - ref)))

    assert out.shape == (N, I_INSTR, T_TIME, P_PITCH), out.shape
    assert bool(jnp.all(jnp.isfinite(out)))
    assert err < 1e-1, f"max abs error vs pure-JAX reference: {err}"
    print("KERNEL_OK")
</pallas_src>

<mosaic_0001>
module attributes {stable_mosaic.version = 11 : i64} {
  func.func @fused_net_kernel(%arg0: memref<64x256xf32, #tpu.memory_space<vmem>>, %arg1: memref<5x768x256xbf16, #tpu.memory_space<vmem>>, %arg2: memref<5x32xf32, #tpu.memory_space<vmem>>, %arg3: memref<5x32xf32, #tpu.memory_space<vmem>>, %arg4: memref<32x32xbf16, #tpu.memory_space<vmem>>, %arg5: memref<64x256xf32, #tpu.memory_space<vmem>>) attributes {dimension_semantics = [], scalar_prefetch = 0 : i64, scratch_operands = 0 : i64, tpu.core_type = #tpu.core_type<tc>} {
    %c0 = arith.constant 0 : index
    %c0_0 = arith.constant 0 : index
    %0 = vector.load %arg0[%c0, %c0_0] : memref<64x256xf32, #tpu.memory_space<vmem>>, vector<64x256xf32>
    %1 = vector.shape_cast %0 : vector<64x256xf32> to vector<2x32x256xf32>
    %cst = arith.constant 0.000000e+00 : f32
    %2 = vector.broadcast %cst : f32 to vector<2x1x256xf32>
    %3 = vector.extract_strided_slice %1 {offsets = [0, 0, 0], sizes = [2, 31, 256], strides = [1, 1, 1]} : vector<2x32x256xf32> to vector<2x31x256xf32>
    %4 = tpu.concatenate %2, %3 in 1 : vector<2x1x256xf32>, vector<2x31x256xf32> -> vector<2x32x256xf32>
    %5 = vector.extract_strided_slice %1 {offsets = [0, 1, 0], sizes = [2, 31, 256], strides = [1, 1, 1]} : vector<2x32x256xf32> to vector<2x31x256xf32>
    %6 = tpu.concatenate %5, %2 in 1 : vector<2x31x256xf32>, vector<2x1x256xf32> -> vector<2x32x256xf32>
    %7 = tpu.concatenate %4, %1, %6 in 2 : vector<2x32x256xf32>, vector<2x32x256xf32>, vector<2x32x256xf32> -> vector<2x32x768xf32>
    %8 = vector.shape_cast %7 : vector<2x32x768xf32> to vector<64x768xf32>
    %9 = arith.truncf %8 : vector<64x768xf32> to vector<64x768xbf16>
    %c0_1 = arith.constant 0 : index
    %c0_2 = arith.constant 0 : index
    %c0_3 = arith.constant 0 : index
    %10 = vector.load %arg1[%c0_1, %c0_2, %c0_3] : memref<5x768x256xbf16, #tpu.memory_space<vmem>>, vector<1x768x256xbf16>
    %11 = vector.shape_cast %10 : vector<1x768x256xbf16> to vector<768x256xbf16>
    %cst_4 = arith.constant dense<0.000000e+00> : vector<64x256xf32>
    %12 = tpu.matmul %9, %11, %cst_4 {dimension_numbers = #tpu.dot_dimension_numbers<[1], [0], [0], [1], [0, 0, 1, 1], [], []>} : vector<64x768xbf16>, vector<768x256xbf16>, vector<64x256xf32> -> vector<64x256xf32>
    %cst_5 = arith.constant dense<0.000000e+00> : vector<256xf32>
    %13 = vector.multi_reduction <add>, %12, %cst_5 [0] : vector<64x256xf32> to vector<256xf32>
    %14 = vector.shape_cast %13 : vector<256xf32> to vector<1x256xf32>
    %15 = arith.mulf %12, %12 : vector<64x256xf32>
    %cst_6 = arith.constant dense<0.000000e+00> : vector<256xf32>
    %16 = vector.multi_reduction <add>, %15, %cst_6 [0] : vector<64x256xf32> to vector<256xf32>
    %17 = vector.shape_cast %16 : vector<256xf32> to vector<1x256xf32>
    %18 = vector.extract_strided_slice %14 {offsets = [0, 0], sizes = [1, 32], strides = [1, 1]} : vector<1x256xf32> to vector<1x32xf32>
    %19 = vector.extract_strided_slice %17 {offsets = [0, 0], sizes = [1, 32], strides = [1, 1]} : vector<1x256xf32> to vector<1x32xf32>
    %20 = vector.extract_strided_slice %14 {offsets = [0, 32], sizes = [1, 32], strides = [1, 1]} : vector<1x256xf32> to vector<1x32xf32>
    %21 = arith.addf %18, %20 : vector<1x32xf32>
    %22 = vector.extract_strided_slice %17 {offsets = [0, 32], sizes = [1, 32], strides = [1, 1]} : vector<1x256xf32> to vector<1x32xf32>
    %23 = arith.addf %19, %22 : vector<1x32xf32>
    %24 = vector.extract_strided_slice %14 {offsets = [0, 64], sizes = [1, 32], strides = [1, 1]} : vector<1x256xf32> to vector<1x32xf32>
    %25 = arith.addf %21, %24 : vector<1x32xf32>
    %26 = vector.extract_strided_slice %17 {offsets = [0, 64], sizes = [1, 32], strides = [1, 1]} : vector<1x256xf32> to vector<1x32xf32>
    %27 = arith.addf %23, %26 : vector<1x32xf32>
    %28 = vector.extract_strided_slice %14 {offsets = [0, 96], sizes = [1, 32], strides = [1, 1]} : vector<1x256xf32> to vector<1x32xf32>
    %29 = arith.addf %25, %28 : vector<1x32xf32>
    %30 = vector.extract_strided_slice %17 {offsets = [0, 96], sizes = [1, 32], strides = [1, 1]} : vector<1x256xf32> to vector<1x32xf32>
    %31 = arith.addf %27, %30 : vector<1x32xf32>
    %32 = vector.extract_strided_slice %14 {offsets = [0, 128], sizes = [1, 32], strides = [1, 1]} : vector<1x256xf32> to vector<1x32xf32>
    %33 = arith.addf %29, %32 : vector<1x32xf32>
    %34 = vector.extract_strided_slice %17 {offsets = [0, 128], sizes = [1, 32], strides = [1, 1]} : vector<1x256xf32> to vector<1x32xf32>
    %35 = arith.addf %31, %34 : vector<1x32xf32>
    %36 = vector.extract_strided_slice %14 {offsets = [0, 160], sizes = [1, 32], strides = [1, 1]} : vector<1x256xf32> to vector<1x32xf32>
    %37 = arith.addf %33, %36 : vector<1x32xf32>
    %38 = vector.extract_strided_slice %17 {offsets = [0, 160], sizes = [1, 32], strides = [1, 1]} : vector<1x256xf32> to vector<1x32xf32>
    %39 = arith.addf %35, %38 : vector<1x32xf32>
    %40 = vector.extract_strided_slice %14 {offsets = [0, 192], sizes = [1, 32], strides = [1, 1]} : vector<1x256xf32> to vector<1x32xf32>
    %41 = arith.addf %37, %40 : vector<1x32xf32>
    %42 = vector.extract_strided_slice %17 {offsets = [0, 192], sizes = [1, 32], strides = [1, 1]} : vector<1x256xf32> to vector<1x32xf32>
    %43 = arith.addf %39, %42 : vector<1x32xf32>
    %44 = vector.extract_strided_slice %14 {offsets = [0, 224], sizes = [1, 32], strides = [1, 1]} : vector<1x256xf32> to vector<1x32xf32>
    %45 = arith.addf %41, %44 : vector<1x32xf32>
    %46 = vector.extract_strided_slice %17 {offsets = [0, 224], sizes = [1, 32], strides = [1, 1]} : vector<1x256xf32> to vector<1x32xf32>
    %47 = arith.addf %43, %46 : vector<1x32xf32>
    %cst_7 = arith.constant 0.001953125 : f32
    %48 = vector.broadcast %cst_7 : f32 to vector<1x32xf32>
    %49 = arith.mulf %45, %48 : vector<1x32xf32>
    %cst_8 = arith.constant 0.001953125 : f32
    %50 = vector.broadcast %cst_8 : f32 to vector<1x32xf32>
    %51 = arith.mulf %47, %50 : vector<1x32xf32>
    %52 = arith.mulf %49, %49 : vector<1x32xf32>
    %53 = arith.subf %51, %52 : vector<1x32xf32>
    %cst_9 = arith.constant 0.000000e+00 : f32
    %54 = vector.broadcast %cst_9 : f32 to vector<1x32xf32>
    %55 = arith.maximumf %53, %54 : vector<1x32xf32>
    %c0_10 = arith.constant 0 : index
    %c0_11 = arith.constant 0 : index
    %56 = vector.load %arg2[%c0_10, %c0_11] : memref<5x32xf32, #tpu.memory_space<vmem>>, vector<1x32xf32>
    %cst_12 = arith.constant 9.99999974E-6 : f32
    %57 = vector.broadcast %cst_12 : f32 to vector<1x32xf32>
    %58 = arith.addf %55, %57 : vector<1x32xf32>
    %59 = math.rsqrt %58 : vector<1x32xf32>
    %60 = arith.mulf %56, %59 : vector<1x32xf32>
    %c0_13 = arith.constant 0 : index
    %c0_14 = arith.constant 0 : index
    %61 = vector.load %arg3[%c0_13, %c0_14] : memref<5x32xf32, #tpu.memory_space<vmem>>, vector<1x32xf32>
    %62 = arith.mulf %49, %60 : vector<1x32xf32>
    %63 = arith.subf %61, %62 : vector<1x32xf32>
    %64 = tpu.concatenate %60, %60, %60, %60, %60, %60, %60, %60 in 1 : vector<1x32xf32>, vector<1x32xf32>, vector<1x32xf32>, vector<1x32xf32>, vector<1x32xf32>, vector<1x32xf32>, vector<1x32xf32>, vector<1x32xf32> -> vector<1x256xf32>
    %65 = tpu.concatenate %63, %63, %63, %63, %63, %63, %63, %63 in 1 : vector<1x32xf32>, vector<1x32xf32>, vector<1x32xf32>, vector<1x32xf32>, vector<1x32xf32>, vector<1x32xf32>, vector<1x32xf32>, vector<1x32xf32> -> vector<1x256xf32>
    %66 = vector.broadcast %64 : vector<1x256xf32> to vector<64x256xf32>
    %67 = arith.mulf %12, %66 : vector<64x256xf32>
    %68 = vector.broadcast %65 : vector<1x256xf32> to vector<64x256xf32>
    %69 = arith.addf %67, %68 : vector<64x256xf32>
    %cst_15 = arith.constant 0.000000e+00 : f32
    %70 = vector.broadcast %cst_15 : f32 to vector<64x256xf32>
    %71 = arith.maximumf %69, %70 : vector<64x256xf32>
    %72 = vector.shape_cast %71 : vector<64x256xf32> to vector<2x32x256xf32>
    %cst_16 = arith.constant 0.000000e+00 : f32
    %73 = vector.broadcast %cst_16 : f32 to vector<2x1x256xf32>
    %74 = vector.extract_strided_slice %72 {offsets = [0, 0, 0], sizes = [2, 31, 256], strides = [1, 1, 1]} : vector<2x32x256xf32> to vector<2x31x256xf32>
    %75 = tpu.concatenate %73, %74 in 1 : vector<2x1x256xf32>, vector<2x31x256xf32> -> vector<2x32x256xf32>
    %76 = vector.extract_strided_slice %72 {offsets = [0, 1, 0], sizes = [2, 31, 256], strides = [1, 1, 1]} : vector<2x32x256xf32> to vector<2x31x256xf32>
    %77 = tpu.concatenate %76, %73 in 1 : vector<2x31x256xf32>, vector<2x1x256xf32> -> vector<2x32x256xf32>
    %78 = tpu.concatenate %75, %72, %77 in 2 : vector<2x32x256xf32>, vector<2x32x256xf32>, vector<2x32x256xf32> -> vector<2x32x768xf32>
    %79 = vector.shape_cast %78 : vector<2x32x768xf32> to vector<64x768xf32>
    %80 = arith.truncf %79 : vector<64x768xf32> to vector<64x768xbf16>
    %c1 = arith.constant 1 : index
    %c0_17 = arith.constant 0 : index
    %c0_18 = arith.constant 0 : index
    %81 = vector.load %arg1[%c1, %c0_17, %c0_18] : memref<5x768x256xbf16, #tpu.memory_space<vmem>>, vector<1x768x256xbf16>
    %82 = vector.shape_cast %81 : vector<1x768x256xbf16> to vector<768x256xbf16>
    %cst_19 = arith.constant dense<0.000000e+00> : vector<64x256xf32>
    %83 = tpu.matmul %80, %82, %cst_19 {dimension_numbers = #tpu.dot_dimension_numbers<[1], [0], [0], [1], [0, 0, 1, 1], [], []>} : vector<64x768xbf16>, vector<768x256xbf16>, vector<64x256xf32> -> vector<64x256xf32>
    %cst_20 = arith.constant dense<0.000000e+00> : vector<256xf32>
    %84 = vector.multi_reduction <add>, %83, %cst_20 [0] : vector<64x256xf32> to vector<256xf32>
    %85 = vector.shape_cast %84 : vector<256xf32> to vector<1x256xf32>
    %86 = arith.mulf %83, %83 : vector<64x256xf32>
    %cst_21 = arith.constant dense<0.000000e+00> : vector<256xf32>
    %87 = vector.multi_reduction <add>, %86, %cst_21 [0] : vector<64x256xf32> to vector<256xf32>
    %88 = vector.shape_cast %87 : vector<256xf32> to vector<1x256xf32>
    %89 = vector.extract_strided_slice %85 {offsets = [0, 0], sizes = [1, 32], strides = [1, 1]} : vector<1x256xf32> to vector<1x32xf32>
    %90 = vector.extract_strided_slice %88 {offsets = [0, 0], sizes = [1, 32], strides = [1, 1]} : vector<1x256xf32> to vector<1x32xf32>
    %91 = vector.extract_strided_slice %85 {offsets = [0, 32], sizes = [1, 32], strides = [1, 1]} : vector<1x256xf32> to vector<1x32xf32>
    %92 = arith.addf %89, %91 : vector<1x32xf32>
    %93 = vector.extract_strided_slice %88 {offsets = [0, 32], sizes = [1, 32], strides = [1, 1]} : vector<1x256xf32> to vector<1x32xf32>
    %94 = arith.addf %90, %93 : vector<1x32xf32>
    %95 = vector.extract_strided_slice %85 {offsets = [0, 64], sizes = [1, 32], strides = [1, 1]} : vector<1x256xf32> to vector<1x32xf32>
    %96 = arith.addf %92, %95 : vector<1x32xf32>
    %97 = vector.extract_strided_slice %88 {offsets = [0, 64], sizes = [1, 32], strides = [1, 1]} : vector<1x256xf32> to vector<1x32xf32>
    %98 = arith.addf %94, %97 : vector<1x32xf32>
    %99 = vector.extract_strided_slice %85 {offsets = [0, 96], sizes = [1, 32], strides = [1, 1]} : vector<1x256xf32> to vector<1x32xf32>
    %100 = arith.addf %96, %99 : vector<1x32xf32>
    %101 = vector.extract_strided_slice %88 {offsets = [0, 96], sizes = [1, 32], strides = [1, 1]} : vector<1x256xf32> to vector<1x32xf32>
    %102 = arith.addf %98, %101 : vector<1x32xf32>
    %103 = vector.extract_strided_slice %85 {offsets = [0, 128], sizes = [1, 32], strides = [1, 1]} : vector<1x256xf32> to vector<1x32xf32>
    %104 = arith.addf %100, %103 : vector<1x32xf32>
    %105 = vector.extract_strided_slice %88 {offsets = [0, 128], sizes = [1, 32], strides = [1, 1]} : vector<1x256xf32> to vector<1x32xf32>
    %106 = arith.addf %102, %105 : vector<1x32xf32>
    %107 = vector.extract_strided_slice %85 {offsets = [0, 160], sizes = [1, 32], strides = [1, 1]} : vector<1x256xf32> to vector<1x32xf32>
    %108 = arith.addf %104, %107 : vector<1x32xf32>
    %109 = vector.extract_strided_slice %88 {offsets = [0, 160], sizes = [1, 32], strides = [1, 1]} : vector<1x256xf32> to vector<1x32xf32>
    %110 = arith.addf %106, %109 : vector<1x32xf32>
    %111 = vector.extract_strided_slice %85 {offsets = [0, 192], sizes = [1, 32], strides = [1, 1]} : vector<1x256xf32> to vector<1x32xf32>
    %112 = arith.addf %108, %111 : vector<1x32xf32>
    %113 = vector.extract_strided_slice %88 {offsets = [0, 192], sizes = [1, 32], strides = [1, 1]} : vector<1x256xf32> to vector<1x32xf32>
    %114 = arith.addf %110, %113 : vector<1x32xf32>
    %115 = vector.extract_strided_slice %85 {offsets = [0, 224], sizes = [1, 32], strides = [1, 1]} : vector<1x256xf32> to vector<1x32xf32>
    %116 = arith.addf %112, %115 : vector<1x32xf32>
    %117 = vector.extract_strided_slice %88 {offsets = [0, 224], sizes = [1, 32], strides = [1, 1]} : vector<1x256xf32> to vector<1x32xf32>
    %118 = arith.addf %114, %117 : vector<1x32xf32>
    %cst_22 = arith.constant 0.001953125 : f32
    %119 = vector.broadcast %cst_22 : f32 to vector<1x32xf32>
    %120 = arith.mulf %116, %119 : vector<1x32xf32>
    %cst_23 = arith.constant 0.001953125 : f32
    %121 = vector.broadcast %cst_23 : f32 to vector<1x32xf32>
    %122 = arith.mulf %118, %121 : vector<1x32xf32>
    %123 = arith.mulf %120, %120 : vector<1x32xf32>
    %124 = arith.subf %122, %123 : vector<1x32xf32>
    %cst_24 = arith.constant 0.000000e+00 : f32
    %125 = vector.broadcast %cst_24 : f32 to vector<1x32xf32>
    %126 = arith.maximumf %124, %125 : vector<1x32xf32>
    %c1_25 = arith.constant 1 : index
    %c0_26 = arith.constant 0 : index
    %127 = vector.load %arg2[%c1_25, %c0_26] : memref<5x32xf32, #tpu.memory_space<vmem>>, vector<1x32xf32>
    %cst_27 = arith.constant 9.99999974E-6 : f32
    %128 = vector.broadcast %cst_27 : f32 to vector<1x32xf32>
    %129 = arith.addf %126, %128 : vector<1x32xf32>
    %130 = math.rsqrt %129 : vector<1x32xf32>
    %131 = arith.mulf %127, %130 : vector<1x32xf32>
    %c1_28 = arith.constant 1 : index
    %c0_29 = arith.constant 0 : index
    %132 = vector.load %arg3[%c1_28, %c0_29] : memref<5x32xf32, #tpu.memory_space<vmem>>, vector<1x32xf32>
    %133 = arith.mulf %120, %131 : vector<1x32xf32>
    %134 = arith.subf %132, %133 : vector<1x32xf32>
    %135 = tpu.concatenate %131, %131, %131, %131, %131, %131, %131, %131 in 1 : vector<1x32xf32>, vector<1x32xf32>, vector<1x32xf32>, vector<1x32xf32>, vector<1x32xf32>, vector<1x32xf32>, vector<1x32xf32>, vector<1x32xf32> -> vector<1x256xf32>
    %136 = tpu.concatenate %134, %134, %134, %134, %134, %134, %134, %134 in 1 : vector<1x32xf32>, vector<1x32xf32>, vector<1x32xf32>, vector<1x32xf32>, vector<1x32xf32>, vector<1x32xf32>, vector<1x32xf32>, vector<1x32xf32> -> vector<1x256xf32>
    %137 = vector.broadcast %135 : vector<1x256xf32> to vector<64x256xf32>
    %138 = arith.mulf %83, %137 : vector<64x256xf32>
    %139 = vector.broadcast %136 : vector<1x256xf32> to vector<64x256xf32>
    %140 = arith.addf %138, %139 : vector<64x256xf32>
    %cst_30 = arith.constant 0.000000e+00 : f32
    %141 = vector.broadcast %cst_30 : f32 to vector<64x256xf32>
    %142 = arith.maximumf %140, %141 : vector<64x256xf32>
    %143 = vector.shape_cast %142 : vector<64x256xf32> to vector<2x32x256xf32>
    %cst_31 = arith.constant 0.000000e+00 : f32
    %144 = vector.broadcast %cst_31 : f32 to vector<2x1x256xf32>
    %145 = vector.extract_strided_slice %143 {offsets = [0, 0, 0], sizes = [2, 31, 256], strides = [1, 1, 1]} : vector<2x32x256xf32> to vector<2x31x256xf32>
    %146 = tpu.concatenate %144, %145 in 1 : vector<2x1x256xf32>, vector<2x31x256xf32> -> vector<2x32x256xf32>
    %147 = vector.extract_strided_slice %143 {offsets = [0, 1, 0], sizes = [2, 31, 256], strides = [1, 1, 1]} : vector<2x32x256xf32> to vector<2x31x256xf32>
    %148 = tpu.concatenate %147, %144 in 1 : vector<2x31x256xf32>, vector<2x1x256xf32> -> vector<2x32x256xf32>
    %149 = tpu.concatenate %146, %143, %148 in 2 : vector<2x32x256xf32>, vector<2x32x256xf32>, vector<2x32x256xf32> -> vector<2x32x768xf32>
    %150 = vector.shape_cast %149 : vector<2x32x768xf32> to vector<64x768xf32>
    %151 = arith.truncf %150 : vector<64x768xf32> to vector<64x768xbf16>
    %c2 = arith.constant 2 : index
    %c0_32 = arith.constant 0 : index
    %c0_33 = arith.constant 0 : index
    %152 = vector.load %arg1[%c2, %c0_32, %c0_33] : memref<5x768x256xbf16, #tpu.memory_space<vmem>>, vector<1x768x256xbf16>
    %153 = vector.shape_cast %152 : vector<1x768x256xbf16> to vector<768x256xbf16>
    %cst_34 = arith.constant dense<0.000000e+00> : vector<64x256xf32>
    %154 = tpu.matmul %151, %153, %cst_34 {dimension_numbers = #tpu.dot_dimension_numbers<[1], [0], [0], [1], [0, 0, 1, 1], [], []>} : vector<64x768xbf16>, vector<768x256xbf16>, vector<64x256xf32> -> vector<64x256xf32>
    %cst_35 = arith.constant dense<0.000000e+00> : vector<256xf32>
    %155 = vector.multi_reduction <add>, %154, %cst_35 [0] : vector<64x256xf32> to vector<256xf32>
    %156 = vector.shape_cast %155 : vector<256xf32> to vector<1x256xf32>
    %157 = arith.mulf %154, %154 : vector<64x256xf32>
    %cst_36 = arith.constant dense<0.000000e+00> : vector<256xf32>
    %158 = vector.multi_reduction <add>, %157, %cst_36 [0] : vector<64x256xf32> to vector<256xf32>
    %159 = vector.shape_cast %158 : vector<256xf32> to vector<1x256xf32>
    %160 = vector.extract_strided_slice %156 {offsets = [0, 0], sizes = [1, 32], strides = [1, 1]} : vector<1x256xf32> to vector<1x32xf32>
    %161 = vector.extract_strided_slice %159 {offsets = [0, 0], sizes = [1, 32], strides = [1, 1]} : vector<1x256xf32> to vector<1x32xf32>
    %162 = vector.extract_strided_slice %156 {offsets = [0, 32], sizes = [1, 32], strides = [1, 1]} : vector<1x256xf32> to vector<1x32xf32>
    %163 = arith.addf %160, %162 : vector<1x32xf32>
    %164 = vector.extract_strided_slice %159 {offsets = [0, 32], sizes = [1, 32], strides = [1, 1]} : vector<1x256xf32> to vector<1x32xf32>
    %165 = arith.addf %161, %164 : vector<1x32xf32>
    %166 = vector.extract_strided_slice %156 {offsets = [0, 64], sizes = [1, 32], strides = [1, 1]} : vector<1x256xf32> to vector<1x32xf32>
    %167 = arith.addf %163, %166 : vector<1x32xf32>
    %168 = vector.extract_strided_slice %159 {offsets = [0, 64], sizes = [1, 32], strides = [1, 1]} : vector<1x256xf32> to vector<1x32xf32>
    %169 = arith.addf %165, %168 : vector<1x32xf32>
    %170 = vector.extract_strided_slice %156 {offsets = [0, 96], sizes = [1, 32], strides = [1, 1]} : vector<1x256xf32> to vector<1x32xf32>
    %171 = arith.addf %167, %170 : vector<1x32xf32>
    %172 = vector.extract_strided_slice %159 {offsets = [0, 96], sizes = [1, 32], strides = [1, 1]} : vector<1x256xf32> to vector<1x32xf32>
    %173 = arith.addf %169, %172 : vector<1x32xf32>
    %174 = vector.extract_strided_slice %156 {offsets = [0, 128], sizes = [1, 32], strides = [1, 1]} : vector<1x256xf32> to vector<1x32xf32>
    %175 = arith.addf %171, %174 : vector<1x32xf32>
    %176 = vector.extract_strided_slice %159 {offsets = [0, 128], sizes = [1, 32], strides = [1, 1]} : vector<1x256xf32> to vector<1x32xf32>
    %177 = arith.addf %173, %176 : vector<1x32xf32>
    %178 = vector.extract_strided_slice %156 {offsets = [0, 160], sizes = [1, 32], strides = [1, 1]} : vector<1x256xf32> to vector<1x32xf32>
    %179 = arith.addf %175, %178 : vector<1x32xf32>
    %180 = vector.extract_strided_slice %159 {offsets = [0, 160], sizes = [1, 32], strides = [1, 1]} : vector<1x256xf32> to vector<1x32xf32>
    %181 = arith.addf %177, %180 : vector<1x32xf32>
    %182 = vector.extract_strided_slice %156 {offsets = [0, 192], sizes = [1, 32], strides = [1, 1]} : vector<1x256xf32> to vector<1x32xf32>
    %183 = arith.addf %179, %182 : vector<1x32xf32>
    %184 = vector.extract_strided_slice %159 {offsets = [0, 192], sizes = [1, 32], strides = [1, 1]} : vector<1x256xf32> to vector<1x32xf32>
    %185 = arith.addf %181, %184 : vector<1x32xf32>
    %186 = vector.extract_strided_slice %156 {offsets = [0, 224], sizes = [1, 32], strides = [1, 1]} : vector<1x256xf32> to vector<1x32xf32>
    %187 = arith.addf %183, %186 : vector<1x32xf32>
    %188 = vector.extract_strided_slice %159 {offsets = [0, 224], sizes = [1, 32], strides = [1, 1]} : vector<1x256xf32> to vector<1x32xf32>
    %189 = arith.addf %185, %188 : vector<1x32xf32>
    %cst_37 = arith.constant 0.001953125 : f32
    %190 = vector.broadcast %cst_37 : f32 to vector<1x32xf32>
    %191 = arith.mulf %187, %190 : vector<1x32xf32>
    %cst_38 = arith.constant 0.001953125 : f32
    %192 = vector.broadcast %cst_38 : f32 to vector<1x32xf32>
    %193 = arith.mulf %189, %192 : vector<1x32xf32>
    %194 = arith.mulf %191, %191 : vector<1x32xf32>
    %195 = arith.subf %193, %194 : vector<1x32xf32>
    %cst_39 = arith.constant 0.000000e+00 : f32
    %196 = vector.broadcast %cst_39 : f32 to vector<1x32xf32>
    %197 = arith.maximumf %195, %196 : vector<1x32xf32>
    %c2_40 = arith.constant 2 : index
    %c0_41 = arith.constant 0 : index
    %198 = vector.load %arg2[%c2_40, %c0_41] : memref<5x32xf32, #tpu.memory_space<vmem>>, vector<1x32xf32>
    %cst_42 = arith.constant 9.99999974E-6 : f32
    %199 = vector.broadcast %cst_42 : f32 to vector<1x32xf32>
    %200 = arith.addf %197, %199 : vector<1x32xf32>
    %201 = math.rsqrt %200 : vector<1x32xf32>
    %202 = arith.mulf %198, %201 : vector<1x32xf32>
    %c2_43 = arith.constant 2 : index
    %c0_44 = arith.constant 0 : index
    %203 = vector.load %arg3[%c2_43, %c0_44] : memref<5x32xf32, #tpu.memory_space<vmem>>, vector<1x32xf32>
    %204 = arith.mulf %191, %202 : vector<1x32xf32>
    %205 = arith.subf %203, %204 : vector<1x32xf32>
    %206 = tpu.concatenate %202, %202, %202, %202, %202, %202, %202, %202 in 1 : vector<1x32xf32>, vector<1x32xf32>, vector<1x32xf32>, vector<1x32xf32>, vector<1x32xf32>, vector<1x32xf32>, vector<1x32xf32>, vector<1x32xf32> -> vector<1x256xf32>
    %207 = tpu.concatenate %205, %205, %205, %205, %205, %205, %205, %205 in 1 : vector<1x32xf32>, vector<1x32xf32>, vector<1x32xf32>, vector<1x32xf32>, vector<1x32xf32>, vector<1x32xf32>, vector<1x32xf32>, vector<1x32xf32> -> vector<1x256xf32>
    %208 = vector.broadcast %206 : vector<1x256xf32> to vector<64x256xf32>
    %209 = arith.mulf %154, %208 : vector<64x256xf32>
    %210 = vector.broadcast %207 : vector<1x256xf32> to vector<64x256xf32>
    %211 = arith.addf %209, %210 : vector<64x256xf32>
    %212 = arith.addf %211, %71 : vector<64x256xf32>
    %cst_45 = arith.constant 0.000000e+00 : f32
    %213 = vector.broadcast %cst_45 : f32 to vector<64x256xf32>
    %214 = arith.maximumf %212, %213 : vector<64x256xf32>
    %215 = vector.shape_cast %214 : vector<64x256xf32> to vector<2x32x256xf32>
    %cst_46 = arith.constant 0.000000e+00 : f32
    %216 = vector.broadcast %cst_46 : f32 to vector<2x1x256xf32>
    %217 = vector.extract_strided_slice %215 {offsets = [0, 0, 0], sizes = [2, 31, 256], strides = [1, 1, 1]} : vector<2x32x256xf32> to vector<2x31x256xf32>
    %218 = tpu.concatenate %216, %217 in 1 : vector<2x1x256xf32>, vector<2x31x256xf32> -> vector<2x32x256xf32>
    %219 = vector.extract_strided_slice %215 {offsets = [0, 1, 0], sizes = [2, 31, 256], strides = [1, 1, 1]} : vector<2x32x256xf32> to vector<2x31x256xf32>
    %220 = tpu.concatenate %219, %216 in 1 : vector<2x31x256xf32>, vector<2x1x256xf32> -> vector<2x32x256xf32>
    %221 = tpu.concatenate %218, %215, %220 in 2 : vector<2x32x256xf32>, vector<2x32x256xf32>, vector<2x32x256xf32> -> vector<2x32x768xf32>
    %222 = vector.shape_cast %221 : vector<2x32x768xf32> to vector<64x768xf32>
    %223 = arith.truncf %222 : vector<64x768xf32> to vector<64x768xbf16>
    %c3 = arith.constant 3 : index
    %c0_47 = arith.constant 0 : index
    %c0_48 = arith.constant 0 : index
    %224 = vector.load %arg1[%c3, %c0_47, %c0_48] : memref<5x768x256xbf16, #tpu.memory_space<vmem>>, vector<1x768x256xbf16>
    %225 = vector.shape_cast %224 : vector<1x768x256xbf16> to vector<768x256xbf16>
    %cst_49 = arith.constant dense<0.000000e+00> : vector<64x256xf32>
    %226 = tpu.matmul %223, %225, %cst_49 {dimension_numbers = #tpu.dot_dimension_numbers<[1], [0], [0], [1], [0, 0, 1, 1], [], []>} : vector<64x768xbf16>, vector<768x256xbf16>, vector<64x256xf32> -> vector<64x256xf32>
    %cst_50 = arith.constant dense<0.000000e+00> : vector<256xf32>
    %227 = vector.multi_reduction <add>, %226, %cst_50 [0] : vector<64x256xf32> to vector<256xf32>
    %228 = vector.shape_cast %227 : vector<256xf32> to vector<1x256xf32>
    %229 = arith.mulf %226, %226 : vector<64x256xf32>
    %cst_51 = arith.constant dense<0.000000e+00> : vector<256xf32>
    %230 = vector.multi_reduction <add>, %229, %cst_51 [0] : vector<64x256xf32> to vector<256xf32>
    %231 = vector.shape_cast %230 : vector<256xf32> to vector<1x256xf32>
    %232 = vector.extract_strided_slice %228 {offsets = [0, 0], sizes = [1, 32], strides = [1, 1]} : vector<1x256xf32> to vector<1x32xf32>
    %233 = vector.extract_strided_slice %231 {offsets = [0, 0], sizes = [1, 32], strides = [1, 1]} : vector<1x256xf32> to vector<1x32xf32>
    %234 = vector.extract_strided_slice %228 {offsets = [0, 32], sizes = [1, 32], strides = [1, 1]} : vector<1x256xf32> to vector<1x32xf32>
    %235 = arith.addf %232, %234 : vector<1x32xf32>
    %236 = vector.extract_strided_slice %231 {offsets = [0, 32], sizes = [1, 32], strides = [1, 1]} : vector<1x256xf32> to vector<1x32xf32>
    %237 = arith.addf %233, %236 : vector<1x32xf32>
    %238 = vector.extract_strided_slice %228 {offsets = [0, 64], sizes = [1, 32], strides = [1, 1]} : vector<1x256xf32> to vector<1x32xf32>
    %239 = arith.addf %235, %238 : vector<1x32xf32>
    %240 = vector.extract_strided_slice %231 {offsets = [0, 64], sizes = [1, 32], strides = [1, 1]} : vector<1x256xf32> to vector<1x32xf32>
    %241 = arith.addf %237, %240 : vector<1x32xf32>
    %242 = vector.extract_strided_slice %228 {offsets = [0, 96], sizes = [1, 32], strides = [1, 1]} : vector<1x256xf32> to vector<1x32xf32>
    %243 = arith.addf %239, %242 : vector<1x32xf32>
    %244 = vector.extract_strided_slice %231 {offsets = [0, 96], sizes = [1, 32], strides = [1, 1]} : vector<1x256xf32> to vector<1x32xf32>
    %245 = arith.addf %241, %244 : vector<1x32xf32>
    %246 = vector.extract_strided_slice %228 {offsets = [0, 128], sizes = [1, 32], strides = [1, 1]} : vector<1x256xf32> to vector<1x32xf32>
    %247 = arith.addf %243, %246 : vector<1x32xf32>
    %248 = vector.extract_strided_slice %231 {offsets = [0, 128], sizes = [1, 32], strides = [1, 1]} : vector<1x256xf32> to vector<1x32xf32>
    %249 = arith.addf %245, %248 : vector<1x32xf32>
    %250 = vector.extract_strided_slice %228 {offsets = [0, 160], sizes = [1, 32], strides = [1, 1]} : vector<1x256xf32> to vector<1x32xf32>
    %251 = arith.addf %247, %250 : vector<1x32xf32>
    %252 = vector.extract_strided_slice %231 {offsets = [0, 160], sizes = [1, 32], strides = [1, 1]} : vector<1x256xf32> to vector<1x32xf32>
    %253 = arith.addf %249, %252 : vector<1x32xf32>
    %254 = vector.extract_strided_slice %228 {offsets = [0, 192], sizes = [1, 32], strides = [1, 1]} : vector<1x256xf32> to vector<1x32xf32>
    %255 = arith.addf %251, %254 : vector<1x32xf32>
    %256 = vector.extract_strided_slice %231 {offsets = [0, 192], sizes = [1, 32], strides = [1, 1]} : vector<1x256xf32> to vector<1x32xf32>
    %257 = arith.addf %253, %256 : vector<1x32xf32>
    %258 = vector.extract_strided_slice %228 {offsets = [0, 224], sizes = [1, 32], strides = [1, 1]} : vector<1x256xf32> to vector<1x32xf32>
    %259 = arith.addf %255, %258 : vector<1x32xf32>
    %260 = vector.extract_strided_slice %231 {offsets = [0, 224], sizes = [1, 32], strides = [1, 1]} : vector<1x256xf32> to vector<1x32xf32>
    %261 = arith.addf %257, %260 : vector<1x32xf32>
    %cst_52 = arith.constant 0.001953125 : f32
    %262 = vector.broadcast %cst_52 : f32 to vector<1x32xf32>
    %263 = arith.mulf %259, %262 : vector<1x32xf32>
    %cst_53 = arith.constant 0.001953125 : f32
    %264 = vector.broadcast %cst_53 : f32 to vector<1x32xf32>
    %265 = arith.mulf %261, %264 : vector<1x32xf32>
    %266 = arith.mulf %263, %263 : vector<1x32xf32>
    %267 = arith.subf %265, %266 : vector<1x32xf32>
    %cst_54 = arith.constant 0.000000e+00 : f32
    %268 = vector.broadcast %cst_54 : f32 to vector<1x32xf32>
    %269 = arith.maximumf %267, %268 : vector<1x32xf32>
    %c3_55 = arith.constant 3 : index
    %c0_56 = arith.constant 0 : index
    %270 = vector.load %arg2[%c3_55, %c0_56] : memref<5x32xf32, #tpu.memory_space<vmem>>, vector<1x32xf32>
    %cst_57 = arith.constant 9.99999974E-6 : f32
    %271 = vector.broadcast %cst_57 : f32 to vector<1x32xf32>
    %272 = arith.addf %269, %271 : vector<1x32xf32>
    %273 = math.rsqrt %272 : vector<1x32xf32>
    %274 = arith.mulf %270, %273 : vector<1x32xf32>
    %c3_58 = arith.constant 3 : index
    %c0_59 = arith.constant 0 : index
    %275 = vector.load %arg3[%c3_58, %c0_59] : memref<5x32xf32, #tpu.memory_space<vmem>>, vector<1x32xf32>
    %276 = arith.mulf %263, %274 : vector<1x32xf32>
    %277 = arith.subf %275, %276 : vector<1x32xf32>
    %278 = tpu.concatenate %274, %274, %274, %274, %274, %274, %274, %274 in 1 : vector<1x32xf32>, vector<1x32xf32>, vector<1x32xf32>, vector<1x32xf32>, vector<1x32xf32>, vector<1x32xf32>, vector<1x32xf32>, vector<1x32xf32> -> vector<1x256xf32>
    %279 = tpu.concatenate %277, %277, %277, %277, %277, %277, %277, %277 in 1 : vector<1x32xf32>, vector<1x32xf32>, vector<1x32xf32>, vector<1x32xf32>, vector<1x32xf32>, vector<1x32xf32>, vector<1x32xf32>, vector<1x32xf32> -> vector<1x256xf32>
    %280 = vector.broadcast %278 : vector<1x256xf32> to vector<64x256xf32>
    %281 = arith.mulf %226, %280 : vector<64x256xf32>
    %282 = vector.broadcast %279 : vector<1x256xf32> to vector<64x256xf32>
    %283 = arith.addf %281, %282 : vector<64x256xf32>
    %cst_60 = arith.constant 0.000000e+00 : f32
    %284 = vector.broadcast %cst_60 : f32 to vector<64x256xf32>
    %285 = arith.maximumf %283, %284 : vector<64x256xf32>
    %286 = vector.shape_cast %285 : vector<64x256xf32> to vector<2x32x256xf32>
    %cst_61 = arith.constant 0.000000e+00 : f32
    %287 = vector.broadcast %cst_61 : f32 to vector<2x1x256xf32>
    %288 = vector.extract_strided_slice %286 {offsets = [0, 0, 0], sizes = [2, 31, 256], strides = [1, 1, 1]} : vector<2x32x256xf32> to vector<2x31x256xf32>
    %289 = tpu.concatenate %287, %288 in 1 : vector<2x1x256xf32>, vector<2x31x256xf32> -> vector<2x32x256xf32>
    %290 = vector.extract_strided_slice %286 {offsets = [0, 1, 0], sizes = [2, 31, 256], strides = [1, 1, 1]} : vector<2x32x256xf32> to vector<2x31x256xf32>
    %291 = tpu.concatenate %290, %287 in 1 : vector<2x31x256xf32>, vector<2x1x256xf32> -> vector<2x32x256xf32>
    %292 = tpu.concatenate %289, %286, %291 in 2 : vector<2x32x256xf32>, vector<2x32x256xf32>, vector<2x32x256xf32> -> vector<2x32x768xf32>
    %293 = vector.shape_cast %292 : vector<2x32x768xf32> to vector<64x768xf32>
    %294 = arith.truncf %293 : vector<64x768xf32> to vector<64x768xbf16>
    %c4 = arith.constant 4 : index
    %c0_62 = arith.constant 0 : index
    %c0_63 = arith.constant 0 : index
    %295 = vector.load %arg1[%c4, %c0_62, %c0_63] : memref<5x768x256xbf16, #tpu.memory_space<vmem>>, vector<1x768x256xbf16>
    %296 = vector.shape_cast %295 : vector<1x768x256xbf16> to vector<768x256xbf16>
    %cst_64 = arith.constant dense<0.000000e+00> : vector<64x256xf32>
    %297 = tpu.matmul %294, %296, %cst_64 {dimension_numbers = #tpu.dot_dimension_numbers<[1], [0], [0], [1], [0, 0, 1, 1], [], []>} : vector<64x768xbf16>, vector<768x256xbf16>, vector<64x256xf32> -> vector<64x256xf32>
    %cst_65 = arith.constant dense<0.000000e+00> : vector<256xf32>
    %298 = vector.multi_reduction <add>, %297, %cst_65 [0] : vector<64x256xf32> to vector<256xf32>
    %299 = vector.shape_cast %298 : vector<256xf32> to vector<1x256xf32>
    %300 = arith.mulf %297, %297 : vector<64x256xf32>
    %cst_66 = arith.constant dense<0.000000e+00> : vector<256xf32>
    %301 = vector.multi_reduction <add>, %300, %cst_66 [0] : vector<64x256xf32> to vector<256xf32>
    %302 = vector.shape_cast %301 : vector<256xf32> to vector<1x256xf32>
    %303 = vector.extract_strided_slice %299 {offsets = [0, 0], sizes = [1, 32], strides = [1, 1]} : vector<1x256xf32> to vector<1x32xf32>
    %304 = vector.extract_strided_slice %302 {offsets = [0, 0], sizes = [1, 32], strides = [1, 1]} : vector<1x256xf32> to vector<1x32xf32>
    %305 = vector.extract_strided_slice %299 {offsets = [0, 32], sizes = [1, 32], strides = [1, 1]} : vector<1x256xf32> to vector<1x32xf32>
    %306 = arith.addf %303, %305 : vector<1x32xf32>
    %307 = vector.extract_strided_slice %302 {offsets = [0, 32], sizes = [1, 32], strides = [1, 1]} : vector<1x256xf32> to vector<1x32xf32>
    %308 = arith.addf %304, %307 : vector<1x32xf32>
    %309 = vector.extract_strided_slice %299 {offsets = [0, 64], sizes = [1, 32], strides = [1, 1]} : vector<1x256xf32> to vector<1x32xf32>
    %310 = arith.addf %306, %309 : vector<1x32xf32>
    %311 = vector.extract_strided_slice %302 {offsets = [0, 64], sizes = [1, 32], strides = [1, 1]} : vector<1x256xf32> to vector<1x32xf32>
    %312 = arith.addf %308, %311 : vector<1x32xf32>
    %313 = vector.extract_strided_slice %299 {offsets = [0, 96], sizes = [1, 32], strides = [1, 1]} : vector<1x256xf32> to vector<1x32xf32>
    %314 = arith.addf %310, %313 : vector<1x32xf32>
    %315 = vector.extract_strided_slice %302 {offsets = [0, 96], sizes = [1, 32], strides = [1, 1]} : vector<1x256xf32> to vector<1x32xf32>
    %316 = arith.addf %312, %315 : vector<1x32xf32>
    %317 = vector.extract_strided_slice %299 {offsets = [0, 128], sizes = [1, 32], strides = [1, 1]} : vector<1x256xf32> to vector<1x32xf32>
    %318 = arith.addf %314, %317 : vector<1x32xf32>
    %319 = vector.extract_strided_slice %302 {offsets = [0, 128], sizes = [1, 32], strides = [1, 1]} : vector<1x256xf32> to vector<1x32xf32>
    %320 = arith.addf %316, %319 : vector<1x32xf32>
    %321 = vector.extract_strided_slice %299 {offsets = [0, 160], sizes = [1, 32], strides = [1, 1]} : vector<1x256xf32> to vector<1x32xf32>
    %322 = arith.addf %318, %321 : vector<1x32xf32>
    %323 = vector.extract_strided_slice %302 {offsets = [0, 160], sizes = [1, 32], strides = [1, 1]} : vector<1x256xf32> to vector<1x32xf32>
    %324 = arith.addf %320, %323 : vector<1x32xf32>
    %325 = vector.extract_strided_slice %299 {offsets = [0, 192], sizes = [1, 32], strides = [1, 1]} : vector<1x256xf32> to vector<1x32xf32>
    %326 = arith.addf %322, %325 : vector<1x32xf32>
    %327 = vector.extract_strided_slice %302 {offsets = [0, 192], sizes = [1, 32], strides = [1, 1]} : vector<1x256xf32> to vector<1x32xf32>
    %328 = arith.addf %324, %327 : vector<1x32xf32>
    %329 = vector.extract_strided_slice %299 {offsets = [0, 224], sizes = [1, 32], strides = [1, 1]} : vector<1x256xf32> to vector<1x32xf32>
    %330 = arith.addf %326, %329 : vector<1x32xf32>
    %331 = vector.extract_strided_slice %302 {offsets = [0, 224], sizes = [1, 32], strides = [1, 1]} : vector<1x256xf32> to vector<1x32xf32>
    %332 = arith.addf %328, %331 : vector<1x32xf32>
    %cst_67 = arith.constant 0.001953125 : f32
    %333 = vector.broadcast %cst_67 : f32 to vector<1x32xf32>
    %334 = arith.mulf %330, %333 : vector<1x32xf32>
    %cst_68 = arith.constant 0.001953125 : f32
    %335 = vector.broadcast %cst_68 : f32 to vector<1x32xf32>
    %336 = arith.mulf %332, %335 : vector<1x32xf32>
    %337 = arith.mulf %334, %334 : vector<1x32xf32>
    %338 = arith.subf %336, %337 : vector<1x32xf32>
    %cst_69 = arith.constant 0.000000e+00 : f32
    %339 = vector.broadcast %cst_69 : f32 to vector<1x32xf32>
    %340 = arith.maximumf %338, %339 : vector<1x32xf32>
    %c4_70 = arith.constant 4 : index
    %c0_71 = arith.constant 0 : index
    %341 = vector.load %arg2[%c4_70, %c0_71] : memref<5x32xf32, #tpu.memory_space<vmem>>, vector<1x32xf32>
    %cst_72 = arith.constant 9.99999974E-6 : f32
    %342 = vector.broadcast %cst_72 : f32 to vector<1x32xf32>
    %343 = arith.addf %340, %342 : vector<1x32xf32>
    %344 = math.rsqrt %343 : vector<1x32xf32>
    %345 = arith.mulf %341, %344 : vector<1x32xf32>
    %c4_73 = arith.constant 4 : index
    %c0_74 = arith.constant 0 : index
    %346 = vector.load %arg3[%c4_73, %c0_74] : memref<5x32xf32, #tpu.memory_space<vmem>>, vector<1x32xf32>
    %347 = arith.mulf %334, %345 : vector<1x32xf32>
    %348 = arith.subf %346, %347 : vector<1x32xf32>
    %349 = tpu.concatenate %345, %345, %345, %345, %345, %345, %345, %345 in 1 : vector<1x32xf32>, vector<1x32xf32>, vector<1x32xf32>, vector<1x32xf32>, vector<1x32xf32>, vector<1x32xf32>, vector<1x32xf32>, vector<1x32xf32> -> vector<1x256xf32>
    %350 = tpu.concatenate %348, %348, %348, %348, %348, %348, %348, %348 in 1 : vector<1x32xf32>, vector<1x32xf32>, vector<1x32xf32>, vector<1x32xf32>, vector<1x32xf32>, vector<1x32xf32>, vector<1x32xf32>, vector<1x32xf32> -> vector<1x256xf32>
    %351 = vector.broadcast %349 : vector<1x256xf32> to vector<64x256xf32>
    %352 = arith.mulf %297, %351 : vector<64x256xf32>
    %353 = vector.broadcast %350 : vector<1x256xf32> to vector<64x256xf32>
    %354 = arith.addf %352, %353 : vector<64x256xf32>
    %355 = arith.addf %354, %214 : vector<64x256xf32>
    %cst_75 = arith.constant 0.000000e+00 : f32
    %356 = vector.broadcast %cst_75 : f32 to vector<64x256xf32>
    %357 = arith.maximumf %355, %356 : vector<64x256xf32>
    %358 = arith.truncf %357 : vector<64x256xf32> to vector<64x256xbf16>
    %c0_76 = arith.constant 0 : index
    %c0_77 = arith.constant 0 : index
    %359 = vector.load %arg4[%c0_76, %c0_77] : memref<32x32xbf16, #tpu.memory_space<vmem>>, vector<32x32xbf16>
    %360 = vector.extract_strided_slice %358 {offsets = [0, 0], sizes = [32, 256], strides = [1, 1]} : vector<64x256xbf16> to vector<32x256xbf16>
    %cst_78 = arith.constant dense<0.000000e+00> : vector<32x256xf32>
    %361 = tpu.matmul %359, %360, %cst_78 {dimension_numbers = #tpu.dot_dimension_numbers<[1], [0], [0], [1], [0, 0, 1, 1], [], []>} : vector<32x32xbf16>, vector<32x256xbf16>, vector<32x256xf32> -> vector<32x256xf32>
    %c0_79 = arith.constant 0 : index
    %c0_80 = arith.constant 0 : index
    %362 = vector.load %arg5[%c0_79, %c0_80] : memref<64x256xf32, #tpu.memory_space<vmem>>, vector<32x256xf32>
    tpu.vector_store %arg5[%c0_79, %c0_80], %361 {strides = array<i32>} : memref<64x256xf32, #tpu.memory_space<vmem>>, vector<32x256xf32>,
    %363 = vector.extract_strided_slice %358 {offsets = [32, 0], sizes = [32, 256], strides = [1, 1]} : vector<64x256xbf16> to vector<32x256xbf16>
    %cst_81 = arith.constant dense<0.000000e+00> : vector<32x256xf32>
    %364 = tpu.matmul %359, %363, %cst_81 {dimension_numbers = #tpu.dot_dimension_numbers<[1], [0], [0], [1], [0, 0, 1, 1], [], []>} : vector<32x32xbf16>, vector<32x256xbf16>, vector<32x256xf32> -> vector<32x256xf32>
    %c32 = arith.constant 32 : index
    %c0_82 = arith.constant 0 : index
    %365 = vector.load %arg5[%c32, %c0_82] : memref<64x256xf32, #tpu.memory_space<vmem>>, vector<32x256xf32>
    tpu.vector_store %arg5[%c32, %c0_82], %364 {strides = array<i32>} : memref<64x256xf32, #tpu.memory_space<vmem>>, vector<32x256xf32>,
    return
  }
}

</mosaic_0001>

<bundles_post_ra>
// kernel: mul.6
= control target key start
LH: loop header
LB: loop body
LE: loop exit
PB: predicated region body
PF: predicated region fallthrough
CT: control target
= control target key end

     0   :  { %2 = vsyncpa [#allocation1], 0  ;;  %s111_s6 = smov [#allocation0]   ;;  %s151_s0 = inlined_call_operand.hbm [shape: f32[2,4,8], index: 0, kind: input, shape index: {}]   ;;  %s152_s1 = inlined_call_operand.vmem [shape: f32[2,4,8,32], index: 1, kind: output, shape index: {}]  }
   0x1   :  { %s8_s7 = sshll.u32 %s111_s6, 4  ;;  %s9_s7 = int_to_ptr.vmem [resolvable:$true] %s8_s7 }
   0x2   :  { %s97_s8 = scalar_lea.vmem %s9_s7, 128  ;;  %p102_p1 = scmp.lt.s32.totalorder %s9_s7, %s9_s7 }
   0x3   :  { %p98_p0 = scmp.ne.s32.totalorder %s9_s7, %s97_s8  ;;  %p103_p2 = scmp.lt.s32.totalorder %s97_s8, %s97_s8 }
   0x5   :  { %p104_p3 = por %p103_p2, %p102_p1 }
   0x7   :  { %p105_p4 = pnand %p104_p3, %p98_p0 }
   0x9   :  { %108 = shalt.err (!%p105_p4)
}
   0xa   :  { %s112_s9 = smov 64   ;;  %s113_s10 = smov 4  }
   0xb   :  { %14 = dma.hbm_to_vmem [thread:$0]  %s151_s0, 128, %s9_s7, [#allocation1], %s112_s9, %s112_s9, %s113_s10  }
   0xc   :  { %109 = dma.done.wait [#allocation1], 128  }
   0xd   :  { %110 = vsyncadd [#allocation1], 4294967168  ;;  %v31_v0 = vld [vmem:[#allocation0 + $0x1] ss:$0 sm:$0xff]  ;;  %v18_v1 = vld [vmem:[#allocation0] ss:$0 sm:$0xff] }
   0xe   :  { %33 = vbcast.lane.b32.xlu1 %v31_v0, 256  ;;  %20 = vbcast.lane.b32.xlu0 %v18_v1, 256  ;;  %v39_v2 = vld [vmem:[#allocation0 + $0x5] ss:$0 sm:$0xff]  ;;  %v24_v3 = vld [vmem:[#allocation0 + $0x4] ss:$0 sm:$0xff] }
   0xf   :  { %v54_v4 = vld [vmem:[#allocation0 + $0x6] ss:$0 sm:$0xff]  ;;  %v46_v5 = vld [vmem:[#allocation0 + $0x2] ss:$0 sm:$0xff]  ;;  %v69_v6 = vld [vmem:[#allocation0 + $0x7] ss:$0 sm:$0xff] }
  0x10   :  { %v61_v7 = vld [vmem:[#allocation0 + $0x3] ss:$0 sm:$0xff] }
  0x12   :  { %41 = vbcast.lane.b32.xlu1 %v39_v2, 256  ;;  %26 = vbcast.lane.b32.xlu0 %v24_v3, 256 }
  0x16   :  { %56 = vbcast.lane.b32.xlu1 %v54_v4, 256  ;;  %48 = vbcast.lane.b32.xlu0 %v46_v5, 256 }
  0x1a   :  { %71 = vbcast.lane.b32.xlu1 %v69_v6, 256  ;;  %63 = vbcast.lane.b32.xlu0 %v61_v7, 256 }
  0x80   :  { %v34_v8 = vpop.permute.xlu1 %33  ;;  %v21_v9 = vpop.permute.xlu0 %20 }
  0x81   :  { %80 = vst [vmem:[%s152_s1 + $0x8] sm:$0xff] %v34_v8  ;;  %22 = vst [vmem:[%s152_s1] sm:$0xff] %v21_v9 }
  0x84   :  { %v42_v10 = vpop.permute.xlu1 %41  ;;  %v27_v11 = vpop.permute.xlu0 %26 }
  0x85   :  { %81 = vst [vmem:[%s152_s1 + $0x28] sm:$0xff] %v42_v10  ;;  %79 = vst [vmem:[%s152_s1 + $0x20] sm:$0xff] %v27_v11 }
  0x88   :  { %v57_v12 = vpop.permute.xlu1 %56  ;;  %v49_v13 = vpop.permute.xlu0 %48 }
  0x89   :  { %83 = vst [vmem:[%s152_s1 + $0x30] sm:$0xff] %v57_v12  ;;  %82 = vst [vmem:[%s152_s1 + $0x10] sm:$0xff] %v49_v13 }
  0x8c   :  { %v72_v14 = vpop.permute.xlu1 %71  ;;  %v64_v15 = vpop.permute.xlu0 %63 }
  0x8d   :  { %85 = vst [vmem:[%s152_s1 + $0x38] sm:$0xff] %v72_v14  ;;  %84 = vst [vmem:[%s152_s1 + $0x18] sm:$0xff] %v64_v15 }
  0x8e   :  { %75 = vsyncpa [#allocation1], 1 }

// kernel: net_forward.1
= control target key start
LH: loop header
LB: loop body
LE: loop exit
PB: predicated region body
PF: predicated region fallthrough
CT: control target
= control target key end

     0   :  { %10 = vsyncpa [#allocation3], 0  ;;  %s9294_s0 = inlined_call_operand.vmem [shape: f32[64,256], index: 0, kind: input, shape index: {}]   ;;  %s9295_s1 = inlined_call_operand.hbm [shape: bf16[5,768,256], index: 1, kind: input, shape index: {}]   ;;  %s9296_s2 = inlined_call_operand.hbm [shape: f32[5,32], index: 2, kind: input, shape index: {}]   ;;  %s9297_s3 = inlined_call_operand.hbm [shape: f32[5,32], index: 3, kind: input, shape index: {}]   ;;  %s9298_s4 = inlined_call_operand.hbm [shape: bf16[32,32], index: 4, kind: input, shape index: {}]   ;;  %s9299_s5 = inlined_call_operand.vmem [shape: f32[64,256], index: 5, kind: output, shape index: {}]  }
   0x1   :  { %11 = vsyncpa [#allocation5], 0 }
   0x2   :  { %12 = vsyncpa [#allocation8], 0  ;;  %s7477_s18 = smov [#allocation4]   ;;  %s7478_s20 = smov [#allocation2]  }
   0x3   :  { %s33_s19 = sshll.u32 %s7477_s18, 4  ;;  %s20_s21 = sshll.u32 %s7478_s20, 4  ;;  %s34_s19 = int_to_ptr.vmem [resolvable:$true] %s33_s19  ;;  %s21_s21 = int_to_ptr.vmem [resolvable:$true] %s20_s21 }
   0x4   :  { %s7399_s22 = scalar_lea.vmem %s34_s19, 128  ;;  %p7404_p1 = scmp.lt.s32.totalorder %s34_s19, %s34_s19 }
   0x5   :  { %p7400_p0 = scmp.ne.s32.totalorder %s34_s19, %s7399_s22  ;;  %p7405_p2 = scmp.lt.s32.totalorder %s7399_s22, %s7399_s22 }
   0x7   :  { %p7406_p3 = por %p7405_p2, %p7404_p1 }
   0x9   :  { %p7407_p4 = pnand %p7406_p3, %p7400_p0 }
   0xb   :  { %7410 = shalt.err (!%p7407_p4)
}
   0xc   :  { %36 = dma.hbm_to_vmem [thread:$0]  %s9296_s2, 128, %s34_s19, [#allocation5]  }
   0xd   :  { %s7419_s25 = scalar_lea.vmem %s21_s21, 61440  ;;  %p7424_p6 = scmp.lt.s32.totalorder %s21_s21, %s21_s21 }
   0xe   :  { %p7420_p5 = scmp.ne.s32.totalorder %s21_s21, %s7419_s25  ;;  %p7425_p7 = scmp.lt.s32.totalorder %s7419_s25, %s7419_s25 }
  0x10   :  { %p7426_p8 = por %p7425_p7, %p7424_p6 }
  0x12   :  { %p7427_p9 = pnand %p7426_p8, %p7420_p5 }
  0x14   :  { %7430 = shalt.err (!%p7427_p9)
}
  0x15   :  { %s7479_s26 = smov 128   ;;  %s7480_s27 = smov 8  }
  0x16   :  { %26 = dma.hbm_to_vmem [thread:$0]  %s9295_s1, 61440, %s21_s21, [#allocation3], %s7479_s26, %s7479_s26, %s7480_s27  }
  0x17   :  { %s7481_s30 = smov [#allocation6]   ;;  %s7482_s7 = smov [#allocation7]  }
  0x18   :  { %s43_s6 = sshll.u32 %s7481_s30, 4  ;;  %s52_s8 = sshll.u32 %s7482_s7, 4  ;;  %s44_s6 = int_to_ptr.vmem [resolvable:$true] %s43_s6  ;;  %s53_s8 = int_to_ptr.vmem [resolvable:$true] %s52_s8 }
  0x19   :  { %s7439_s2 = scalar_lea.vmem %s44_s6, 128  ;;  %p7444_p11 = scmp.lt.s32.totalorder %s44_s6, %s44_s6 }
  0x1a   :  { %p7440_p10 = scmp.ne.s32.totalorder %s44_s6, %s7439_s2  ;;  %p7445_p12 = scmp.lt.s32.totalorder %s7439_s2, %s7439_s2 }
  0x1c   :  { %p7446_p13 = por %p7445_p12, %p7444_p11 }
  0x1e   :  { %p7447_p0 = pnand %p7446_p13, %p7440_p10 }
  0x20   :  { %7450 = shalt.err (!%p7447_p0)
}
  0x21   :  { %46 = dma.hbm_to_vmem [thread:$0]  %s9297_s3, 128, %s44_s6, [#allocation5]  }
  0x22   :  { %s7459_s11 = scalar_lea.vmem %s53_s8, 256  ;;  %p7464_p2 = scmp.lt.s32.totalorder %s53_s8, %s53_s8 }
  0x23   :  { %p7460_p1 = scmp.ne.s32.totalorder %s53_s8, %s7459_s11  ;;  %p7465_p3 = scmp.lt.s32.totalorder %s7459_s11, %s7459_s11 }
  0x25   :  { %p7466_p4 = por %p7465_p3, %p7464_p2 }
  0x27   :  { %p7467_p5 = pnand %p7466_p4, %p7460_p1 }
  0x29   :  { %7470 = shalt.err (!%p7467_p5)
}
  0x2a   :  { %s7483_s1 = smov 64   ;;  %s7484_s12 = smov 4  }
  0x2b   :  { %58 = dma.hbm_to_vmem [thread:$0]  %s9298_s4, 256, %s53_s8, [#allocation8], %s7483_s1, %s7483_s1, %s7484_s12  }
  0x2c   :  { %7471 = dma.done.wait [#allocation3], 61440  }
  0x2d   :  { %7472 = vsyncadd [#allocation3], 4294905856 }
  0x2e   :  { %7473 = dma.done.wait [#allocation5], 256  }
  0x2f   :  { %7474 = vsyncadd [#allocation5], 4294967040 }
  0x30   :  { %7475 = dma.done.wait [#allocation8], 256  }
  0x31   :  { %7476 = vsyncadd [#allocation8], 4294967040  ;;  %v6659_v0 = vld [vmem:[#allocation2 + $0x74] ss:$8 sps:$4 sm:$0xff]   ;;  %v6663_v2 = vld [vmem:[#allocation2 + $0x70] ss:$8 sps:$4 sm:$0xff]  }
  0x32   :  { %v6661_v1 = vld [vmem:[#allocation2 + $0x174] ss:$8 sps:$4 sm:$0xff]   ;;  %802 = vmatprep.subr.bf16.mxu0 %v6659_v0  ;;  %v6664_v3 = vld [vmem:[#allocation2 + $0x170] ss:$8 sps:$4 sm:$0xff]   ;;  %v6665_v4 = vld [vmem:[#allocation2 + $0x64] ss:$8 sps:$4 sm:$0xff]  }
  0x33   :  { %875 = vmatprep.subr.bf16.mxu1 %v6661_v1  ;;  %803 = vmatpush1.bf16.msra.mxu0 %v6663_v2  ;;  %v6667_v5 = vld [vmem:[#allocation2 + $0x164] ss:$8 sps:$4 sm:$0xff]   ;;  %v6669_v6 = vld [vmem:[#allocation2 + $0x60] ss:$8 sps:$4 sm:$0xff]   ;;  %v6671_v8 = vld [vmem:[#allocation2 + $0x54] ss:$8 sps:$4 sm:$0xff]  }
  0x34   :  { %876 = vmatpush1.bf16.msra.mxu1 %v6664_v3  ;;  %804 = vmatprep.subr.bf16.mxu0 %v6665_v4  ;;  %v6670_v7 = vld [vmem:[#allocation2 + $0x160] ss:$8 sps:$4 sm:$0xff]   ;;  %v6673_v9 = vld [vmem:[#allocation2 + $0x154] ss:$8 sps:$4 sm:$0xff]   ;;  %v6675_v10 = vld [vmem:[#allocation2 + $0x50] ss:$8 sps:$4 sm:$0xff]  }
  0x35   :  { %877 = vmatprep.subr.bf16.mxu1 %v6667_v5  ;;  %v6676_v11 = vld [vmem:[#allocation2 + $0x150] ss:$8 sps:$4 sm:$0xff]   ;;  %v6677_v12 = vld [vmem:[#allocation2 + $0x44] ss:$8 sps:$4 sm:$0xff]   ;;  %v6681_v14 = vld [vmem:[#allocation2 + $0x40] ss:$8 sps:$4 sm:$0xff]  }
  0x36   :  { %v6679_v13 = vld [vmem:[#allocation2 + $0x144] ss:$8 sps:$4 sm:$0xff]   ;;  %v6682_v15 = vld [vmem:[#allocation2 + $0x140] ss:$8 sps:$4 sm:$0xff]   ;;  %v6683_v16 = vld [vmem:[#allocation2 + $0x34] ss:$8 sps:$4 sm:$0xff]  }
  0x37   :  { %805 = vmatpush1.bf16.msra.mxu0 %v6669_v6  ;;  %v6685_v17 = vld [vmem:[#allocation2 + $0x134] ss:$8 sps:$4 sm:$0xff]   ;;  %v6687_v18 = vld [vmem:[#allocation2 + $0x30] ss:$8 sps:$4 sm:$0xff]   ;;  %v6689_v20 = vld [vmem:[#allocation2 + $0x24] ss:$8 sps:$4 sm:$0xff]  }
  0x38   :  { %878 = vmatpush1.bf16.msra.mxu1 %v6670_v7  ;;  %806 = vmatprep.subr.bf16.mxu0 %v6671_v8  ;;  %v6688_v19 = vld [vmem:[#allocation2 + $0x130] ss:$8 sps:$4 sm:$0xff]   ;;  %v6691_v21 = vld [vmem:[#allocation2 + $0x124] ss:$8 sps:$4 sm:$0xff]   ;;  %v6693_v22 = vld [vmem:[#allocation2 + $0x20] ss:$8 sps:$4 sm:$0xff]  }
  0x39   :  { %879 = vmatprep.subr.bf16.mxu1 %v6673_v9  ;;  %v6694_v23 = vld [vmem:[#allocation2 + $0x120] ss:$8 sps:$4 sm:$0xff]   ;;  %v6695_v24 = vld [vmem:[#allocation2 + $0x14] ss:$8 sps:$4 sm:$0xff]   ;;  %v6699_v26 = vld [vmem:[#allocation2 + $0x10] ss:$8 sps:$4 sm:$0xff]  }
  0x3a   :  { %v6697_v25 = vld [vmem:[#allocation2 + $0x114] ss:$8 sps:$4 sm:$0xff]   ;;  %v6700_v27 = vld [vmem:[#allocation2 + $0x110] ss:$8 sps:$4 sm:$0xff]   ;;  %v6701_v28 = vld [vmem:[#allocation2 + $0x4] ss:$8 sps:$4 sm:$0xff]  }
  0x3b   :  { %807 = vmatpush1.bf16.msra.mxu0 %v6675_v10  ;;  %v6703_v29 = vld [vmem:[#allocation2 + $0x104] ss:$8 sps:$4 sm:$0xff]   ;;  %v6705_v30 = vld [vmem:[#allocation2] ss:$8 sps:$4 sm:$0xff]   ;;  %v6707_v32 = vld [vmem:[#allocation2 + $0xf4] ss:$8 sps:$4 sm:$0xff]  }
  0x3c   :  { %880 = vmatpush1.bf16.msra.mxu1 %v6676_v11  ;;  %808 = vmatprep.subr.bf16.mxu0 %v6677_v12  ;;  %v6706_v31 = vld [vmem:[#allocation2 + $0x100] ss:$8 sps:$4 sm:$0xff]   ;;  %v6709_v33 = vld [vmem:[#allocation2 + $0x1f4] ss:$8 sps:$4 sm:$0xff]   ;;  %v6711_v34 = vld [vmem:[#allocation2 + $0xf0] ss:$8 sps:$4 sm:$0xff]  }
  0x3d   :  { %881 = vmatprep.subr.bf16.mxu1 %v6679_v13  ;;  %v6712_v35 = vld [vmem:[#allocation2 + $0x1f0] ss:$8 sps:$4 sm:$0xff]   ;;  %v6713_v36 = vld [vmem:[#allocation2 + $0xe4] ss:$8 sps:$4 sm:$0xff]   ;;  %v6717_v38 = vld [vmem:[#allocation2 + $0xe0] ss:$8 sps:$4 sm:$0xff]  }
  0x3e   :  { %v6715_v37 = vld [vmem:[#allocation2 + $0x1e4] ss:$8 sps:$4 sm:$0xff]   ;;  %v6718_v39 = vld [vmem:[#allocation2 + $0x1e0] ss:$8 sps:$4 sm:$0xff]   ;;  %v6719_v40 = vld [vmem:[#allocation2 + $0xd4] ss:$8 sps:$4 sm:$0xff]  }
  0x3f   :  { %809 = vmatpush1.bf16.msra.mxu0 %v6681_v14  ;;  %v6721_v41 = vld [vmem:[#allocation2 + $0x1d4] ss:$8 sps:$4 sm:$0xff]   ;;  %v6723_v42 = vld [vmem:[#allocation2 + $0xd0] ss:$8 sps:$4 sm:$0xff]   ;;  %vm104_vm0 = vcmask 1040384   ;;  %v7536_v47 = vld [vmem:[%s9294_s0 + $0x8] sm:$0xff] }
  0x40   :  { %882 = vmatpush1.bf16.msra.mxu1 %v6682_v15  ;;  %810 = vmatprep.subr.bf16.mxu0 %v6683_v16  ;;  %v6724_v43 = vld [vmem:[#allocation2 + $0x1d0] ss:$8 sps:$4 sm:$0xff]   ;;  %v6725_v44 = vld [vmem:[#allocation2 + $0xc4] ss:$8 sps:$4 sm:$0xff]   ;;  %v6729_v46 = vld [vmem:[#allocation2 + $0xc0] ss:$8 sps:$4 sm:$0xff]  }
  0x41   :  { %883 = vmatprep.subr.bf16.mxu1 %v6685_v17  ;;  %v6727_v45 = vld [vmem:[#allocation2 + $0x1c4] ss:$8 sps:$4 sm:$0xff]   ;;  %vm7539_vm1 = vmneg %vm104_vm0  ;;  %v6730_v49 = vld [vmem:[#allocation2 + $0x1c0] ss:$8 sps:$4 sm:$0xff]   ;;  %v106_v51 = vrot.slane %v7536_v47, 7  ;;  %vm7485_vm2 = vmmov 1  }
  0x42   :  { %v7546_v50 = vld [vmem:[%s9294_s0 + $0x18] sm:$0xff]  ;;  %v7552_v52 = vld [vmem:[%s9294_s0] sm:$0xff]  ;;  %vm7562_vm3 = vmpackc.low %vm7485_vm2, %vm7539_vm1  ;;  %vm153_vm4 = vcmask 1046528   ;;  %s7487_s17 = smov 32   ;;  %vm1165_vm6 = vcmask 261120   ;;  %vm1167_vm7 = vcmask 523264  }
  0x43   :  { %811 = vmatpush1.bf16.msra.mxu0 %v6687_v18  ;;  %v109_v53 = vrot.slane %v7546_v50, 7  ;;  %v205_v54 = vpack.c.bf16 %v7546_v50, %v7536_v47  ;;  %v6731_v55 = vld [vmem:[#allocation2 + $0xb4] ss:$8 sps:$4 sm:$0xff]   ;;  %v154_v57 = vrot.slane %v7552_v52, 1  ;;  %v6735_v61 = vld [vmem:[#allocation2 + $0xb0] ss:$8 sps:$4 sm:$0xff]   ;;  %vm7724_vm5 = vmpackc.low %vm153_vm4, %vm7485_vm2 }
  0x44   :  { %884 = vmatpush1.bf16.msra.mxu1 %v6688_v19  ;;  %812 = vmatprep.subr.bf16.mxu0 %v6689_v20  ;;  %v6733_v56 = vld [vmem:[#allocation2 + $0x1b4] ss:$8 sps:$4 sm:$0xff]   ;;  %v6736_v62 = vld [vmem:[#allocation2 + $0x1b0] ss:$8 sps:$4 sm:$0xff]   ;;  %v6737_v1 = vld [vmem:[#allocation2 + $0xa4] ss:$8 sps:$4 sm:$0xff]  }
  0x45   :  { %885 = vmatprep.subr.bf16.mxu1 %v6691_v21  ;;  %v110_v58 = vsel %vm104_vm0, %v106_v51, %v109_v53  ;;  %907 = vmatprep.mubr.bf16.mxu1 %v205_v54  ;;  %v7569_v60 = vld [vmem:[%s9294_s0 + $0x10] sm:$0xff]  ;;  %v6739_v2 = vld [vmem:[#allocation2 + $0x1a4] ss:$8 sps:$4 sm:$0xff]   ;;  %v6741_v4 = vld [vmem:[#allocation2 + $0xa0] ss:$8 sps:$4 sm:$0xff]   ;;  %v105_v12 = vrot.slane %v7552_v52, 7 }
  0x46   :  { %v6119_v63 = vpack.c.bf16 %v110_v58, %v106_v51  ;;  %v155_v0 = vrot.slane %v7569_v60, 1  ;;  %v6742_v5 = vld [vmem:[#allocation2 + $0x1a0] ss:$8 sps:$4 sm:$0xff]   ;;  %v6743_v6 = vld [vmem:[#allocation2 + $0x94] ss:$8 sps:$4 sm:$0xff]   ;;  %v107_v13 = vrot.slane %v7569_v60, 7 }
  0x47   :  { %813 = vmatpush1.bf16.msra.mxu0 %v6693_v22  ;;  %v6745_v7 = vld [vmem:[#allocation2 + $0x194] ss:$8 sps:$4 sm:$0xff]   ;;  %v6747_v8 = vld [vmem:[#allocation2 + $0x90] ss:$8 sps:$4 sm:$0xff]   ;;  %v6749_v10 = vld [vmem:[#allocation2 + $0x84] ss:$8 sps:$4 sm:$0xff]  }
  0x48   :  { %886 = vmatpush1.bf16.msra.mxu1 %v6694_v23  ;;  %814 = vmatprep.subr.bf16.mxu0 %v6695_v24  ;;  %v7573_v3 = vsel %vm153_vm4, %v154_v57, %v155_v0  ;;  %v6748_v9 = vld [vmem:[#allocation2 + $0x190] ss:$8 sps:$4 sm:$0xff]   ;;  %v6751_v11 = vld [vmem:[#allocation2 + $0x184] ss:$8 sps:$4 sm:$0xff]   ;;  %v6753_v20 = vld [vmem:[#allocation2 + $0x80] ss:$8 sps:$4 sm:$0xff]   ;;  %v108_v22 = vsel %vm104_vm0, %v105_v12, %v107_v13 }
  0x49   :  { %887 = vmatprep.subr.bf16.mxu1 %v6697_v25  ;;  %6120 = vmatprep.mubr.msk.bf16.mxu0 %vm7562_vm3, %v6119_v63  ;;  %v7582_v14 = vld [vmem:[%s9294_s0 + $0x28] sm:$0xff]  ;;  %v7587_v15 = vld [vmem:[%s9294_s0 + $0x38] sm:$0xff]  ;;  %v7594_v18 = vld [vmem:[%s9294_s0 + $0x20] sm:$0xff]  ;;  %vm1169_vm8 = vcmask 785408  }
  0x4a   :  { %v113_v16 = vrot.slane %v7582_v14, 7  ;;  %v117_v17 = vrot.slane %v7587_v15, 7  ;;  %v160_v19 = vrot.slane %v7594_v18, 1  ;;  %v6754_v21 = vld [vmem:[#allocation2 + $0x180] ss:$8 sps:$4 sm:$0xff]  }
  0x4b   :  { %815 = vmatpush1.bf16.msra.mxu0 %v6699_v26  ;;  %v6757_v23 = vld [vmem:[#allocation2 + $0x274] ss:$8 sps:$4 sm:$0xff]   ;;  %v7648_v48 = vld [vmem:[%s9294_s0 + $0x68] sm:$0xff]  ;;  %v7660_v54 = vld [vmem:[%s9294_s0 + $0x60] sm:$0xff] }
  0x4c   :  { %888 = vmatpush1.bf16.msra.mxu1 %v6700_v27  ;;  %816 = vmatprep.subr.bf16.mxu0 %v6701_v28  ;;  %v7601_v24 = vsel %vm153_vm4, %v155_v0, %v160_v19  ;;  %v114_v25 = vsel %vm104_vm0, %v109_v53, %v113_v16  ;;  %v118_v26 = vsel %vm104_vm0, %v113_v16, %v117_v17  ;;  %v7608_v27 = vld [vmem:[%s9294_s0 + $0x30] sm:$0xff]  ;;  %v7613_v28 = vld [vmem:[%s9294_s0 + $0x48] sm:$0xff]  ;;  %v7655_v53 = vld [vmem:[%s9294_s0 + $0x78] sm:$0xff] }
  0x4d   :  { %889 = vmatprep.subr.bf16.mxu1 %v6703_v29  ;;  %v7618_v29 = vld [vmem:[%s9294_s0 + $0x58] sm:$0xff]  ;;  %v210_v58 = vpack.c.bf16 %v7608_v27, %v7594_v18  ;;  %v6766_v63 = vld [vmem:[#allocation2 + $0x244] ss:$8 sps:$4 sm:$0xff]   ;;  %v7697_v17 = vld [vmem:[%s9294_s0 + $0x70] sm:$0xff] }
  0x4e   :  { %v6763_v51 = vld [vmem:[#allocation2 + $0x254] ss:$8 sps:$4 sm:$0xff]   ;;  %v6761_v57 = vld [vmem:[#allocation2 + $0x250] ss:$8 sps:$4 sm:$0xff]  }
  0x4f   :  { %817 = vmatpush1.bf16.msra.mxu0 %v6705_v30  ;;  %v6123_v30 = vpack.c.bf16 %v108_v22, %v105_v12  ;;  %v6769_v16 = vld [vmem:[#allocation2 + $0x234] ss:$8 sps:$4 sm:$0xff]  }
  0x50   :  { %890 = vmatpush1.bf16.msra.mxu1 %v6706_v31  ;;  %818 = vmatprep.subr.bf16.mxu0 %v6707_v32  ;;  %v204_v31 = vpack.c.bf16 %v7569_v60, %v7552_v52  ;;  %v206_v32 = vpack.c.bf16 %v7601_v24, %v7573_v3 }
  0x51   :  { %891 = vmatprep.subr.bf16.mxu1 %v6709_v33  ;;  %v6755_v33 = vld [vmem:[#allocation2 + $0x270] ss:$8 sps:$4 sm:$0xff]  }
  0x53   :  { %819 = vmatpush2.bf16.msra.mxu0 %v6711_v34  ;;  %v209_v34 = vpack.c.bf16 %v118_v26, %v114_v25  ;;  %v6772_v25 = vld [vmem:[#allocation2 + $0x224] ss:$8 sps:$4 sm:$0xff]  }
  0x54   :  { %892 = vmatpush2.bf16.msra.mxu1 %v6712_v35  ;;  %820 = vmatprep.subr.bf16.mxu0 %v6713_v36  ;;  %v111_v35 = vrot.slane %v7594_v18, 7  ;;  %v115_v36 = vrot.slane %v7608_v27, 7 }
  0x55   :  { %893 = vmatprep.subr.bf16.mxu1 %v6715_v37  ;;  %v6760_v37 = vld [vmem:[#allocation2 + $0x264] ss:$8 sps:$4 sm:$0xff]  }
  0x57   :  { %821 = vmatpush2.bf16.msra.mxu0 %v6717_v38  ;;  %v211_v38 = vpack.c.bf16 %v7587_v15, %v7582_v14 }
  0x58   :  { %894 = vmatpush2.bf16.msra.mxu1 %v6718_v39  ;;  %822 = vmatprep.subr.bf16.mxu0 %v6719_v40  ;;  %v120_v39 = vrot.slane %v7613_v28, 7  ;;  %v123_v40 = vrot.slane %v7618_v29, 7 }
  0x59   :  { %895 = vmatprep.subr.bf16.mxu1 %v6721_v41  ;;  %v6758_v41 = vld [vmem:[#allocation2 + $0x260] ss:$8 sps:$4 sm:$0xff]  }
  0x5a   :  { %v124_v52 = vsel %vm104_vm0, %v120_v39, %v123_v40 }
  0x5b   :  { %823 = vmatpush2.bf16.msra.mxu0 %v6723_v42  ;;  %v7635_v42 = vld [vmem:[%s9294_s0 + $0x40] sm:$0xff] }
  0x5c   :  { %896 = vmatpush2.bf16.msra.mxu1 %v6724_v43  ;;  %824 = vmatprep.subr.bf16.mxu0 %v6725_v44  ;;  %v7640_v43 = vld [vmem:[%s9294_s0 + $0x50] sm:$0xff]  ;;  %v171_v44 = vrot.slane %v7613_v28, 1  ;;  %s7486_s0 = smov 96  }
  0x5d   :  { %897 = vmatprep.subr.bf16.mxu1 %v6727_v45  ;;  %v112_v45 = vsel %vm104_vm0, %v107_v13, %v111_v35  ;;  %v6764_v13 = vld [vmem:[#allocation2 + $0x240] ss:$8 sps:$4 sm:$0xff]  }
  0x5f   :  { %825 = vmatpush2.bf16.msra.mxu0 %v6729_v46  ;;  %v116_v46 = vsel %vm104_vm0, %v111_v35, %v115_v36  ;;  %v158_v35 = vrot.slane %v7546_v50, 1  ;;  %v162_v36 = vrot.slane %v7582_v14, 1  ;;  %v6778_v14 = vld [vmem:[#allocation2 + $0x204] ss:$8 sps:$4 sm:$0xff]  }
  0x60   :  { %898 = vmatpush2.bf16.msra.mxu1 %v6730_v49  ;;  %826 = vmatprep.subr.bf16.mxu0 %v6731_v55  ;;  %v172_v49 = vrot.slane %v7618_v29, 1  ;;  %v176_v55 = vrot.slane %v7648_v48, 1  ;;  %v208_v0 = vpack.c.bf16 %v116_v46, %v112_v45  ;;  %v6776_v45 = vld [vmem:[#allocation2 + $0x200] ss:$8 sps:$4 sm:$0xff]   ;;  %v6781_v46 = vld [vmem:[#allocation2 + $0x2f4] ss:$8 sps:$4 sm:$0xff]  }
  0x61   :  { %899 = vmatprep.subr.bf16.mxu1 %v6733_v56  ;;  %v168_v56 = vrot.slane %v7635_v42, 1  ;;  %v163_v50 = vsel %vm153_vm4, %v158_v35, %v162_v36 }
  0x62   :  { %v7667_v60 = vsel %vm153_vm4, %v171_v44, %v172_v49 }
  0x63   :  { %827 = vmatpush2.bf16.msra.mxu0 %v6735_v61  ;;  %v169_v61 = vrot.slane %v7640_v43, 1 }
  0x64   :  { %900 = vmatpush2.bf16.msra.mxu1 %v6736_v62  ;;  %828 = vmatprep.subr.bf16.mxu0 %v6737_v1  ;;  %v174_v62 = vrot.slane %v7660_v54, 1  ;;  %v119_v1 = vrot.slane %v7635_v42, 7 }
  0x65   :  { %901 = vmatprep.subr.bf16.mxu1 %v6739_v2  ;;  %v121_v2 = vrot.slane %v7640_v43, 7 }
  0x67   :  { %829 = vmatpush2.bf16.msra.mxu0 %v6741_v4  ;;  %v7676_v4 = vsel %vm153_vm4, %v172_v49, %v176_v55  ;;  %v6779_v49 = vld [vmem:[#allocation2 + $0x2f0] ss:$8 sps:$4 sm:$0xff]  }
  0x68   :  { %902 = vmatpush2.bf16.msra.mxu1 %v6742_v5  ;;  %830 = vmatprep.subr.bf16.mxu0 %v6743_v6  ;;  %v6127_v5 = vpack.c.bf16 %v124_v52, %v120_v39  ;;  %v219_v6 = vpack.c.bf16 %v7676_v4, %v7667_v60  ;;  %v6782_v52 = vld [vmem:[#allocation2 + $0x2e0] ss:$8 sps:$4 sm:$0xff]  }
  0x69   :  { %903 = vmatprep.subr.bf16.mxu1 %v6745_v7  ;;  %v7681_v7 = vsel %vm153_vm4, %v168_v56, %v169_v61  ;;  %v6787_v56 = vld [vmem:[#allocation2 + $0x2d4] ss:$8 sps:$4 sm:$0xff]  }
  0x6b   :  { %831 = vmatpush2.bf16.msra.mxu0 %v6747_v8  ;;  %v7686_v8 = vsel %vm153_vm4, %v169_v61, %v174_v62  ;;  %v6788_v61 = vld [vmem:[#allocation2 + $0x2c0] ss:$8 sps:$4 sm:$0xff]  }
  0x6c   :  { %904 = vmatpush2.bf16.msra.mxu1 %v6748_v9  ;;  %832 = vmatprep.subr.bf16.mxu0 %v6749_v10  ;;  %v217_v9 = vpack.c.bf16 %v7618_v29, %v7613_v28  ;;  %v127_v10 = vrot.slane %v7648_v48, 7  ;;  %v218_v12 = vpack.c.bf16 %v7686_v8, %v7681_v7  ;;  %v216_v28 = vpack.c.bf16 %v7640_v43, %v7635_v42 }
  0x6d   :  { %905 = vmatprep.subr.bf16.mxu1 %v6751_v11  ;;  %v131_v11 = vrot.slane %v7655_v53, 7  ;;  %v222_v43 = vpack.c.bf16 %v7697_v17, %v7660_v54 }
  0x6f   :  { %833 = vmatpush2.bf16.msra.mxu0 %v6753_v20  ;;  %v122_v20 = vsel %vm104_vm0, %v119_v1, %v121_v2  ;;  %v132_v22 = vsel %vm104_vm0, %v127_v10, %v131_v11  ;;  %v166_v11 = vrot.slane %v7587_v15, 1 }
  0x70   :  { %906 = vmatpush2.bf16.msra.mxu1 %v6754_v21  ;;  %948 = vmatprep.subr.bf16.mxu0 %v6757_v23  ;;  %v128_v21 = vsel %vm104_vm0, %v123_v40, %v127_v10  ;;  %v6767_v23 = vld [vmem:[#allocation2 + $0x230] ss:$8 sps:$4 sm:$0xff]   ;;  %v6131_v26 = vpack.c.bf16 %v122_v20, %v119_v1  ;;  %v6796_v1 = vld [vmem:[#allocation2 + $0x2a4] ss:$8 sps:$4 sm:$0xff]  }
  0x71   :  { %v221_v29 = vpack.c.bf16 %v132_v22, %v128_v21  ;;  %v6802_v10 = vld [vmem:[#allocation2 + $0x284] ss:$8 sps:$4 sm:$0xff]   ;;  %v167_v20 = vsel %vm153_vm4, %v162_v36, %v166_v11  ;;  %v164_v22 = vrot.slane %v7608_v27, 1  ;;  %v178_v27 = vrot.slane %v7697_v17, 1 }
  0x72   :  { %6124 = vmatmul.mubr.msk.bf16.vlgmr.msra.gmra.mxu0 %vm7562_vm3, %v6123_v30  ;;  %v125_v30 = vrot.slane %v7660_v54, 7  ;;  %v6134_v21 = vpack.c.bf16 %v166_v11, %v167_v20 }
  0x73   :  { %908 = vmatmul.mubr.bf16.vlgmr.msra.gmra.mxu1 %v204_v31  ;;  %949 = vmatpush1.bf16.msra.mxu0 %v6755_v33  ;;  %v129_v31 = vrot.slane %v7697_v17, 7  ;;  %v157_v33 = vrot.slane %v7536_v47, 1  ;;  %v165_v15 = vsel %vm153_vm4, %v160_v19, %v164_v22  ;;  %v179_v18 = vsel %vm153_vm4, %v174_v62, %v178_v27 }
  0x74   :  { %844 = vmatprep.mubr.bf16.mxu0 %v209_v34  ;;  %950 = vmatprep.subr.bf16.mxu0 %v6760_v37  ;;  %v223_v34 = vpack.c.bf16 %v7655_v53, %v7648_v48  ;;  %v6770_v37 = vld [vmem:[#allocation2 + $0x220] ss:$8 sps:$4 sm:$0xff]   ;;  %v126_v39 = vsel %vm104_vm0, %v121_v2, %v125_v30  ;;  %v6143_v19 = vpack.c.bf16 %v178_v27, %v179_v18 }
  0x75   :  { %917 = vmatprep.mubr.bf16.mxu1 %v211_v38  ;;  %v6775_v38 = vld [vmem:[#allocation2 + $0x214] ss:$8 sps:$4 sm:$0xff]   ;;  %v130_v47 = vsel %vm104_vm0, %v125_v30, %v129_v31  ;;  %v159_v40 = vsel %vm153_vm4, %v157_v33, %v158_v35  ;;  %v6794_v2 = vld [vmem:[#allocation2 + $0x2a0] ss:$8 sps:$4 sm:$0xff]  }
  0x76   :  { %v220_v42 = vpack.c.bf16 %v130_v47, %v126_v39  ;;  %v207_v44 = vpack.c.bf16 %v163_v50, %v159_v40 }
  0x77   :  { %951 = vmatpush1.bf16.msra.mxu0 %v6758_v41  ;;  %v6773_v41 = vld [vmem:[#allocation2 + $0x210] ss:$8 sps:$4 sm:$0xff]  }
  0x78   :  { %952 = vmatprep.subr.bf16.mxu0 %v6763_v51  ;;  %v6784_v51 = vld [vmem:[#allocation2 + $0x2e4] ss:$8 sps:$4 sm:$0xff]  }
  0x7a   :  { %845 = vmatmul.mubr.bf16.gmra.mxu0 %v208_v0  ;;  %v6791_v0 = vld [vmem:[#allocation2 + $0x2b0] ss:$8 sps:$4 sm:$0xff]  }
  0x7b   :  { %918 = vmatmul.mubr.bf16.gmra.mxu1 %v210_v58  ;;  %953 = vmatpush1.bf16.msra.mxu0 %v6761_v57  ;;  %v6785_v57 = vld [vmem:[#allocation2 + $0x2d0] ss:$8 sps:$4 sm:$0xff]   ;;  %v6790_v58 = vld [vmem:[#allocation2 + $0x2c4] ss:$8 sps:$4 sm:$0xff]  }
  0x7c   :  { %6128 = vmatprep.mubr.msk.bf16.mxu0 %vm7562_vm3, %v6127_v5  ;;  %954 = vmatprep.subr.bf16.mxu0 %v6766_v63  ;;  %v6793_v63 = vld [vmem:[#allocation2 + $0x2b4] ss:$8 sps:$4 sm:$0xff]  }
  0x7d   :  { %927 = vmatprep.mubr.bf16.mxu1 %v217_v9  ;;  %v6799_v5 = vld [vmem:[#allocation2 + $0x294] ss:$8 sps:$4 sm:$0xff]   ;;  %v6797_v9 = vld [vmem:[#allocation2 + $0x290] ss:$8 sps:$4 sm:$0xff]  }
  0x7f   :  { %955 = vmatpush1.bf16.msra.mxu0 %v6764_v13 }
  0x80   :  { %956 = vmatprep.subr.bf16.mxu0 %v6769_v16  ;;  %v6800_v16 = vld [vmem:[#allocation2 + $0x280] ss:$8 sps:$4 sm:$0xff]  }
  0x82   :  { %6132 = vmatmul.mubr.msk.bf16.gmra.mxu0 %vm7562_vm3, %v6131_v26 }
  0x83   :  { %928 = vmatmul.mubr.bf16.gmra.mxu1 %v216_v28  ;;  %957 = vmatpush1.bf16.msra.mxu0 %v6767_v23  ;;  %v6137_v23 = vpack.c.bf16 %v164_v22, %v165_v15 }
  0x84   :  { %864 = vmatprep.mubr.bf16.mxu0 %v221_v29  ;;  %958 = vmatprep.subr.bf16.mxu0 %v6772_v25  ;;  %v180_v25 = vrot.slane %v7655_v53, 1 }
  0x85   :  { %937 = vmatprep.mubr.bf16.mxu1 %v223_v34 }
  0x86   :  { %v181_v3 = vsel %vm153_vm4, %v176_v55, %v180_v25 }
  0x87   :  { %959 = vmatpush1.bf16.msra.mxu0 %v6770_v37  ;;  %v6140_v24 = vpack.c.bf16 %v180_v25, %v181_v3 }
  0x88   :  { %960 = vmatprep.subr.bf16.mxu0 %v6775_v38 }
  0x8a   :  { %865 = vmatmul.mubr.bf16.gmra.mxu0 %v220_v42 }
  0x8b   :  { %938 = vmatmul.mubr.bf16.gmra.mxu1 %v222_v43  ;;  %961 = vmatpush1.bf16.msra.mxu0 %v6773_v41 }
  0x8c   :  { %980 = vmatprep.mubr.bf16.mxu0 %v207_v44  ;;  %962 = vmatprep.subr.bf16.mxu0 %v6778_v14 }
  0x8f   :  { %963 = vmatpush1.bf16.msra.mxu0 %v6776_v45 }
  0x90   :  { %964 = vmatprep.subr.bf16.mxu0 %v6781_v46 }
  0x93   :  { %965 = vmatpush2.bf16.msra.mxu0 %v6779_v49 }
  0x94   :  { %966 = vmatprep.subr.bf16.mxu0 %v6784_v51 }
  0x97   :  { %967 = vmatpush2.bf16.msra.mxu0 %v6782_v52 }
  0x98   :  { %968 = vmatprep.subr.bf16.mxu0 %v6787_v56 }
  0x9b   :  { %969 = vmatpush2.bf16.msra.mxu0 %v6785_v57 }
  0x9c   :  { %970 = vmatprep.subr.bf16.mxu0 %v6790_v58 }
  0x9f   :  { %971 = vmatpush2.bf16.msra.mxu0 %v6788_v61 }
  0xa0   :  { %972 = vmatprep.subr.bf16.mxu0 %v6793_v63 }
  0xa3   :  { %973 = vmatpush2.bf16.msra.mxu0 %v6791_v0 }
  0xa4   :  { %974 = vmatprep.subr.bf16.mxu0 %v6796_v1 }
  0xa7   :  { %975 = vmatpush2.bf16.msra.mxu0 %v6794_v2 }
  0xa8   :  { %976 = vmatprep.subr.bf16.mxu0 %v6799_v5 }
  0xab   :  { %977 = vmatpush2.bf16.msra.mxu0 %v6797_v9 }
  0xac   :  { %978 = vmatprep.subr.bf16.mxu0 %v6802_v10 }
  0xaf   :  { %979 = vmatpush2.bf16.msra.mxu0 %v6800_v16 }
  0xb2   :  { %981 = vmatmul.mubr.bf16.vlgmr.msra.gmra.mxu0 %v206_v32 }
  0xb3   :  { %6135 = vmatprep.mubr.msk.bf16.mxu0 %vm7724_vm5, %v6134_v21 }
  0xba   :  { %6138 = vmatmul.mubr.msk.bf16.gmra.mxu0 %vm7724_vm5, %v6137_v23 }
  0xbb   :  { %1000 = vmatprep.mubr.bf16.mxu0 %v219_v6 }
  0xc2   :  { %1001 = vmatmul.mubr.bf16.gmra.mxu0 %v218_v12 }
  0xc3   :  { %6141 = vmatprep.mubr.msk.bf16.mxu0 %vm7724_vm5, %v6140_v24 }
  0xca   :  { %6144 = vmatmul.mubr.msk.bf16.gmra.mxu0 %vm7724_vm5, %v6143_v19 }
 0x132   :  { %v836_v32 = vpop.f32.mrf.mxu0 }
 0x133   :  { %v909_v8 = vpop.f32.mrf.mxu1 }
 0x134   :  { %v838_v48 = vpop.f32.mrf.mxu0  ;;  %v910_v49 = vadd.f32 %v909_v8, %v836_v32 }
 0x135   :  { %v911_v17 = vpop.f32.mrf.mxu1 }
 0x136   :  { %v840_v53 = vpop.f32.mrf.mxu0  ;;  %v912_v58 = vadd.f32 %v911_v17, %v838_v48 }
 0x137   :  { %v913_v28 = vpop.f32.mrf.mxu1 }
 0x138   :  { %v842_v55 = vpop.f32.mrf.mxu0  ;;  %v914_v45 = vadd.f32 %v913_v28, %v840_v53 }
 0x139   :  { %v915_v29 = vpop.f32.mrf.mxu1 }
 0x13a   :  { %v846_v60 = vpop.f32.mrf.mxu0  ;;  %v916_v51 = vadd.f32 %v915_v29, %v842_v55 }
 0x13b   :  { %v919_v62 = vpop.f32.mrf.mxu1 }
 0x13c   :  { %v848_v4 = vpop.f32.mrf.mxu0  ;;  %v920_v52 = vadd.f32 %v919_v62, %v846_v60 }
 0x13d   :  { %v921_v31 = vpop.f32.mrf.mxu1 }
 0x13e   :  { %v850_v6 = vpop.f32.mrf.mxu0  ;;  %v922_v0 = vadd.f32 %v921_v31, %v848_v4 }
 0x13f   :  { %v923_v34 = vpop.f32.mrf.mxu1 }
 0x140   :  { %v852_v7 = vpop.f32.mrf.mxu0  ;;  %v924_v1 = vadd.f32 %v923_v34, %v850_v6 }
 0x141   :  { %v925_v36 = vpop.f32.mrf.mxu1 }
 0x142   :  { %v856_v12 = vpop.f32.mrf.mxu0  ;;  %v926_v10 = vadd.f32 %v925_v36, %v852_v7 }
 0x143   :  { %v929_v38 = vpop.f32.mrf.mxu1 }
 0x144   :  { %v858_v26 = vpop.f32.mrf.mxu0  ;;  %v930_v16 = vadd.f32 %v929_v38, %v856_v12 }
 0x145   :  { %v931_v40 = vpop.f32.mrf.mxu1 }
 0x146   :  { %v860_v54 = vpop.f32.mrf.mxu0  ;;  %v932_v23 = vadd.f32 %v931_v40, %v858_v26 }
 0x147   :  { %v933_v14 = vpop.f32.mrf.mxu1 }
 0x148   :  { %v862_v30 = vpop.f32.mrf.mxu0  ;;  %v934_v48 = vadd.f32 %v933_v14, %v860_v54 }
 0x149   :  { %v935_v44 = vpop.f32.mrf.mxu1 }
 0x14a   :  { %v7758_v33 = vpop.f32.mrf.mxu0  ;;  %v936_v12 = vadd.f32 %v935_v44, %v862_v30 }
 0x14b   :  { %v939_v61 = vpop.f32.mrf.mxu1 }
 0x14c   :  { %v7760_v35 = vpop.f32.mrf.mxu0  ;;  %v940_v38 = vadd.f32 %v939_v61, %v7758_v33 }
 0x14d   :  { %v941_v25 = vpop.f32.mrf.mxu1 }
 0x14e   :  { %v7762_v37 = vpop.f32.mrf.mxu0  ;;  %v942_v44 = vadd.f32 %v941_v25, %v7760_v35 }
 0x14f   :  { %v943_v17 = vpop.f32.mrf.mxu1 }
 0x150   :  { %v7764_v39 = vpop.f32.mrf.mxu0 }
 0x172   :  { %v982_v47 = vpop.f32.mrf.mxu0 }
 0x173   :  { %v7768_v63 = vadd.f32 %v982_v47, %v910_v49 }
 0x174   :  { %v984_v50 = vpop.f32.mrf.mxu0 }
 0x175   :  { %v7774_v11 = vadd.f32 %v984_v50, %v912_v58  ;;  %v1047_v3 = vmul.f32 %v7768_v63, %v7768_v63 }
 0x176   :  { %v986_v41 = vpop.f32.mrf.mxu0 }
 0x177   :  { %v7766_v56 = vadd.f32 %v986_v41, %v914_v45  ;;  %v1048_v53 = vmul.f32 %v7774_v11, %v7774_v11  ;;  %v945_v45 = vpop.f32.mrf.mxu1 }
 0x178   :  { %v988_v42 = vpop.f32.mrf.mxu0 }
 0x179   :  { %v7770_v2 = vadd.f32 %v988_v42, %v916_v51  ;;  %v1049_v20 = vmul.f32 %v7766_v56, %v7766_v56  ;;  %v1021_v55 = vadd.f32 %v7766_v56, %v7768_v63  ;;  %v944_v51 = vadd.f32 %v943_v17, %v7762_v37 }
 0x17a   :  { %v992_v43 = vpop.f32.mrf.mxu0 }
 0x17b   :  { %v7772_v5 = vadd.f32 %v992_v43, %v920_v52  ;;  %v1050_v24 = vmul.f32 %v7770_v2, %v7770_v2  ;;  %v1063_v60 = vadd.f32 %v1049_v20, %v1047_v3  ;;  %v1034_v26 = vadd.f32 %v7770_v2, %v7774_v11 }
 0x17c   :  { %v994_v46 = vpop.f32.mrf.mxu0 }
 0x17d   :  { %v7778_v21 = vadd.f32 %v994_v46, %v922_v0  ;;  %v1051_v27 = vmul.f32 %v7772_v5, %v7772_v5  ;;  %v1022_v28 = vadd.f32 %v1021_v55, %v7772_v5  ;;  %v1076_v29 = vadd.f32 %v1050_v24, %v1048_v53 }
 0x17e   :  { %v996_v57 = vpop.f32.mrf.mxu0 }
 0x17f   :  { %v7780_v22 = vadd.f32 %v996_v57, %v924_v1  ;;  %v1052_v4 = vmul.f32 %v7778_v21, %v7778_v21  ;;  %v1064_v62 = vadd.f32 %v1063_v60, %v1051_v27  ;;  %v1035_v30 = vadd.f32 %v1034_v26, %v7778_v21 }
 0x180   :  { %v998_v9 = vpop.f32.mrf.mxu0 }
 0x181   :  { %v7788_v18 = vadd.f32 %v998_v9, %v926_v10  ;;  %v1053_v6 = vmul.f32 %v7780_v22, %v7780_v22  ;;  %v1023_v47 = vadd.f32 %v1022_v28, %v7780_v22  ;;  %v1077_v50 = vadd.f32 %v1076_v29, %v1052_v4 }
 0x182   :  { %v1002_v15 = vpop.f32.mrf.mxu0  ;;  %v946_v10 = vadd.f32 %v945_v45, %v7764_v39 }
 0x183   :  { %v7790_v19 = vadd.f32 %v1002_v15, %v930_v16  ;;  %v1054_v31 = vmul.f32 %v7788_v18, %v7788_v18  ;;  %v1065_v41 = vadd.f32 %v1064_v62, %v1053_v6  ;;  %v1036_v33 = vadd.f32 %v1035_v30, %v7788_v18 }
 0x184   :  { %v1004_v32 = vpop.f32.mrf.mxu0 }
 0x185   :  { %v7800_v7 = vadd.f32 %v1004_v32, %v932_v23  ;;  %v1055_v34 = vmul.f32 %v7790_v19, %v7790_v19  ;;  %v1024_v46 = vadd.f32 %v1023_v47, %v7790_v19  ;;  %v1078_v52 = vadd.f32 %v1077_v50, %v1054_v31 }
 0x186   :  { %v1006_v8 = vpop.f32.mrf.mxu0 }
 0x187   :  { %v7805_v54 = vadd.f32 %v1006_v8, %v934_v48  ;;  %v1056_v14 = vmul.f32 %v7800_v7, %v7800_v7  ;;  %v1066_v57 = vadd.f32 %v1065_v41, %v1055_v34  ;;  %v1037_v0 = vadd.f32 %v1036_v33, %v7800_v7 }
 0x188   :  { %v1008_v36 = vpop.f32.mrf.mxu0 }
 0x189   :  { %v7814_v40 = vadd.f32 %v1008_v36, %v936_v12  ;;  %v1057_v42 = vmul.f32 %v7805_v54, %v7805_v54  ;;  %v1025_v1 = vadd.f32 %v1024_v46, %v7805_v54  ;;  %v1079_v16 = vadd.f32 %v1078_v52, %v1056_v14 }
 0x18a   :  { %v1012_v43 = vpop.f32.mrf.mxu0 }
 0x18b   :  { %v7823_v49 = vadd.f32 %v1012_v43, %v940_v38  ;;  %v1058_v58 = vmul.f32 %v7814_v40, %v7814_v40  ;;  %v1067_v20 = vadd.f32 %v1066_v57, %v1057_v42  ;;  %v1038_v15 = vadd.f32 %v1037_v0, %v7814_v40  ;;  %v6805_v0 = vld [vmem:[#allocation2 + $0x474] ss:$8 sps:$4 sm:$0xff]  }
 0x18c   :  { %v1014_v61 = vpop.f32.mrf.mxu0  ;;  %2026 = vmatprep.subr.bf16.mxu0 %v6805_v0  ;;  %v6866_v0 = vld [vmem:[#allocation2 + $0x3d0] ss:$8 sps:$4 sm:$0xff]  }
 0x18d   :  { %v1059_v35 = vmul.f32 %v7823_v49, %v7823_v49  ;;  %v7832_v9 = vadd.f32 %v1014_v61, %v942_v44  ;;  %v1026_v23 = vadd.f32 %v1025_v1, %v7823_v49  ;;  %v1080_v24 = vadd.f32 %v1079_v16, %v1058_v58  ;;  %v6803_v61 = vld [vmem:[#allocation2 + $0x470] ss:$8 sps:$4 sm:$0xff]   ;;  %v6814_v16 = vld [vmem:[#allocation2 + $0x364] ss:$8 sps:$4 sm:$0xff]  }
 0x18e   :  { %v1016_v37 = vpop.f32.mrf.mxu0  ;;  %v6806_v1 = vld [vmem:[#allocation2 + $0x370] ss:$8 sps:$4 sm:$0xff]   ;;  %2027 = vmatpush1.bf16.msra.mxu0 %v6803_v61 }
 0x18f   :  { %v1060_v25 = vmul.f32 %v7832_v9, %v7832_v9  ;;  %v7839_v3 = vadd.f32 %v1016_v37, %v944_v51  ;;  %v1068_v27 = vadd.f32 %v1067_v20, %v1059_v35  ;;  %v1039_v48 = vadd.f32 %v1038_v15, %v7832_v9  ;;  %v6808_v35 = vld [vmem:[#allocation2 + $0x374] ss:$8 sps:$4 sm:$0xff]   ;;  %v6809_v20 = vld [vmem:[#allocation2 + $0x460] ss:$8 sps:$4 sm:$0xff]   ;;  %v6863_v61 = vld [vmem:[#allocation2 + $0x4d0] ss:$8 sps:$4 sm:$0xff]  }
 0x190   :  { %v1018_v32 = vpop.f32.mrf.mxu0  ;;  %1953 = vmatprep.subr.bf16.mxu1 %v6808_v35  ;;  %v6812_v37 = vld [vmem:[#allocation2 + $0x360] ss:$8 sps:$4 sm:$0xff]   ;;  %v6817_v15 = vld [vmem:[#allocation2 + $0x454] ss:$8 sps:$4 sm:$0xff]  }
 0x191   :  { %v1027_v53 = vadd.f32 %v1026_v23, %v7839_v3  ;;  %v1061_v39 = vmul.f32 %v7839_v3, %v7839_v3  ;;  %v7845_v55 = vadd.f32 %v1018_v32, %v946_v10  ;;  %v1081_v60 = vadd.f32 %v1080_v24, %v1060_v25  ;;  %v6811_v10 = vld [vmem:[#allocation2 + $0x464] ss:$8 sps:$4 sm:$0xff]   ;;  %1954 = vmatpush1.bf16.msra.mxu1 %v6806_v1  ;;  %v6820_v23 = vld [vmem:[#allocation2 + $0x354] ss:$8 sps:$4 sm:$0xff]   ;;  %v6815_v25 = vld [vmem:[#allocation2 + $0x450] ss:$8 sps:$4 sm:$0xff]  }
 0x192   :  { %2028 = vmatprep.subr.bf16.mxu0 %v6811_v10  ;;  %1955 = vmatprep.subr.bf16.mxu1 %v6814_v16  ;;  %v6818_v24 = vld [vmem:[#allocation2 + $0x350] ss:$8 sps:$4 sm:$0xff]   ;;  %v6826_v32 = vld [vmem:[#allocation2 + $0x344] ss:$8 sps:$4 sm:$0xff]   ;;  %v6869_v35 = vld [vmem:[#allocation2 + $0x4c0] ss:$8 sps:$4 sm:$0xff]  }
 0x193   :  { %v1028_v4 = vrot.slane %v1027_v53, 4  ;;  %v1069_v6 = vadd.f32 %v1068_v27, %v1061_v39  ;;  %v1040_v8 = vadd.f32 %v1039_v48, %v7845_v55  ;;  %v1062_v12 = vmul.f32 %v7845_v55, %v7845_v55  ;;  %2029 = vmatpush1.bf16.msra.mxu0 %v6809_v20  ;;  %v6823_v27 = vld [vmem:[#allocation2 + $0x444] ss:$8 sps:$4 sm:$0xff]   ;;  %v6821_v48 = vld [vmem:[#allocation2 + $0x440] ss:$8 sps:$4 sm:$0xff]  }
 0x194   :  { %2030 = vmatprep.subr.bf16.mxu0 %v6817_v15  ;;  %v6829_v39 = vld [vmem:[#allocation2 + $0x434] ss:$8 sps:$4 sm:$0xff]   ;;  %v6871_v1 = vld [vmem:[#allocation2 + $0x4c4] ss:$8 sps:$4 sm:$0xff]  }
 0x195   :  { %v1029_v17 = vadd.f32 %v1028_v4, %v1027_v53  ;;  %v1070_v26 = vrot.slane %v1069_v6, 4  ;;  %v1041_v28 = vrot.slane %v1040_v8, 4  ;;  %v1082_v29 = vadd.f32 %v1081_v60, %v1062_v12  ;;  %1956 = vmatpush1.bf16.msra.mxu1 %v6812_v37  ;;  %v6824_v53 = vld [vmem:[#allocation2 + $0x340] ss:$8 sps:$4 sm:$0xff]   ;;  %v6832_v60 = vld [vmem:[#allocation2 + $0x334] ss:$8 sps:$4 sm:$0xff]  }
 0x196   :  { %1957 = vmatprep.subr.bf16.mxu1 %v6820_v23  ;;  %v6827_v4 = vld [vmem:[#allocation2 + $0x430] ss:$8 sps:$4 sm:$0xff]   ;;  %v6838_v12 = vld [vmem:[#allocation2 + $0x324] ss:$8 sps:$4 sm:$0xff]  }
 0x197   :  { %v1030_v62 = vrot.slane %v1029_v17, 2  ;;  %v1071_v31 = vadd.f32 %v1070_v26, %v1069_v6  ;;  %v1083_v34 = vrot.slane %v1082_v29, 4  ;;  %v1042_v30 = vadd.f32 %v1041_v28, %v1040_v8  ;;  %2031 = vmatpush1.bf16.msra.mxu0 %v6815_v25  ;;  %v6830_v6 = vld [vmem:[#allocation2 + $0x330] ss:$8 sps:$4 sm:$0xff]   ;;  %v6835_v8 = vld [vmem:[#allocation2 + $0x424] ss:$8 sps:$4 sm:$0xff]  }
 0x198   :  { %2032 = vmatprep.subr.bf16.mxu0 %v6823_v27  ;;  %v6836_v26 = vld [vmem:[#allocation2 + $0x320] ss:$8 sps:$4 sm:$0xff]   ;;  %v6841_v28 = vld [vmem:[#allocation2 + $0x414] ss:$8 sps:$4 sm:$0xff]  }
 0x199   :  { %v1031_v36 = vadd.f32 %v1030_v62, %v1029_v17  ;;  %v1072_v38 = vrot.slane %v1071_v31, 2  ;;  %v1084_v47 = vadd.f32 %v1083_v34, %v1082_v29  ;;  %v1043_v14 = vrot.slane %v1042_v30, 2  ;;  %1958 = vmatpush1.bf16.msra.mxu1 %v6818_v24  ;;  %v6833_v17 = vld [vmem:[#allocation2 + $0x420] ss:$8 sps:$4 sm:$0xff]   ;;  %v6844_v29 = vld [vmem:[#allocation2 + $0x314] ss:$8 sps:$4 sm:$0xff]  }
 0x19a   :  { %1959 = vmatprep.subr.bf16.mxu1 %v6826_v32  ;;  %v6839_v62 = vld [vmem:[#allocation2 + $0x410] ss:$8 sps:$4 sm:$0xff]   ;;  %v6847_v34 = vld [vmem:[#allocation2 + $0x404] ss:$8 sps:$4 sm:$0xff]  }
 0x19b   :  { %v1032_v50 = vrot.slane %v1031_v36, 1  ;;  %v1073_v41 = vadd.f32 %v1072_v38, %v1071_v31  ;;  %v1085_v42 = vrot.slane %v1084_v47, 2  ;;  %v1044_v45 = vadd.f32 %v1043_v14, %v1042_v30  ;;  %2033 = vmatpush1.bf16.msra.mxu0 %v6821_v48  ;;  %v6842_v31 = vld [vmem:[#allocation2 + $0x310] ss:$8 sps:$4 sm:$0xff]   ;;  %v6845_v38 = vld [vmem:[#allocation2 + $0x400] ss:$8 sps:$4 sm:$0xff]  }
 0x19c   :  { %2034 = vmatprep.subr.bf16.mxu0 %v6829_v39  ;;  %v6848_v30 = vld [vmem:[#allocation2 + $0x300] ss:$8 sps:$4 sm:$0xff]   ;;  %v6854_v14 = vld [vmem:[#allocation2 + $0x3f0] ss:$8 sps:$4 sm:$0xff]  }
 0x19d   :  { %v7850_v43 = vadd.f32 %v1032_v50, %v1031_v36  ;;  %v1074_v44 = vrot.slane %v1073_v41, 1  ;;  %v1086_v46 = vadd.f32 %v1085_v42, %v1084_v47  ;;  %v1045_v52 = vrot.slane %v1044_v45, 1  ;;  %1960 = vmatpush1.bf16.msra.mxu1 %v6824_v53  ;;  %v6850_v36 = vld [vmem:[#allocation2 + $0x304] ss:$8 sps:$4 sm:$0xff]   ;;  %v6853_v47 = vld [vmem:[#allocation2 + $0x4f4] ss:$8 sps:$4 sm:$0xff]  }
 0x19e   :  { %1961 = vmatprep.subr.bf16.mxu1 %v6832_v60  ;;  %v6856_v50 = vld [vmem:[#allocation2 + $0x3f4] ss:$8 sps:$4 sm:$0xff]   ;;  %v6859_v42 = vld [vmem:[#allocation2 + $0x4e4] ss:$8 sps:$4 sm:$0xff]  }
 0x19f   :  { %1099 = vrot.lane.b32.xlu1 %v7850_v43, %s7483_s1  ;;  %1090 = vrot.lane.b32.xlu0 %v7850_v43, %s7486_s0  ;;  %v7856_v33 = vadd.f32 %v1074_v44, %v1073_v41  ;;  %v1087_v51 = vrot.slane %v1086_v46, 1  ;;  %v7868_v58 = vadd.f32 %v1045_v52, %v1044_v45  ;;  %v6851_v41 = vld [vmem:[#allocation2 + $0x4f0] ss:$8 sps:$4 sm:$0xff]   ;;  %v6862_v44 = vld [vmem:[#allocation2 + $0x3e4] ss:$8 sps:$4 sm:$0xff]  }
 0x1a0   :  { %2035 = vmatpush1.bf16.msra.mxu0 %v6827_v4  ;;  %v6857_v45 = vld [vmem:[#allocation2 + $0x4e0] ss:$8 sps:$4 sm:$0xff]   ;;  %v6868_v52 = vld [vmem:[#allocation2 + $0x3d4] ss:$8 sps:$4 sm:$0xff]  }
 0x1a1   :  { %v7866_v57 = vadd.f32 %v1087_v51, %v1086_v46  ;;  %1962 = vmatpush1.bf16.msra.mxu1 %v6830_v6  ;;  %2036 = vmatprep.subr.bf16.mxu0 %v6835_v8  ;;  %v6860_v46 = vld [vmem:[#allocation2 + $0x3e0] ss:$8 sps:$4 sm:$0xff]   ;;  %v6865_v51 = vld [vmem:[#allocation2 + $0x4d4] ss:$8 sps:$4 sm:$0xff]  }
 0x1a2   :  { %1963 = vmatprep.subr.bf16.mxu1 %v6838_v12 }
 0x1a3   :  { %1103 = vrot.lane.b32.xlu1 %v7856_v33, %s7483_s1  ;;  %1107 = vrot.lane.b32.xlu0 %v7850_v43, %s7487_s17 }
 0x1a4   :  { %2037 = vmatpush1.bf16.msra.mxu0 %v6833_v17 }
 0x1a5   :  { %1964 = vmatpush1.bf16.msra.mxu1 %v6836_v26  ;;  %2038 = vmatprep.subr.bf16.mxu0 %v6841_v28 }
 0x1a6   :  { %1965 = vmatprep.subr.bf16.mxu1 %v6844_v29 }
 0x1a7   :  { %1111 = vrot.lane.b32.xlu1 %v7856_v33, %s7487_s17  ;;  %1095 = vrot.lane.b32.xlu0 %v7856_v33, %s7486_s0 }
 0x1a8   :  { %2039 = vmatpush1.bf16.msra.mxu0 %v6839_v62 }
 0x1a9   :  { %1966 = vmatpush1.bf16.msra.mxu1 %v6842_v31  ;;  %2040 = vmatprep.subr.bf16.mxu0 %v6847_v34 }
 0x1aa   :  { %1967 = vmatprep.subr.bf16.mxu1 %v6850_v36 }
 0x1ab   :  { %1123 = vrot.lane.b32.xlu1 %v7866_v57, %s7486_s0  ;;  %1118 = vrot.lane.b32.xlu0 %v7868_v58, %s7486_s0 }
 0x1ac   :  { %2041 = vmatpush1.bf16.msra.mxu0 %v6845_v38 }
 0x1ad   :  { %1968 = vmatpush1.bf16.msra.mxu1 %v6848_v30  ;;  %2042 = vmatprep.subr.bf16.mxu0 %v6853_v47 }
 0x1ae   :  { %1969 = vmatprep.subr.bf16.mxu1 %v6856_v50 }
 0x1af   :  { %1131 = vrot.lane.b32.xlu1 %v7866_v57, %s7483_s1  ;;  %1127 = vrot.lane.b32.xlu0 %v7868_v58, %s7483_s1 }
 0x1b0   :  { %2043 = vmatpush2.bf16.msra.mxu0 %v6851_v41  ;;  %v6872_v41 = vld [vmem:[#allocation2 + $0x3c0] ss:$8 sps:$4 sm:$0xff]  }
 0x1b1   :  { %1970 = vmatpush2.bf16.msra.mxu1 %v6854_v14  ;;  %2044 = vmatprep.subr.bf16.mxu0 %v6859_v42  ;;  %v6877_v14 = vld [vmem:[#allocation2 + $0x4b4] ss:$8 sps:$4 sm:$0xff]  }
 0x1b2   :  { %1971 = vmatprep.subr.bf16.mxu1 %v6862_v44  ;;  %v6880_v42 = vld [vmem:[#allocation2 + $0x3b4] ss:$8 sps:$4 sm:$0xff]   ;;  %v6878_v44 = vld [vmem:[#allocation2 + $0x3b0] ss:$8 sps:$4 sm:$0xff]  }
 0x1b3   :  { %1139 = vrot.lane.b32.xlu1 %v7866_v57, %s7487_s17  ;;  %1135 = vrot.lane.b32.xlu0 %v7868_v58, %s7487_s17 }
 0x1b4   :  { %2045 = vmatpush2.bf16.msra.mxu0 %v6857_v45  ;;  %v6881_v45 = vld [vmem:[#allocation2 + $0x4a0] ss:$8 sps:$4 sm:$0xff]  }
 0x1b5   :  { %1972 = vmatpush2.bf16.msra.mxu1 %v6860_v46  ;;  %2046 = vmatprep.subr.bf16.mxu0 %v6865_v51  ;;  %v6883_v46 = vld [vmem:[#allocation2 + $0x4a4] ss:$8 sps:$4 sm:$0xff]  }
 0x1b6   :  { %1973 = vmatprep.subr.bf16.mxu1 %v6868_v52  ;;  %v6886_v51 = vld [vmem:[#allocation2 + $0x3a4] ss:$8 sps:$4 sm:$0xff]   ;;  %v1148_v52 = vld [vmem:[#allocation4] sm:$0x1] }
 0x1b8   :  { %2047 = vmatpush2.bf16.msra.mxu0 %v6863_v61  ;;  %v6884_v61 = vld [vmem:[#allocation2 + $0x3a0] ss:$8 sps:$4 sm:$0xff]  }
 0x1b9   :  { %1974 = vmatpush2.bf16.msra.mxu1 %v6866_v0  ;;  %2048 = vmatprep.subr.bf16.mxu0 %v6871_v1  ;;  %v6889_v0 = vld [vmem:[#allocation2 + $0x494] ss:$8 sps:$4 sm:$0xff]  }
 0x1bc   :  { %2049 = vmatpush2.bf16.msra.mxu0 %v6869_v35  ;;  %v6887_v35 = vld [vmem:[#allocation2 + $0x490] ss:$8 sps:$4 sm:$0xff]  }
 0x1bd   :  { %2050 = vmatprep.subr.bf16.mxu0 %v6877_v14 }
 0x211   :  { %v1100_v10 = vpop.permute.xlu1 %1099  ;;  %v1091_v16 = vpop.permute.xlu0 %1090 }
 0x212   :  { %v1093_v20 = vadd.f32 %v1091_v16, %v7850_v43  ;;  %v6892_v16 = vld [vmem:[#allocation2 + $0x394] ss:$8 sps:$4 sm:$0xff]  }
 0x214   :  { %v1102_v23 = vadd.f32 %v1100_v10, %v1093_v20  ;;  %v6890_v10 = vld [vmem:[#allocation2 + $0x390] ss:$8 sps:$4 sm:$0xff]  }
 0x215   :  { %v1104_v37 = vpop.permute.xlu1 %1103  ;;  %v1108_v15 = vpop.permute.xlu0 %1107 }
 0x216   :  { %v1110_v32 = vadd.f32 %v1108_v15, %v1102_v23  ;;  %v1152_v15 = vld [vmem:[#allocation6] sm:$0x1] }
 0x217   :  { %v6893_v23 = vld [vmem:[#allocation2 + $0x480] ss:$8 sps:$4 sm:$0xff]  }
 0x218   :  { %v1115_v6 = vadd.f32 %v1110_v32, %v7868_v58  ;;  %v6875_v58 = vld [vmem:[#allocation2 + $0x4b0] ss:$8 sps:$4 sm:$0xff]  }
 0x219   :  { %v1112_v25 = vpop.permute.xlu1 %1111  ;;  %v1096_v24 = vpop.permute.xlu0 %1095  ;;  %2051 = vmatpush2.bf16.msra.mxu0 %v6875_v58 }
 0x21a   :  { %v1098_v27 = vadd.f32 %v1096_v24, %v7856_v33  ;;  %2052 = vmatprep.subr.bf16.mxu0 %v6883_v46 }
 0x21c   :  { %v1106_v48 = vadd.f32 %v1104_v37, %v1098_v27  ;;  %v6895_v37 = vld [vmem:[#allocation2 + $0x484] ss:$8 sps:$4 sm:$0xff]   ;;  %v6896_v27 = vld [vmem:[#allocation2 + $0x380] ss:$8 sps:$4 sm:$0xff]  }
 0x21d   :  { %v1124_v53 = vpop.permute.xlu1 %1123  ;;  %v1119_v39 = vpop.permute.xlu0 %1118  ;;  %2053 = vmatpush2.bf16.msra.mxu0 %v6881_v45 }
 0x21e   :  { %v1114_v60 = vadd.f32 %v1112_v25, %v1106_v48  ;;  %v1121_v43 = vadd.f32 %v1119_v39, %v1115_v6  ;;  %2054 = vmatprep.subr.bf16.mxu0 %v6889_v0  ;;  %v6898_v25 = vld [vmem:[#allocation2 + $0x384] ss:$8 sps:$4 sm:$0xff]   ;;  %v6901_v48 = vld [vmem:[#allocation2 + $0x574] ss:$8 sps:$4 sm:$0xff]  }
 0x220   :  { %v1116_v4 = vadd.f32 %v1114_v60, %v7866_v57  ;;  %v6874_v57 = vld [vmem:[#allocation2 + $0x3c4] ss:$8 sps:$4 sm:$0xff]  }
 0x221   :  { %v1132_v8 = vpop.permute.xlu1 %1131  ;;  %v1128_v12 = vpop.permute.xlu0 %1127  ;;  %1975 = vmatprep.subr.bf16.mxu1 %v6874_v57  ;;  %2055 = vmatpush2.bf16.msra.mxu0 %v6887_v35 }
 0x222   :  { %v1126_v17 = vadd.f32 %v1124_v53, %v1116_v4  ;;  %v1130_v28 = vadd.f32 %v1128_v12, %v1121_v43  ;;  %1976 = vmatpush2.bf16.msra.mxu1 %v6872_v41  ;;  %2056 = vmatprep.subr.bf16.mxu0 %v6895_v37  ;;  %v1184_v53 = vlaneseq }
 0x223   :  { %1977 = vmatprep.subr.bf16.mxu1 %v6880_v42 }
 0x224   :  { %v1134_v26 = vadd.f32 %v1132_v8, %v1126_v17  ;;  %v1185_v39 = vshrl.u32 %v1184_v53, 7 }
 0x225   :  { %v1140_v29 = vpop.permute.xlu1 %1139  ;;  %v1136_v62 = vpop.permute.xlu0 %1135  ;;  %2057 = vmatpush2.bf16.msra.mxu0 %v6893_v23 }
 0x226   :  { %v1142_v31 = vadd.f32 %v1140_v29, %v1134_v26  ;;  %v1138_v34 = vadd.f32 %v1136_v62, %v1130_v28  ;;  %1978 = vmatpush2.bf16.msra.mxu1 %v6878_v44  ;;  %v7893_v8 = vsub.s32 0, %v1185_v39 }
 0x227   :  { %1979 = vmatprep.subr.bf16.mxu1 %v6886_v51 }
 0x228   :  { %v1143_v33 = vmul.f32 0.001953125, %v1138_v34  ;;  %v1144_v36 = vmul.f32 0.001953125, %v1142_v31 }
 0x22a   :  { %v1145_v38 = vmul.f32 %v1143_v33, %v1143_v33  ;;  %1980 = vmatpush2.bf16.msra.mxu1 %v6884_v61 }
 0x22b   :  { %1981 = vmatprep.subr.bf16.mxu1 %v6892_v16 }
 0x22c   :  { %v1146_v30 = vsub.f32 %v1144_v36, %v1145_v38 }
 0x22e   :  { %v1147_v47 = vmax.f32 %v1146_v30, 0.0  ;;  %1982 = vmatpush2.bf16.msra.mxu1 %v6890_v10 }
 0x22f   :  { %1983 = vmatprep.subr.bf16.mxu1 %v6898_v25 }
 0x230   :  { %v1149_v50 = vadd.f32 1e-05, %v1147_v47 }
 0x232   :  { %7381 = vrsqrt.f32 %v1149_v50  ;;  %1984 = vmatpush2.bf16.msra.mxu1 %v6896_v27 }
 0x233   :  { %2099 = vmatprep.subr.bf16.mxu1 %v6901_v48  ;;  %v6899_v48 = vld [vmem:[#allocation2 + $0x570] ss:$8 sps:$4 sm:$0xff]  }
 0x23f   :  { %v7382_v1 = vpop.eup %7381 }
 0x240   :  { %v1151_v20 = vmul.f32 %v7382_v1, %v1148_v52 }
 0x242   :  { %v1153_v24 = vmul.f32 %v1151_v20, %v1143_v33  ;;  %1159 = vrot.lane.b32.xlu1 %v1151_v20, %s7483_s1  ;;  %1156 = vrot.lane.b32.xlu0 %v1151_v20, %s7487_s17 }
 0x244   :  { %v1154_v32 = vsub.f32 %v1152_v15, %v1153_v24 }
 0x246   :  { %1162 = vrot.lane.b32.xlu0 %v1151_v20, %s7486_s0  ;;  %1172 = vrot.lane.b32.xlu1 %v1154_v32, %s7487_s17 }
 0x24a   :  { %1175 = vrot.lane.b32.xlu0 %v1154_v32, %s7483_s1  ;;  %1178 = vrot.lane.b32.xlu1 %v1154_v32, %s7486_s0 }
 0x2b4   :  { %v1160_v60 = vpop.permute.xlu1 %1159  ;;  %v1157_v4 = vpop.permute.xlu0 %1156 }
 0x2b5   :  { %v1166_v6 = vsel %vm1165_vm6, %v1151_v20, %v1157_v4 }
 0x2b6   :  { %v1168_v12 = vsel %vm1167_vm7, %v1166_v6, %v1160_v60 }
 0x2b8   :  { %v1163_v17 = vpop.permute.xlu0 %1162  ;;  %v1173_v43 = vpop.permute.xlu1 %1172 }
 0x2b9   :  { %v1170_v26 = vsel %vm1169_vm8, %v1168_v12, %v1163_v17  ;;  %v1181_v29 = vsel %vm1165_vm6, %v1154_v32, %v1173_v43  ;;  %v6904_v12 = vld [vmem:[#allocation2 + $0x564] ss:$8 sps:$4 sm:$0xff]  }
 0x2ba   :  { %v7898_v28 = vrot.slane %v1170_v26, %v7893_v8 }
 0x2bc   :  { %v1176_v62 = vpop.permute.xlu0 %1175  ;;  %v1179_v31 = vpop.permute.xlu1 %1178  ;;  %v1189_v33 = vmul.f32 %v7898_v28, %v7774_v11  ;;  %v1191_v36 = vmul.f32 %v7898_v28, %v7770_v2  ;;  %v1188_v30 = vmul.f32 %v7898_v28, %v7768_v63  ;;  %v1190_v47 = vmul.f32 %v7898_v28, %v7766_v56 }
 0x2bd   :  { %v1182_v34 = vsel %vm1167_vm7, %v1181_v29, %v1176_v62  ;;  %v1193_v50 = vmul.f32 %v7898_v28, %v7778_v21  ;;  %v1195_v11 = vmul.f32 %v7898_v28, %v7788_v18  ;;  %v1192_v2 = vmul.f32 %v7898_v28, %v7772_v5 }
 0x2be   :  { %v1183_v38 = vsel %vm1169_vm8, %v1182_v34, %v1179_v31  ;;  %v1194_v41 = vmul.f32 %v7898_v28, %v7780_v22  ;;  %v1197_v63 = vmul.f32 %v7898_v28, %v7800_v7  ;;  %v1199_v56 = vmul.f32 %v7898_v28, %v7814_v40 }
 0x2bf   :  { %v7914_v57 = vrot.slane %v1183_v38, %v7893_v8  ;;  %v1196_v21 = vmul.f32 %v7898_v28, %v7790_v19  ;;  %v1198_v58 = vmul.f32 %v7898_v28, %v7805_v54  ;;  %v1201_v0 = vmul.f32 %v7898_v28, %v7832_v9 }
 0x2c1   :  { %v1209_v18 = vadd.f32 %v7914_v57, %v1189_v33  ;;  %v1211_v14 = vadd.f32 %v7914_v57, %v1191_v36  ;;  %v1208_v5 = vadd.f32 %v7914_v57, %v1188_v30  ;;  %v1210_v22 = vadd.f32 %v7914_v57, %v1190_v47  ;;  %v6902_v30 = vld [vmem:[#allocation2 + $0x560] ss:$8 sps:$4 sm:$0xff]  }
 0x2c2   :  { %v1213_v42 = vadd.f32 %v7914_v57, %v1193_v50  ;;  %v1215_v7 = vadd.f32 %v7914_v57, %v1195_v11  ;;  %v1212_v40 = vadd.f32 %v7914_v57, %v1192_v2  ;;  %v1214_v44 = vadd.f32 %v7914_v57, %v1194_v41  ;;  %v6907_v50 = vld [vmem:[#allocation2 + $0x554] ss:$8 sps:$4 sm:$0xff]  }
 0x2c3   :  { %v7938_v19 = vmax.f32 %v1209_v18, 0.0  ;;  %v7940_v45 = vmax.f32 %v1211_v14, 0.0  ;;  %v7942_v54 = vmax.f32 %v1208_v5, 0.0  ;;  %v7944_v46 = vmax.f32 %v1210_v22, 0.0  ;;  %v6905_v5 = vld [vmem:[#allocation2 + $0x550] ss:$8 sps:$4 sm:$0xff]  }
 0x2c4   :  { %v7946_v51 = vmax.f32 %v1213_v42, 0.0  ;;  %v7948_v52 = vmax.f32 %v1215_v7, 0.0  ;;  %v7950_v61 = vmax.f32 %v1212_v40, 0.0  ;;  %v7963_v23 = vmax.f32 %v1214_v44, 0.0  ;;  %v6910_v40 = vld [vmem:[#allocation2 + $0x544] ss:$8 sps:$4 sm:$0xff]  }
 0x2c5   :  { %v1355_v1 = vpack.c.bf16 %v7940_v45, %v7938_v19  ;;  %v1354_v35 = vpack.c.bf16 %v7944_v46, %v7942_v54  ;;  %v1257_v10 = vrot.slane %v7938_v19, 7  ;;  %v1260_v16 = vrot.slane %v7940_v45, 7 }
 0x2c6   :  { %v1256_v20 = vrot.slane %v7942_v54, 7  ;;  %v1258_v37 = vrot.slane %v7944_v46, 7  ;;  %v1264_v15 = vrot.slane %v7946_v51, 7  ;;  %v1361_v9 = vpack.c.bf16 %v7948_v52, %v7946_v51 }
 0x2c7   :  { %2058 = vmatprep.mubr.bf16.mxu0 %v1355_v1  ;;  %v1261_v25 = vsel %vm104_vm0, %v1257_v10, %v1260_v16  ;;  %v1268_v24 = vrot.slane %v7948_v52, 7  ;;  %v1217_v27 = vadd.f32 %v7914_v57, %v1197_v63  ;;  %v1219_v60 = vadd.f32 %v7914_v57, %v1199_v56 }
 0x2c8   :  { %2059 = vmatmul.mubr.bf16.vlgmr.msra.gmra.mxu0 %v1354_v35  ;;  %v6243_v32 = vpack.c.bf16 %v1261_v25, %v1257_v10  ;;  %v1259_v53 = vsel %vm104_vm0, %v1256_v20, %v1258_v37  ;;  %v1265_v39 = vsel %vm104_vm0, %v1260_v16, %v1264_v15  ;;  %v1262_v43 = vrot.slane %v7950_v61, 7 }
 0x2c9   :  { %2068 = vmatprep.mubr.bf16.mxu0 %v1361_v9  ;;  %v6247_v4 = vpack.c.bf16 %v1259_v53, %v1256_v20  ;;  %v1269_v6 = vsel %vm104_vm0, %v1264_v15, %v1268_v24  ;;  %v7974_v17 = vmax.f32 %v1217_v27, 0.0  ;;  %v7979_v29 = vmax.f32 %v1219_v60, 0.0  ;;  %v6911_v27 = vld [vmem:[#allocation2 + $0x530] ss:$8 sps:$4 sm:$0xff]  }
 0x2ca   :  { %6244 = vmatprep.mubr.msk.bf16.mxu1 %vm7562_vm3, %v6243_v32  ;;  %v1359_v26 = vpack.c.bf16 %v1269_v6, %v1265_v39  ;;  %v1266_v62 = vrot.slane %v7963_v23, 7  ;;  %v1216_v31 = vadd.f32 %v7914_v57, %v1196_v21  ;;  %v1218_v33 = vadd.f32 %v7914_v57, %v1198_v58 }
 0x2cb   :  { %6248 = vmatmul.mubr.msk.bf16.vlgmr.msra.gmra.mxu1 %vm7562_vm3, %v6247_v4  ;;  %v1271_v34 = vrot.slane %v7974_v17, 7  ;;  %v1203_v36 = vmul.f32 %v7898_v28, %v7845_v55  ;;  %v1221_v38 = vadd.f32 %v7914_v57, %v1201_v0  ;;  %v1274_v47 = vrot.slane %v7979_v29, 7 }
 0x2cc   :  { %2100 = vmatpush1.bf16.msra.mxu1 %v6899_v48  ;;  %1995 = vmatprep.mubr.bf16.mxu1 %v1359_v26  ;;  %v7991_v11 = vmax.f32 %v1216_v31, 0.0  ;;  %v1360_v41 = vpack.c.bf16 %v7963_v23, %v7950_v61  ;;  %v1263_v63 = vsel %vm104_vm0, %v1258_v37, %v1262_v43  ;;  %v1267_v55 = vsel %vm104_vm0, %v1262_v43, %v1266_v62  ;;  %v6916_v48 = vld [vmem:[#allocation2 + $0x524] ss:$8 sps:$4 sm:$0xff]   ;;  %v6914_v43 = vld [vmem:[#allocation2 + $0x520] ss:$8 sps:$4 sm:$0xff]  }
 0x2cd   :  { %2101 = vmatprep.subr.bf16.mxu1 %v6904_v12  ;;  %v1223_v2 = vadd.f32 %v7914_v57, %v1203_v36  ;;  %v7998_v56 = vmax.f32 %v1218_v33, 0.0  ;;  %v1367_v21 = vpack.c.bf16 %v7979_v29, %v7974_v17  ;;  %v1275_v58 = vsel %vm104_vm0, %v1271_v34, %v1274_v47  ;;  %v6919_v26 = vld [vmem:[#allocation2 + $0x514] ss:$8 sps:$4 sm:$0xff]  }
 0x2ce   :  { %v8003_v18 = vmax.f32 %v1221_v38, 0.0  ;;  %v1200_v22 = vmul.f32 %v7898_v28, %v7823_v49  ;;  %v1202_v42 = vmul.f32 %v7898_v28, %v7839_v3  ;;  %v1358_v7 = vpack.c.bf16 %v1267_v55, %v1263_v63  ;;  %v6908_v3 = vld [vmem:[#allocation2 + $0x540] ss:$8 sps:$4 sm:$0xff]   ;;  %v6913_v28 = vld [vmem:[#allocation2 + $0x534] ss:$8 sps:$4 sm:$0xff]  }
 0x2cf   :  { %v8005_v14 = vmax.f32 %v1223_v2, 0.0  ;;  %v1270_v44 = vrot.slane %v7991_v11, 7  ;;  %v6251_v0 = vpack.c.bf16 %v1275_v58, %v1271_v34  ;;  %v1272_v1 = vrot.slane %v7998_v56, 7  ;;  %v6917_v38 = vld [vmem:[#allocation2 + $0x510] ss:$8 sps:$4 sm:$0xff]  }
 0x2d0   :  { %2102 = vmatpush1.bf16.msra.mxu1 %v6902_v30  ;;  %2069 = vmatmul.mubr.bf16.gmra.mxu0 %v1360_v41  ;;  %v1220_v35 = vadd.f32 %v7914_v57, %v1200_v22  ;;  %v1222_v10 = vadd.f32 %v7914_v57, %v1202_v42  ;;  %v1278_v16 = vrot.slane %v8003_v18, 7  ;;  %v1366_v20 = vpack.c.bf16 %v7998_v56, %v7991_v11  ;;  %v6920_v2 = vld [vmem:[#allocation2 + $0x500] ss:$8 sps:$4 sm:$0xff]   ;;  %v6925_v41 = vld [vmem:[#allocation2 + $0x5f4] ss:$8 sps:$4 sm:$0xff]  }
 0x2d1   :  { %9312 = vst [vmem:[#allocation12_spill] sm:$0xff] %v8005_v14  ;;  %2078 = vmatprep.mubr.bf16.mxu0 %v1367_v21  ;;  %2103 = vmatprep.subr.bf16.mxu1 %v6907_v50  ;;  %v1282_v49 = vrot.slane %v8005_v14, 7  ;;  %v1273_v37 = vsel %vm104_vm0, %v1270_v44, %v1272_v1  ;;  %v1373_v9 = vpack.c.bf16 %v8005_v14, %v8003_v18  ;;  %v1307_v4 = vrot.slane %v7938_v19, 1  ;;  %v6923_v63 = vld [vmem:[#allocation2 + $0x5f0] ss:$8 sps:$4 sm:$0xff]  }
 0x2d2   :  { %v8022_v15 = vmax.f32 %v1220_v35, 0.0  ;;  %v8024_v57 = vmax.f32 %v1222_v10, 0.0  ;;  %v1279_v25 = vsel %vm104_vm0, %v1274_v47, %v1278_v16  ;;  %v6255_v32 = vpack.c.bf16 %v1273_v37, %v1270_v44  ;;  %v6922_v47 = vld [vmem:[#allocation2 + $0x504] ss:$8 sps:$4 sm:$0xff]   ;;  %v6926_v21 = vld [vmem:[#allocation2 + $0x5e0] ss:$8 sps:$4 sm:$0xff]  }
 0x2d3   :  { %1996 = vmatmul.mubr.bf16.gmra.mxu1 %v1358_v7  ;;  %v1283_v24 = vsel %vm104_vm0, %v1278_v16, %v1282_v49  ;;  %v1308_v6 = vrot.slane %v7940_v45, 1  ;;  %v1312_v12 = vrot.slane %v7946_v51, 1  ;;  %v6928_v55 = vld [vmem:[#allocation2 + $0x5e4] ss:$8 sps:$4 sm:$0xff]   ;;  %v6931_v58 = vld [vmem:[#allocation2 + $0x5d4] ss:$8 sps:$4 sm:$0xff]  }
 0x2d4   :  { %2104 = vmatpush1.bf16.msra.mxu1 %v6905_v5  ;;  %6252 = vmatprep.mubr.msk.bf16.mxu1 %vm7562_vm3, %v6251_v0  ;;  %9313 = vst [vmem:[#allocation13_spill] sm:$0xff] %v8022_v15  ;;  %9314 = vst [vmem:[#allocation14_spill] sm:$0xff] %v8024_v57  ;;  %v1371_v53 = vpack.c.bf16 %v1283_v24, %v1279_v25  ;;  %v1276_v39 = vrot.slane %v8022_v15, 7  ;;  %v1280_v60 = vrot.slane %v8024_v57, 7  ;;  %v6929_v5 = vld [vmem:[#allocation2 + $0x5d0] ss:$8 sps:$4 sm:$0xff]  }
 0x2d5   :  { %2105 = vmatprep.subr.bf16.mxu1 %v6910_v40  ;;  %v1372_v62 = vpack.c.bf16 %v8024_v57, %v8022_v15  ;;  %v1309_v33 = vsel %vm153_vm4, %v1307_v4, %v1308_v6  ;;  %v1313_v36 = vsel %vm153_vm4, %v1308_v6, %v1312_v12  ;;  %v6934_v22 = vld [vmem:[#allocation2 + $0x5c4] ss:$8 sps:$4 sm:$0xff]   ;;  %v6932_v42 = vld [vmem:[#allocation2 + $0x5c0] ss:$8 sps:$4 sm:$0xff]   ;;  %v6937_v7 = vld [vmem:[#allocation2 + $0x5b4] ss:$8 sps:$4 sm:$0xff]  }
 0x2d6   :  { %v1277_v31 = vsel %vm104_vm0, %v1272_v1, %v1276_v39  ;;  %v1281_v34 = vsel %vm104_vm0, %v1276_v39, %v1280_v60  ;;  %v1357_v50 = vpack.c.bf16 %v1313_v36, %v1309_v33  ;;  %v6935_v40 = vld [vmem:[#allocation2 + $0x5b0] ss:$8 sps:$4 sm:$0xff]   ;;  %v6940_v44 = vld [vmem:[#allocation2 + $0x5a4] ss:$8 sps:$4 sm:$0xff]   ;;  %v6938_v0 = vld [vmem:[#allocation2 + $0x5a0] ss:$8 sps:$4 sm:$0xff]  }
 0x2d7   :  { %v1370_v30 = vpack.c.bf16 %v1281_v34, %v1277_v31  ;;  %v6943_v1 = vld [vmem:[#allocation2 + $0x594] ss:$8 sps:$4 sm:$0xff]   ;;  %v6941_v35 = vld [vmem:[#allocation2 + $0x590] ss:$8 sps:$4 sm:$0xff]   ;;  %v6946_v10 = vld [vmem:[#allocation2 + $0x584] ss:$8 sps:$4 sm:$0xff]  }
 0x2d8   :  { %2106 = vmatpush1.bf16.msra.mxu1 %v6908_v3  ;;  %2079 = vmatmul.mubr.bf16.gmra.mxu0 %v1366_v20  ;;  %v1304_v16 = vrot.slane %v7942_v54, 1  ;;  %v1305_v49 = vrot.slane %v7944_v46, 1  ;;  %v1310_v3 = vrot.slane %v7950_v61, 1  ;;  %v6944_v20 = vld [vmem:[#allocation2 + $0x580] ss:$8 sps:$4 sm:$0xff]   ;;  %v1326_v39 = vrot.slane %v8003_v18, 1 }
 0x2d9   :  { %2088 = vmatprep.mubr.bf16.mxu0 %v1373_v9  ;;  %2107 = vmatprep.subr.bf16.mxu1 %v6913_v28  ;;  %v1316_v28 = vrot.slane %v7948_v52, 1  ;;  %v1324_v31 = vrot.slane %v8022_v15, 1  ;;  %v1330_v34 = vrot.slane %v8005_v14, 1 }
 0x2da   :  { %v1306_v37 = vsel %vm153_vm4, %v1304_v16, %v1305_v49  ;;  %v1311_v9 = vsel %vm153_vm4, %v1305_v49, %v1310_v3 }
 0x2db   :  { %6256 = vmatmul.mubr.msk.bf16.gmra.mxu1 %vm7562_vm3, %v6255_v32  ;;  %v1317_v25 = vsel %vm153_vm4, %v1312_v12, %v1316_v28  ;;  %v1356_v24 = vpack.c.bf16 %v1311_v9, %v1306_v37  ;;  %v1314_v32 = vrot.slane %v7963_v23, 1 }
 0x2dc   :  { %2108 = vmatpush1.bf16.msra.mxu1 %v6911_v27  ;;  %2015 = vmatprep.mubr.bf16.mxu1 %v1371_v53  ;;  %v6258_v27 = vpack.c.bf16 %v1316_v28, %v1317_v25  ;;  %v1322_v53 = vrot.slane %v7979_v29, 1 }
 0x2dd   :  { %2109 = vmatprep.subr.bf16.mxu1 %v6916_v48  ;;  %v1321_v48 = vrot.slane %v7974_v17, 1  ;;  %v1315_v60 = vsel %vm153_vm4, %v1310_v3, %v1314_v32 }
 0x2de   :  { %v1327_v6 = vsel %vm153_vm4, %v1322_v53, %v1326_v39  ;;  %v6261_v12 = vpack.c.bf16 %v1314_v32, %v1315_v60 }
 0x2df   :  { %v1323_v4 = vsel %vm153_vm4, %v1321_v48, %v1322_v53 }
 0x2e0   :  { %2110 = vmatpush1.bf16.msra.mxu1 %v6914_v43  ;;  %2089 = vmatmul.mubr.bf16.gmra.mxu0 %v1372_v62  ;;  %v1369_v43 = vpack.c.bf16 %v1327_v6, %v1323_v4  ;;  %v1319_v62 = vrot.slane %v7998_v56, 1 }
 0x2e1   :  { %2111 = vmatprep.subr.bf16.mxu1 %v6919_v26  ;;  %v1318_v26 = vrot.slane %v7991_v11, 1 }
 0x2e2   :  { %v1325_v36 = vsel %vm153_vm4, %v1319_v62, %v1324_v31 }
 0x2e3   :  { %2016 = vmatmul.mubr.bf16.gmra.mxu1 %v1370_v30  ;;  %v1320_v33 = vsel %vm153_vm4, %v1318_v26, %v1319_v62 }
 0x2e4   :  { %2112 = vmatpush1.bf16.msra.mxu1 %v6917_v38  ;;  %2131 = vmatprep.mubr.bf16.mxu1 %v1357_v50  ;;  %v1331_v38 = vsel %vm153_vm4, %v1326_v39, %v1330_v34  ;;  %v1368_v30 = vpack.c.bf16 %v1325_v36, %v1320_v33  ;;  %v1328_v50 = vrot.slane %v8024_v57, 1 }
 0x2e5   :  { %2113 = vmatprep.subr.bf16.mxu1 %v6922_v47  ;;  %v6264_v47 = vpack.c.bf16 %v1330_v34, %v1331_v38 }
 0x2e8   :  { %2114 = vmatpush1.bf16.msra.mxu1 %v6920_v2  ;;  %v1329_v2 = vsel %vm153_vm4, %v1324_v31, %v1328_v50 }
 0x2e9   :  { %2115 = vmatprep.subr.bf16.mxu1 %v6925_v41  ;;  %v6267_v41 = vpack.c.bf16 %v1328_v50, %v1329_v2 }
 0x2ec   :  { %2116 = vmatpush2.bf16.msra.mxu1 %v6923_v63 }
 0x2ed   :  { %2117 = vmatprep.subr.bf16.mxu1 %v6928_v55 }
 0x2f0   :  { %2118 = vmatpush2.bf16.msra.mxu1 %v6926_v21 }
 0x2f1   :  { %2119 = vmatprep.subr.bf16.mxu1 %v6931_v58 }
 0x2f4   :  { %2120 = vmatpush2.bf16.msra.mxu1 %v6929_v5 }
 0x2f5   :  { %2121 = vmatprep.subr.bf16.mxu1 %v6934_v22 }
 0x2f8   :  { %2122 = vmatpush2.bf16.msra.mxu1 %v6932_v42 }
 0x2f9   :  { %2123 = vmatprep.subr.bf16.mxu1 %v6937_v7 }
 0x2fc   :  { %2124 = vmatpush2.bf16.msra.mxu1 %v6935_v40 }
 0x2fd   :  { %2125 = vmatprep.subr.bf16.mxu1 %v6940_v44 }
 0x300   :  { %2126 = vmatpush2.bf16.msra.mxu1 %v6938_v0 }
 0x301   :  { %2127 = vmatprep.subr.bf16.mxu1 %v6943_v1 }
 0x304   :  { %2128 = vmatpush2.bf16.msra.mxu1 %v6941_v35 }
 0x305   :  { %2129 = vmatprep.subr.bf16.mxu1 %v6946_v10 }
 0x308   :  { %2130 = vmatpush2.bf16.msra.mxu1 %v6944_v20 }
 0x30b   :  { %2132 = vmatmul.mubr.bf16.vlgmr.msra.gmra.mxu1 %v1356_v24 }
 0x30c   :  { %6259 = vmatprep.mubr.msk.bf16.mxu1 %vm7724_vm5, %v6258_v27 }
 0x313   :  { %6262 = vmatmul.mubr.msk.bf16.gmra.mxu1 %vm7724_vm5, %v6261_v12 }
 0x314   :  { %2151 = vmatprep.mubr.bf16.mxu1 %v1369_v43 }
 0x31b   :  { %2152 = vmatmul.mubr.bf16.gmra.mxu1 %v1368_v30 }
 0x31c   :  { %6265 = vmatprep.mubr.msk.bf16.mxu1 %vm7724_vm5, %v6264_v47 }
 0x323   :  { %6268 = vmatmul.mubr.msk.bf16.gmra.mxu1 %vm7724_vm5, %v6267_v41 }
 0x388   :  { %v2060_v40 = vpop.f32.mrf.mxu0 }
 0x38a   :  { %v2062_v0 = vpop.f32.mrf.mxu0 }
 0x38b   :  { %v1987_v63 = vpop.f32.mrf.mxu1 }
 0x38c   :  { %v2064_v35 = vpop.f32.mrf.mxu0  ;;  %v2061_v62 = vadd.f32 %v2060_v40, %v1987_v63 }
 0x38d   :  { %v1989_v55 = vpop.f32.mrf.mxu1 }
 0x38e   :  { %v2066_v16 = vpop.f32.mrf.mxu0  ;;  %v2063_v30 = vadd.f32 %v2062_v0, %v1989_v55 }
 0x38f   :  { %v1991_v21 = vpop.f32.mrf.mxu1 }
 0x390   :  { %v2070_v3 = vpop.f32.mrf.mxu0  ;;  %v2065_v43 = vadd.f32 %v2064_v35, %v1991_v21 }
 0x391   :  { %v1993_v58 = vpop.f32.mrf.mxu1 }
 0x392   :  { %v2072_v20 = vpop.f32.mrf.mxu0  ;;  %v2067_v34 = vadd.f32 %v2066_v16, %v1993_v58 }
 0x393   :  { %v1997_v5 = vpop.f32.mrf.mxu1 }
 0x394   :  { %v2074_v9 = vpop.f32.mrf.mxu0  ;;  %v2071_v33 = vadd.f32 %v2070_v3, %v1997_v5 }
 0x395   :  { %v1999_v22 = vpop.f32.mrf.mxu1 }
 0x396   :  { %v2076_v24 = vpop.f32.mrf.mxu0  ;;  %v2073_v50 = vadd.f32 %v2072_v20, %v1999_v22 }
 0x397   :  { %v2001_v42 = vpop.f32.mrf.mxu1 }
 0x398   :  { %v2080_v32 = vpop.f32.mrf.mxu0  ;;  %v2075_v2 = vadd.f32 %v2074_v9, %v2001_v42 }
 0x399   :  { %v2003_v7 = vpop.f32.mrf.mxu1 }
 0x39a   :  { %v2082_v39 = vpop.f32.mrf.mxu0  ;;  %v2077_v14 = vadd.f32 %v2076_v24, %v2003_v7 }
 0x39b   :  { %v2007_v44 = vpop.f32.mrf.mxu1 }
 0x39c   :  { %v2084_v6 = vpop.f32.mrf.mxu0  ;;  %v2081_v63 = vadd.f32 %v2080_v32, %v2007_v44 }
 0x39d   :  { %v2009_v1 = vpop.f32.mrf.mxu1 }
 0x39e   :  { %v2086_v31 = vpop.f32.mrf.mxu0  ;;  %v2083_v22 = vadd.f32 %v2082_v39, %v2009_v1 }
 0x39f   :  { %v2011_v10 = vpop.f32.mrf.mxu1 }
 0x3a0   :  { %v2090_v21 = vpop.f32.mrf.mxu0  ;;  %v2085_v20 = vadd.f32 %v2084_v6, %v2011_v10 }
 0x3a1   :  { %v2013_v49 = vpop.f32.mrf.mxu1 }
 0x3a2   :  { %v2092_v9 = vpop.f32.mrf.mxu0  ;;  %v2087_v39 = vadd.f32 %v2086_v31, %v2013_v49 }
 0x3a3   :  { %v8074_v28 = vpop.f32.mrf.mxu1 }
 0x3a5   :  { %v8076_v37 = vpop.f32.mrf.mxu1 }
 0x3a7   :  { %v8078_v25 = vpop.f32.mrf.mxu1 }
 0x3a9   :  { %v8080_v27 = vpop.f32.mrf.mxu1 }
 0x3cb   :  { %v2133_v48 = vpop.f32.mrf.mxu1 }
 0x3cc   :  { %v8084_v47 = vadd.f32 %v2133_v48, %v2061_v62 }
 0x3cd   :  { %v2135_v53 = vpop.f32.mrf.mxu1 }
 0x3ce   :  { %v8090_v35 = vadd.f32 %v2135_v53, %v2063_v30  ;;  %v2198_v42 = vmul.f32 %v8084_v47, %v8084_v47 }
 0x3cf   :  { %v2137_v60 = vpop.f32.mrf.mxu1 }
 0x3d0   :  { %v8082_v36 = vadd.f32 %v2137_v60, %v2065_v43  ;;  %v2199_v24 = vmul.f32 %v8090_v35, %v8090_v35 }
 0x3d1   :  { %v2139_v4 = vpop.f32.mrf.mxu1 }
 0x3d2   :  { %v8086_v41 = vadd.f32 %v2139_v4, %v2067_v34  ;;  %v2200_v58 = vmul.f32 %v8082_v36, %v8082_v36  ;;  %v2172_v1 = vadd.f32 %v8082_v36, %v8084_v47  ;;  %v2091_v34 = vadd.f32 %v2090_v21, %v8074_v28 }
 0x3d3   :  { %v2143_v12 = vpop.f32.mrf.mxu1 }
 0x3d4   :  { %v8088_v57 = vadd.f32 %v2143_v12, %v2071_v33  ;;  %v2201_v0 = vmul.f32 %v8086_v41, %v8086_v41  ;;  %v2214_v32 = vadd.f32 %v2200_v58, %v2198_v42  ;;  %v2185_v10 = vadd.f32 %v8086_v41, %v8090_v35  ;;  %v2094_v33 = vpop.f32.mrf.mxu0 }
 0x3d5   :  { %v2145_v26 = vpop.f32.mrf.mxu1  ;;  %v2095_v42 = vadd.f32 %v2094_v33, %v8078_v25 }
 0x3d6   :  { %v8094_v5 = vadd.f32 %v2145_v26, %v2073_v50  ;;  %v2202_v7 = vmul.f32 %v8088_v57, %v8088_v57  ;;  %v2173_v60 = vadd.f32 %v2172_v1, %v8088_v57  ;;  %v2227_v6 = vadd.f32 %v2201_v0, %v2199_v24  ;;  %v2096_v24 = vpop.f32.mrf.mxu0 }
 0x3d7   :  { %v2147_v38 = vpop.f32.mrf.mxu1 }
 0x3d8   :  { %v8096_v55 = vadd.f32 %v2147_v38, %v2075_v2  ;;  %v2203_v48 = vmul.f32 %v8094_v5, %v8094_v5  ;;  %v2215_v12 = vadd.f32 %v2214_v32, %v2202_v7  ;;  %v2186_v49 = vadd.f32 %v2185_v10, %v8094_v5 }
 0x3d9   :  { %v2149_v15 = vpop.f32.mrf.mxu1 }
 0x3da   :  { %v8104_v16 = vadd.f32 %v2149_v15, %v2077_v14  ;;  %v2204_v53 = vmul.f32 %v8096_v55, %v8096_v55  ;;  %v2174_v31 = vadd.f32 %v2173_v60, %v8096_v55  ;;  %v2228_v30 = vadd.f32 %v2227_v6, %v2203_v48 }
 0x3db   :  { %v2153_v40 = vpop.f32.mrf.mxu1  ;;  %v2097_v48 = vadd.f32 %v2096_v24, %v8080_v27 }
 0x3dc   :  { %v8106_v44 = vadd.f32 %v2153_v40, %v2081_v63  ;;  %v2205_v43 = vmul.f32 %v8104_v16, %v8104_v16  ;;  %v2216_v50 = vadd.f32 %v2215_v12, %v2204_v53  ;;  %v2093_v40 = vadd.f32 %v2092_v9, %v8076_v37 }
 0x3dd   :  { %v2155_v3 = vpop.f32.mrf.mxu1  ;;  %v2187_v28 = vadd.f32 %v2186_v49, %v8104_v16 }
 0x3de   :  { %v8116_v14 = vadd.f32 %v2155_v3, %v2083_v22  ;;  %v2206_v26 = vmul.f32 %v8106_v44, %v8106_v44  ;;  %v2175_v21 = vadd.f32 %v2174_v31, %v8106_v44  ;;  %v2229_v0 = vadd.f32 %v2228_v30, %v2205_v43 }
 0x3df   :  { %v2157_v15 = vpop.f32.mrf.mxu1 }
 0x3e0   :  { %v8121_v4 = vadd.f32 %v2157_v15, %v2085_v20  ;;  %v2207_v2 = vmul.f32 %v8116_v14, %v8116_v14  ;;  %v2217_v7 = vadd.f32 %v2216_v50, %v2206_v26  ;;  %v2188_v1 = vadd.f32 %v2187_v28, %v8116_v14 }
 0x3e1   :  { %v2159_v62 = vpop.f32.mrf.mxu1 }
 0x3e2   :  { %v8130_v38 = vadd.f32 %v2159_v62, %v2087_v39  ;;  %v2208_v63 = vmul.f32 %v8121_v4, %v8121_v4  ;;  %v2176_v32 = vadd.f32 %v2175_v21, %v8121_v4  ;;  %v2230_v53 = vadd.f32 %v2229_v0, %v2207_v2 }
 0x3e3   :  { %v2163_v58 = vpop.f32.mrf.mxu1 }
 0x3e4   :  { %v8139_v22 = vadd.f32 %v2163_v58, %v2091_v34  ;;  %v2209_v3 = vmul.f32 %v8130_v38, %v8130_v38  ;;  %v2218_v25 = vadd.f32 %v2217_v7, %v2208_v63  ;;  %v2189_v39 = vadd.f32 %v2188_v1, %v8130_v38 }
 0x3e5   :  { %v2165_v20 = vpop.f32.mrf.mxu1 }
 0x3e6   :  { %v2210_v37 = vmul.f32 %v8139_v22, %v8139_v22  ;;  %v8148_v9 = vadd.f32 %v2165_v20, %v2093_v40  ;;  %v2177_v10 = vadd.f32 %v2176_v32, %v8139_v22  ;;  %v2231_v12 = vadd.f32 %v2230_v53, %v2209_v3 }
 0x3e7   :  { %v2167_v15 = vpop.f32.mrf.mxu1 }
 0x3e8   :  { %v2211_v60 = vmul.f32 %v8148_v9, %v8148_v9  ;;  %v8155_v6 = vadd.f32 %v2167_v15, %v2095_v42  ;;  %v2219_v43 = vadd.f32 %v2218_v25, %v2210_v37  ;;  %v2190_v62 = vadd.f32 %v2189_v39, %v8148_v9 }
 0x3e9   :  { %v2169_v26 = vpop.f32.mrf.mxu1 }
 0x3ea   :  { %v2178_v34 = vadd.f32 %v2177_v10, %v8155_v6  ;;  %v2212_v27 = vmul.f32 %v8155_v6, %v8155_v6  ;;  %v8161_v33 = vadd.f32 %v2169_v26, %v2097_v48  ;;  %v2232_v49 = vadd.f32 %v2231_v12, %v2211_v60 }
 0x3ec   :  { %v2179_v31 = vrot.slane %v2178_v34, 4  ;;  %v2220_v30 = vadd.f32 %v2219_v43, %v2212_v27  ;;  %v2191_v50 = vadd.f32 %v2190_v62, %v8161_v33  ;;  %v2213_v2 = vmul.f32 %v8161_v33, %v8161_v33  ;;  %v6947_v62 = vld [vmem:[#allocation2 + $0x770] ss:$8 sps:$4 sm:$0xff]  }
 0x3ed   :  { %v6950_v27 = vld [vmem:[#allocation2 + $0x670] ss:$8 sps:$4 sm:$0xff]  }
 0x3ee   :  { %v2180_v63 = vadd.f32 %v2179_v31, %v2178_v34  ;;  %v2221_v58 = vrot.slane %v2220_v30, 4  ;;  %v2192_v40 = vrot.slane %v2191_v50, 4  ;;  %v2233_v28 = vadd.f32 %v2232_v49, %v2213_v2  ;;  %v6949_v34 = vld [vmem:[#allocation2 + $0x774] ss:$8 sps:$4 sm:$0xff]   ;;  %v6955_v31 = vld [vmem:[#allocation2 + $0x764] ss:$8 sps:$4 sm:$0xff]  }
 0x3ef   :  { %v6952_v49 = vld [vmem:[#allocation2 + $0x674] ss:$8 sps:$4 sm:$0xff]   ;;  %3174 = vmatprep.subr.bf16.mxu1 %v6949_v34  ;;  %v6956_v2 = vld [vmem:[#allocation2 + $0x660] ss:$8 sps:$4 sm:$0xff]   ;;  %v6994_v34 = vld [vmem:[#allocation2 + $0x604] ss:$8 sps:$4 sm:$0xff]  }
 0x3f0   :  { %v2181_v21 = vrot.slane %v2180_v63, 2  ;;  %v2222_v42 = vadd.f32 %v2221_v58, %v2220_v30  ;;  %v2234_v0 = vrot.slane %v2233_v28, 4  ;;  %v2193_v20 = vadd.f32 %v2192_v40, %v2191_v50  ;;  %v6958_v30 = vld [vmem:[#allocation2 + $0x664] ss:$8 sps:$4 sm:$0xff]   ;;  %3175 = vmatpush1.bf16.msra.mxu1 %v6947_v62  ;;  %3101 = vmatprep.subr.bf16.mxu0 %v6952_v49  ;;  %v6953_v50 = vld [vmem:[#allocation2 + $0x760] ss:$8 sps:$4 sm:$0xff]  }
 0x3f1   :  { %3102 = vmatpush1.bf16.msra.mxu0 %v6950_v27  ;;  %3176 = vmatprep.subr.bf16.mxu1 %v6955_v31  ;;  %v6964_v58 = vld [vmem:[#allocation2 + $0x654] ss:$8 sps:$4 sm:$0xff]   ;;  %v6959_v40 = vld [vmem:[#allocation2 + $0x750] ss:$8 sps:$4 sm:$0xff]   ;;  %v6991_v62 = vld [vmem:[#allocation2 + $0x704] ss:$8 sps:$4 sm:$0xff]  }
 0x3f2   :  { %v2182_v7 = vadd.f32 %v2181_v21, %v2180_v63  ;;  %v2223_v3 = vrot.slane %v2222_v42, 2  ;;  %v2235_v24 = vadd.f32 %v2234_v0, %v2233_v28  ;;  %v2194_v37 = vrot.slane %v2193_v20, 2  ;;  %v6961_v63 = vld [vmem:[#allocation2 + $0x754] ss:$8 sps:$4 sm:$0xff]   ;;  %3103 = vmatprep.subr.bf16.mxu0 %v6958_v30  ;;  %v6962_v28 = vld [vmem:[#allocation2 + $0x650] ss:$8 sps:$4 sm:$0xff]  }
 0x3f3   :  { %v6967_v21 = vld [vmem:[#allocation2 + $0x744] ss:$8 sps:$4 sm:$0xff]   ;;  %v6965_v0 = vld [vmem:[#allocation2 + $0x740] ss:$8 sps:$4 sm:$0xff]   ;;  %v6997_v31 = vld [vmem:[#allocation2 + $0x7f4] ss:$8 sps:$4 sm:$0xff]  }
 0x3f4   :  { %v2183_v1 = vrot.slane %v2182_v7, 1  ;;  %v2224_v32 = vadd.f32 %v2223_v3, %v2222_v42  ;;  %v2236_v25 = vrot.slane %v2235_v24, 2  ;;  %v2195_v39 = vadd.f32 %v2194_v37, %v2193_v20  ;;  %3177 = vmatpush1.bf16.msra.mxu1 %v6953_v50  ;;  %v6970_v42 = vld [vmem:[#allocation2 + $0x644] ss:$8 sps:$4 sm:$0xff]   ;;  %v6973_v3 = vld [vmem:[#allocation2 + $0x734] ss:$8 sps:$4 sm:$0xff]  }
 0x3f5   :  { %3104 = vmatpush1.bf16.msra.mxu0 %v6956_v2  ;;  %3178 = vmatprep.subr.bf16.mxu1 %v6961_v63  ;;  %v6976_v20 = vld [vmem:[#allocation2 + $0x634] ss:$8 sps:$4 sm:$0xff]   ;;  %v6982_v37 = vld [vmem:[#allocation2 + $0x624] ss:$8 sps:$4 sm:$0xff]   ;;  %v6989_v27 = vld [vmem:[#allocation2 + $0x700] ss:$8 sps:$4 sm:$0xff]  }
 0x3f6   :  { %v8166_v48 = vadd.f32 %v2183_v1, %v2182_v7  ;;  %v2225_v53 = vrot.slane %v2224_v32, 1  ;;  %v2237_v10 = vadd.f32 %v2236_v25, %v2235_v24  ;;  %v2196_v60 = vrot.slane %v2195_v39, 1  ;;  %3105 = vmatprep.subr.bf16.mxu0 %v6964_v58  ;;  %v6968_v7 = vld [vmem:[#allocation2 + $0x640] ss:$8 sps:$4 sm:$0xff]   ;;  %v6971_v24 = vld [vmem:[#allocation2 + $0x730] ss:$8 sps:$4 sm:$0xff]  }
 0x3f7   :  { %v6974_v1 = vld [vmem:[#allocation2 + $0x630] ss:$8 sps:$4 sm:$0xff]   ;;  %v6980_v25 = vld [vmem:[#allocation2 + $0x620] ss:$8 sps:$4 sm:$0xff]   ;;  %v7000_v30 = vld [vmem:[#allocation2 + $0x6f4] ss:$8 sps:$4 sm:$0xff]  }
 0x3f8   :  { %2241 = vrot.lane.b32.xlu0 %v8166_v48, %s7486_s0  ;;  %v8170_v15 = vadd.f32 %v2225_v53, %v2224_v32  ;;  %v2238_v12 = vrot.slane %v2237_v10, 1  ;;  %v8182_v43 = vadd.f32 %v2196_v60, %v2195_v39  ;;  %3179 = vmatpush1.bf16.msra.mxu1 %v6959_v40  ;;  %v6979_v32 = vld [vmem:[#allocation2 + $0x724] ss:$8 sps:$4 sm:$0xff]   ;;  %v6977_v53 = vld [vmem:[#allocation2 + $0x720] ss:$8 sps:$4 sm:$0xff]  }
 0x3f9   :  { %3106 = vmatpush1.bf16.msra.mxu0 %v6962_v28  ;;  %3180 = vmatprep.subr.bf16.mxu1 %v6967_v21  ;;  %v6985_v39 = vld [vmem:[#allocation2 + $0x714] ss:$8 sps:$4 sm:$0xff]   ;;  %v6983_v60 = vld [vmem:[#allocation2 + $0x710] ss:$8 sps:$4 sm:$0xff]   ;;  %v6992_v49 = vld [vmem:[#allocation2 + $0x600] ss:$8 sps:$4 sm:$0xff]  }
 0x3fa   :  { %2246 = vrot.lane.b32.xlu1 %v8170_v15, %s7486_s0  ;;  %v8186_v26 = vadd.f32 %v2238_v12, %v2237_v10  ;;  %3107 = vmatprep.subr.bf16.mxu0 %v6970_v42  ;;  %v6988_v10 = vld [vmem:[#allocation2 + $0x614] ss:$8 sps:$4 sm:$0xff]   ;;  %v6986_v12 = vld [vmem:[#allocation2 + $0x610] ss:$8 sps:$4 sm:$0xff]   ;;  %v7003_v63 = vld [vmem:[#allocation2 + $0x7e4] ss:$8 sps:$4 sm:$0xff]  }
 0x3fb   :  { %v6995_v50 = vld [vmem:[#allocation2 + $0x7f0] ss:$8 sps:$4 sm:$0xff]   ;;  %v7006_v58 = vld [vmem:[#allocation2 + $0x6e4] ss:$8 sps:$4 sm:$0xff]   ;;  %v7001_v40 = vld [vmem:[#allocation2 + $0x7e0] ss:$8 sps:$4 sm:$0xff]  }
 0x3fc   :  { %2250 = vrot.lane.b32.xlu0 %v8166_v48, %s7483_s1  ;;  %3181 = vmatpush1.bf16.msra.mxu1 %v6965_v0  ;;  %v6998_v2 = vld [vmem:[#allocation2 + $0x6f0] ss:$8 sps:$4 sm:$0xff]   ;;  %v7004_v28 = vld [vmem:[#allocation2 + $0x6e0] ss:$8 sps:$4 sm:$0xff]   ;;  %v7009_v21 = vld [vmem:[#allocation2 + $0x7d4] ss:$8 sps:$4 sm:$0xff]  }
 0x3fd   :  { %3108 = vmatpush1.bf16.msra.mxu0 %v6968_v7  ;;  %3182 = vmatprep.subr.bf16.mxu1 %v6973_v3  ;;  %v7012_v42 = vld [vmem:[#allocation2 + $0x6d4] ss:$8 sps:$4 sm:$0xff]   ;;  %v7007_v0 = vld [vmem:[#allocation2 + $0x7d0] ss:$8 sps:$4 sm:$0xff]   ;;  %v7015_v3 = vld [vmem:[#allocation2 + $0x7c4] ss:$8 sps:$4 sm:$0xff]  }
 0x3fe   :  { %2254 = vrot.lane.b32.xlu1 %v8170_v15, %s7483_s1  ;;  %3109 = vmatprep.subr.bf16.mxu0 %v6976_v20  ;;  %v7010_v7 = vld [vmem:[#allocation2 + $0x6d0] ss:$8 sps:$4 sm:$0xff]   ;;  %v7013_v20 = vld [vmem:[#allocation2 + $0x7c0] ss:$8 sps:$4 sm:$0xff]  }
 0x400   :  { %2258 = vrot.lane.b32.xlu0 %v8166_v48, %s7487_s17  ;;  %3183 = vmatpush1.bf16.msra.mxu1 %v6971_v24 }
 0x401   :  { %3110 = vmatpush1.bf16.msra.mxu0 %v6974_v1  ;;  %3184 = vmatprep.subr.bf16.mxu1 %v6979_v32 }
 0x402   :  { %2262 = vrot.lane.b32.xlu1 %v8170_v15, %s7487_s17  ;;  %3111 = vmatprep.subr.bf16.mxu0 %v6982_v37 }
 0x404   :  { %2269 = vrot.lane.b32.xlu0 %v8182_v43, %s7486_s0  ;;  %3185 = vmatpush1.bf16.msra.mxu1 %v6977_v53 }
 0x405   :  { %3112 = vmatpush1.bf16.msra.mxu0 %v6980_v25  ;;  %3186 = vmatprep.subr.bf16.mxu1 %v6985_v39 }
 0x406   :  { %2274 = vrot.lane.b32.xlu1 %v8186_v26, %s7486_s0  ;;  %3113 = vmatprep.subr.bf16.mxu0 %v6988_v10 }
 0x408   :  { %2278 = vrot.lane.b32.xlu0 %v8182_v43, %s7483_s1  ;;  %3187 = vmatpush1.bf16.msra.mxu1 %v6983_v60 }
 0x409   :  { %3114 = vmatpush1.bf16.msra.mxu0 %v6986_v12  ;;  %3188 = vmatprep.subr.bf16.mxu1 %v6991_v62 }
 0x40a   :  { %2282 = vrot.lane.b32.xlu1 %v8186_v26, %s7483_s1  ;;  %3115 = vmatprep.subr.bf16.mxu0 %v6994_v34 }
 0x40c   :  { %2286 = vrot.lane.b32.xlu0 %v8182_v43, %s7487_s17  ;;  %3189 = vmatpush1.bf16.msra.mxu1 %v6989_v27 }
 0x40d   :  { %3116 = vmatpush1.bf16.msra.mxu0 %v6992_v49  ;;  %3190 = vmatprep.subr.bf16.mxu1 %v6997_v31 }
 0x40e   :  { %2290 = vrot.lane.b32.xlu1 %v8186_v26, %s7487_s17  ;;  %3117 = vmatprep.subr.bf16.mxu0 %v7000_v30 }
 0x410   :  { %3191 = vmatpush2.bf16.msra.mxu1 %v6995_v50 }
 0x411   :  { %3118 = vmatpush2.bf16.msra.mxu0 %v6998_v2  ;;  %3192 = vmatprep.subr.bf16.mxu1 %v7003_v63 }
 0x412   :  { %3119 = vmatprep.subr.bf16.mxu0 %v7006_v58 }
 0x414   :  { %3193 = vmatpush2.bf16.msra.mxu1 %v7001_v40 }
 0x415   :  { %3120 = vmatpush2.bf16.msra.mxu0 %v7004_v28  ;;  %3194 = vmatprep.subr.bf16.mxu1 %v7009_v21 }
 0x416   :  { %3121 = vmatprep.subr.bf16.mxu0 %v7012_v42 }
 0x418   :  { %3195 = vmatpush2.bf16.msra.mxu1 %v7007_v0 }
 0x419   :  { %3122 = vmatpush2.bf16.msra.mxu0 %v7010_v7  ;;  %3196 = vmatprep.subr.bf16.mxu1 %v7015_v3 }
 0x41c   :  { %3197 = vmatpush2.bf16.msra.mxu1 %v7013_v20 }
 0x46a   :  { %v2242_v24 = vpop.permute.xlu0 %2241 }
 0x46b   :  { %v2244_v37 = vadd.f32 %v2242_v24, %v8166_v48 }
 0x46c   :  { %v2247_v1 = vpop.permute.xlu1 %2246 }
 0x46d   :  { %v2249_v25 = vadd.f32 %v2247_v1, %v8170_v15 }
 0x46e   :  { %v2251_v32 = vpop.permute.xlu0 %2250 }
 0x46f   :  { %v2253_v39 = vadd.f32 %v2251_v32, %v2244_v37  ;;  %v7018_v32 = vld [vmem:[#allocation2 + $0x6c4] ss:$8 sps:$4 sm:$0xff]   ;;  %v7021_v37 = vld [vmem:[#allocation2 + $0x7b4] ss:$8 sps:$4 sm:$0xff]  }
 0x470   :  { %v2255_v53 = vpop.permute.xlu1 %2254  ;;  %3123 = vmatprep.subr.bf16.mxu0 %v7018_v32  ;;  %3198 = vmatprep.subr.bf16.mxu1 %v7021_v37 }
 0x471   :  { %v2257_v60 = vadd.f32 %v2255_v53, %v2249_v25  ;;  %v7022_v53 = vld [vmem:[#allocation2 + $0x6b0] ss:$8 sps:$4 sm:$0xff]   ;;  %v7024_v25 = vld [vmem:[#allocation2 + $0x6b4] ss:$8 sps:$4 sm:$0xff]  }
 0x472   :  { %v2259_v10 = vpop.permute.xlu0 %2258 }
 0x473   :  { %v2261_v12 = vadd.f32 %v2259_v10, %v2253_v39  ;;  %v7025_v39 = vld [vmem:[#allocation2 + $0x7a0] ss:$8 sps:$4 sm:$0xff]   ;;  %v7027_v10 = vld [vmem:[#allocation2 + $0x7a4] ss:$8 sps:$4 sm:$0xff]  }
 0x474   :  { %v2263_v62 = vpop.permute.xlu1 %2262 }
 0x475   :  { %v2265_v34 = vadd.f32 %v2263_v62, %v2257_v60  ;;  %v2266_v49 = vadd.f32 %v2261_v12, %v8182_v43  ;;  %v7016_v43 = vld [vmem:[#allocation2 + $0x6c0] ss:$8 sps:$4 sm:$0xff]  }
 0x476   :  { %v2270_v27 = vpop.permute.xlu0 %2269  ;;  %3124 = vmatpush2.bf16.msra.mxu0 %v7016_v43  ;;  %v2299_v60 = vld [vmem:[#allocation4 + $0x1] sm:$0x1] }
 0x477   :  { %v2267_v30 = vadd.f32 %v2265_v34, %v8186_v26  ;;  %v2272_v2 = vadd.f32 %v2270_v27, %v2266_v49  ;;  %v7019_v26 = vld [vmem:[#allocation2 + $0x7b0] ss:$8 sps:$4 sm:$0xff]   ;;  %3125 = vmatprep.subr.bf16.mxu0 %v7024_v25  ;;  %v7028_v62 = vld [vmem:[#allocation2 + $0x6a0] ss:$8 sps:$4 sm:$0xff]   ;;  %v7030_v34 = vld [vmem:[#allocation2 + $0x6a4] ss:$8 sps:$4 sm:$0xff]  }
 0x478   :  { %v2275_v31 = vpop.permute.xlu1 %2274  ;;  %3199 = vmatpush2.bf16.msra.mxu1 %v7019_v26  ;;  %v7031_v49 = vld [vmem:[#allocation2 + $0x790] ss:$8 sps:$4 sm:$0xff]  }
 0x479   :  { %v2277_v58 = vadd.f32 %v2275_v31, %v2267_v30  ;;  %3200 = vmatprep.subr.bf16.mxu1 %v7027_v10  ;;  %v7033_v31 = vld [vmem:[#allocation2 + $0x794] ss:$8 sps:$4 sm:$0xff]  }
 0x47a   :  { %v2279_v50 = vpop.permute.xlu0 %2278  ;;  %3126 = vmatpush2.bf16.msra.mxu0 %v7022_v53  ;;  %v7036_v30 = vld [vmem:[#allocation2 + $0x694] ss:$8 sps:$4 sm:$0xff]  }
 0x47b   :  { %v2281_v48 = vadd.f32 %v2279_v50, %v2272_v2  ;;  %v2303_v50 = vld [vmem:[#allocation6 + $0x1] sm:$0x1]  ;;  %3127 = vmatprep.subr.bf16.mxu0 %v7030_v34  ;;  %v7039_v2 = vld [vmem:[#allocation2 + $0x784] ss:$8 sps:$4 sm:$0xff]  }
 0x47c   :  { %v2283_v63 = vpop.permute.xlu1 %2282  ;;  %3201 = vmatpush2.bf16.msra.mxu1 %v7025_v39 }
 0x47d   :  { %v2285_v28 = vadd.f32 %v2283_v63, %v2277_v58  ;;  %3202 = vmatprep.subr.bf16.mxu1 %v7033_v31  ;;  %v7034_v58 = vld [vmem:[#allocation2 + $0x690] ss:$8 sps:$4 sm:$0xff]  }
 0x47e   :  { %v2287_v40 = vpop.permute.xlu0 %2286  ;;  %3128 = vmatpush2.bf16.msra.mxu0 %v7028_v62 }
 0x47f   :  { %v2289_v15 = vadd.f32 %v2287_v40, %v2281_v48  ;;  %3129 = vmatprep.subr.bf16.mxu0 %v7036_v30  ;;  %v7037_v40 = vld [vmem:[#allocation2 + $0x780] ss:$8 sps:$4 sm:$0xff]  }
 0x480   :  { %v2291_v21 = vpop.permute.xlu1 %2290  ;;  %3203 = vmatpush2.bf16.msra.mxu1 %v7031_v49 }
 0x481   :  { %v2294_v42 = vmul.f32 0.001953125, %v2289_v15  ;;  %v2293_v0 = vadd.f32 %v2291_v21, %v2285_v28  ;;  %v7042_v28 = vld [vmem:[#allocation2 + $0x684] ss:$8 sps:$4 sm:$0xff]   ;;  %3204 = vmatprep.subr.bf16.mxu1 %v7039_v2  ;;  %v7040_v15 = vld [vmem:[#allocation2 + $0x680] ss:$8 sps:$4 sm:$0xff]  }
 0x482   :  { %3130 = vmatpush2.bf16.msra.mxu0 %v7034_v58  ;;  %v7045_v21 = vld [vmem:[#allocation2 + $0x874] ss:$8 sps:$4 sm:$0xff]  }
 0x483   :  { %v2296_v7 = vmul.f32 %v2294_v42, %v2294_v42  ;;  %v2295_v3 = vmul.f32 0.001953125, %v2293_v0  ;;  %3131 = vmatprep.subr.bf16.mxu0 %v7042_v28 }
 0x484   :  { %3205 = vmatpush2.bf16.msra.mxu1 %v7037_v40 }
 0x485   :  { %v2297_v20 = vsub.f32 %v2295_v3, %v2296_v7 }
 0x486   :  { %3132 = vmatpush2.bf16.msra.mxu0 %v7040_v15 }
 0x487   :  { %v2298_v24 = vmax.f32 %v2297_v20, 0.0  ;;  %3247 = vmatprep.subr.bf16.mxu0 %v7045_v21 }
 0x489   :  { %v2300_v1 = vadd.f32 1e-05, %v2298_v24 }
 0x48b   :  { %7383 = vrsqrt.f32 %v2300_v1 }
 0x498   :  { %v7384_v12 = vpop.eup %7383 }
 0x499   :  { %v2302_v27 = vmul.f32 %v7384_v12, %v2299_v60 }
 0x49b   :  { %2310 = vrot.lane.b32.xlu1 %v2302_v27, %s7483_s1  ;;  %2307 = vrot.lane.b32.xlu0 %v2302_v27, %s7487_s17  ;;  %v2304_v63 = vmul.f32 %v2302_v27, %v2294_v42 }
 0x49d   :  { %v2305_v48 = vsub.f32 %v2303_v50, %v2304_v63 }
 0x49f   :  { %2313 = vrot.lane.b32.xlu0 %v2302_v27, %s7486_s0  ;;  %2320 = vrot.lane.b32.xlu1 %v2305_v48, %s7487_s17 }
 0x4a3   :  { %2323 = vrot.lane.b32.xlu0 %v2305_v48, %s7483_s1  ;;  %2326 = vrot.lane.b32.xlu1 %v2305_v48, %s7486_s0 }
 0x50d   :  { %v2311_v42 = vpop.permute.xlu1 %2310  ;;  %v2308_v0 = vpop.permute.xlu0 %2307 }
 0x50e   :  { %v2316_v7 = vsel %vm1165_vm6, %v2302_v27, %v2308_v0 }
 0x50f   :  { %v2317_v3 = vsel %vm1167_vm7, %v2316_v7, %v2311_v42 }
 0x511   :  { %v2314_v20 = vpop.permute.xlu0 %2313  ;;  %v2321_v24 = vpop.permute.xlu1 %2320 }
 0x512   :  { %v2318_v1 = vsel %vm1169_vm8, %v2317_v3, %v2314_v20  ;;  %v2329_v32 = vsel %vm1165_vm6, %v2305_v48, %v2321_v24 }
 0x513   :  { %v8212_v43 = vrot.slane %v2318_v1, %v7893_v8 }
 0x515   :  { %v2324_v26 = vpop.permute.xlu0 %2323  ;;  %v2327_v37 = vpop.permute.xlu1 %2326  ;;  %v2337_v39 = vmul.f32 %v8212_v43, %v8090_v35  ;;  %v2339_v10 = vmul.f32 %v8212_v43, %v8086_v41  ;;  %v2336_v60 = vmul.f32 %v8212_v43, %v8084_v47  ;;  %v2338_v62 = vmul.f32 %v8212_v43, %v8082_v36 }
 0x516   :  { %v2330_v53 = vsel %vm1167_vm7, %v2329_v32, %v2324_v26  ;;  %v2341_v34 = vmul.f32 %v8212_v43, %v8094_v5  ;;  %v2343_v27 = vmul.f32 %v8212_v43, %v8104_v16  ;;  %v2340_v35 = vmul.f32 %v8212_v43, %v8088_v57 }
 0x517   :  { %v2331_v25 = vsel %vm1169_vm8, %v2330_v53, %v2327_v37  ;;  %v2342_v41 = vmul.f32 %v8212_v43, %v8096_v55  ;;  %v2345_v47 = vmul.f32 %v8212_v43, %v8116_v14  ;;  %v2347_v49 = vmul.f32 %v8212_v43, %v8130_v38 }
 0x518   :  { %v8224_v12 = vrot.slane %v2331_v25, %v7893_v8  ;;  %v2344_v40 = vmul.f32 %v8212_v43, %v8106_v44  ;;  %v2346_v28 = vmul.f32 %v8212_v43, %v8121_v4 }
 0x51a   :  { %v2357_v36 = vadd.f32 %v8224_v12, %v2337_v39  ;;  %v2359_v31 = vadd.f32 %v8224_v12, %v2339_v10  ;;  %v2356_v5 = vadd.f32 %v8224_v12, %v2336_v60  ;;  %v2358_v16 = vadd.f32 %v8224_v12, %v2338_v62  ;;  %v7043_v10 = vld [vmem:[#allocation2 + $0x870] ss:$8 sps:$4 sm:$0xff]  }
 0x51b   :  { %v2361_v30 = vadd.f32 %v8224_v12, %v2341_v34  ;;  %v2363_v57 = vadd.f32 %v8224_v12, %v2343_v27  ;;  %v2360_v55 = vadd.f32 %v8224_v12, %v2340_v35  ;;  %v2362_v50 = vadd.f32 %v8224_v12, %v2342_v41  ;;  %v7048_v35 = vld [vmem:[#allocation2 + $0x864] ss:$8 sps:$4 sm:$0xff]  }
 0x51c   :  { %v8248_v14 = vmax.f32 %v2357_v36, 0.0  ;;  %v8250_v2 = vmax.f32 %v2359_v31, 0.0  ;;  %v8252_v38 = vmax.f32 %v2356_v5, 0.0  ;;  %v8254_v63 = vmax.f32 %v2358_v16, 0.0 }
 0x51d   :  { %v8256_v58 = vmax.f32 %v2361_v30, 0.0  ;;  %v8258_v48 = vmax.f32 %v2363_v57, 0.0  ;;  %v8273_v44 = vmax.f32 %v2360_v55, 0.0  ;;  %v8278_v1 = vmax.f32 %v2362_v50, 0.0  ;;  %v7046_v57 = vld [vmem:[#allocation2 + $0x860] ss:$8 sps:$4 sm:$0xff]  }
 0x51e   :  { %v2503_v15 = vpack.c.bf16 %v8250_v2, %v8248_v14  ;;  %v2406_v21 = vrot.slane %v8254_v63, 7  ;;  %v2502_v42 = vpack.c.bf16 %v8254_v63, %v8252_v38  ;;  %v2405_v0 = vrot.slane %v8248_v14, 7 }
 0x51f   :  { %v2408_v7 = vrot.slane %v8250_v2, 7  ;;  %v2404_v3 = vrot.slane %v8252_v38, 7  ;;  %v2412_v20 = vrot.slane %v8256_v58, 7  ;;  %v2509_v4 = vpack.c.bf16 %v8258_v48, %v8256_v58 }
 0x520   :  { %3206 = vmatprep.mubr.bf16.mxu1 %v2503_v15  ;;  %v2416_v24 = vrot.slane %v8258_v48, 7  ;;  %v2365_v32 = vadd.f32 %v8224_v12, %v2345_v47  ;;  %v2367_v25 = vadd.f32 %v8224_v12, %v2347_v49  ;;  %v2349_v47 = vmul.f32 %v8212_v43, %v8148_v9 }
 0x521   :  { %3207 = vmatmul.mubr.bf16.vlgmr.msra.gmra.mxu1 %v2502_v42  ;;  %v2409_v26 = vsel %vm104_vm0, %v2405_v0, %v2408_v7  ;;  %v2407_v37 = vsel %vm104_vm0, %v2404_v3, %v2406_v21  ;;  %v2413_v53 = vsel %vm104_vm0, %v2408_v7, %v2412_v20  ;;  %v2351_v36 = vmul.f32 %v8212_v43, %v8161_v33 }
 0x522   :  { %3216 = vmatprep.mubr.bf16.mxu1 %v2509_v4  ;;  %v6367_v39 = vpack.c.bf16 %v2409_v26, %v2405_v0  ;;  %v6371_v60 = vpack.c.bf16 %v2407_v37, %v2404_v3  ;;  %v2417_v62 = vsel %vm104_vm0, %v2412_v20, %v2416_v24  ;;  %v8286_v34 = vmax.f32 %v2365_v32, 0.0  ;;  %v7054_v26 = vld [vmem:[#allocation2 + $0x844] ss:$8 sps:$4 sm:$0xff]  }
 0x523   :  { %v2507_v27 = vpack.c.bf16 %v2417_v62, %v2413_v53  ;;  %v8288_v41 = vmax.f32 %v2367_v25, 0.0  ;;  %v2410_v49 = vrot.slane %v8273_v44, 7  ;;  %v2414_v31 = vrot.slane %v8278_v1, 7 }
 0x524   :  { %6368 = vmatprep.mubr.msk.bf16.mxu0 %vm7562_vm3, %v6367_v39  ;;  %v2364_v5 = vadd.f32 %v8224_v12, %v2344_v40  ;;  %v2366_v16 = vadd.f32 %v8224_v12, %v2346_v28  ;;  %v2419_v30 = vrot.slane %v8286_v34, 7  ;;  %v2369_v33 = vadd.f32 %v8224_v12, %v2349_v47  ;;  %v7051_v28 = vld [vmem:[#allocation2 + $0x854] ss:$8 sps:$4 sm:$0xff]  }
 0x525   :  { %6372 = vmatmul.mubr.msk.bf16.vlgmr.msra.gmra.mxu0 %vm7562_vm3, %v6371_v60  ;;  %v2422_v9 = vrot.slane %v8288_v41, 7  ;;  %v2371_v55 = vadd.f32 %v8224_v12, %v2351_v36  ;;  %v2508_v50 = vpack.c.bf16 %v8278_v1, %v8273_v44  ;;  %v2515_v40 = vpack.c.bf16 %v8288_v41, %v8286_v34  ;;  %v7057_v47 = vld [vmem:[#allocation2 + $0x834] ss:$8 sps:$4 sm:$0xff]  }
 0x526   :  { %3248 = vmatpush1.bf16.msra.mxu0 %v7043_v10  ;;  %3143 = vmatprep.mubr.bf16.mxu0 %v2507_v27  ;;  %v2348_v15 = vmul.f32 %v8212_v43, %v8139_v22  ;;  %v2411_v42 = vsel %vm104_vm0, %v2406_v21, %v2410_v49  ;;  %v2415_v0 = vsel %vm104_vm0, %v2410_v49, %v2414_v31  ;;  %v2380_v7 = vmax.f32 %v2364_v5, 0.0  ;;  %v7049_v22 = vld [vmem:[#allocation2 + $0x850] ss:$8 sps:$4 sm:$0xff]   ;;  %v7052_v27 = vld [vmem:[#allocation2 + $0x840] ss:$8 sps:$4 sm:$0xff]  }
 0x527   :  { %3249 = vmatprep.subr.bf16.mxu0 %v7048_v35  ;;  %v8314_v3 = vmax.f32 %v2366_v16, 0.0  ;;  %v2423_v20 = vsel %vm104_vm0, %v2419_v30, %v2422_v9  ;;  %v8317_v4 = vmax.f32 %v2369_v33, 0.0  ;;  %v8319_v24 = vmax.f32 %v2371_v55, 0.0  ;;  %v7055_v55 = vld [vmem:[#allocation2 + $0x830] ss:$8 sps:$4 sm:$0xff]  }
 0x528   :  { %v2350_v32 = vmul.f32 %v8212_v43, %v8155_v6  ;;  %v2506_v21 = vpack.c.bf16 %v2415_v0, %v2411_v42  ;;  %v2368_v37 = vadd.f32 %v8224_v12, %v2348_v15  ;;  %v2458_v25 = vrot.slane %v8273_v44, 1  ;;  %v7060_v42 = vld [vmem:[#allocation2 + $0x824] ss:$8 sps:$4 sm:$0xff]  }
 0x529   :  { %3217 = vmatmul.mubr.bf16.gmra.mxu1 %v2508_v50  ;;  %v6375_v39 = vpack.c.bf16 %v2423_v20, %v2419_v30  ;;  %v2418_v10 = vrot.slane %v2380_v7, 7  ;;  %v2420_v60 = vrot.slane %v8314_v3, 7  ;;  %v2426_v62 = vrot.slane %v8317_v4, 7 }
 0x52a   :  { %3250 = vmatpush1.bf16.msra.mxu0 %v7046_v57  ;;  %3226 = vmatprep.mubr.bf16.mxu1 %v2515_v40  ;;  %v2370_v53 = vadd.f32 %v8224_v12, %v2350_v32  ;;  %v2430_v6 = vrot.slane %v8319_v24, 7  ;;  %v2452_v43 = vrot.slane %v8252_v38, 1  ;;  %v2514_v12 = vpack.c.bf16 %v8314_v3, %v2380_v7 }
 0x52b   :  { %3251 = vmatprep.subr.bf16.mxu0 %v7051_v28  ;;  %v2453_v35 = vrot.slane %v8254_v63, 1  ;;  %v8334_v36 = vmax.f32 %v2368_v37, 0.0  ;;  %v2469_v31 = vrot.slane %v8286_v34, 1  ;;  %v2470_v5 = vrot.slane %v8288_v41, 1 }
 0x52c   :  { %v8336_v49 = vmax.f32 %v2370_v53, 0.0  ;;  %v2521_v38 = vpack.c.bf16 %v8319_v24, %v8317_v4  ;;  %v2421_v16 = vsel %vm104_vm0, %v2418_v10, %v2420_v60  ;;  %v2427_v33 = vsel %vm104_vm0, %v2422_v9, %v2426_v62  ;;  %v7058_v53 = vld [vmem:[#allocation2 + $0x820] ss:$8 sps:$4 sm:$0xff]  }
 0x52d   :  { %3144 = vmatmul.mubr.bf16.gmra.mxu0 %v2506_v21  ;;  %v8344_v30 = vsel %vm153_vm4, %v2452_v43, %v2453_v35  ;;  %v8349_v63 = vsel %vm153_vm4, %v2453_v35, %v2458_v25  ;;  %v2431_v34 = vsel %vm104_vm0, %v2426_v62, %v2430_v6  ;;  %v8356_v57 = vsel %vm153_vm4, %v2469_v31, %v2470_v5  ;;  %v7066_v35 = vld [vmem:[#allocation2 + $0x804] ss:$8 sps:$4 sm:$0xff]   ;;  %v7064_v31 = vld [vmem:[#allocation2 + $0x800] ss:$8 sps:$4 sm:$0xff]  }
 0x52e   :  { %3252 = vmatpush1.bf16.msra.mxu0 %v7049_v22  ;;  %6376 = vmatprep.mubr.msk.bf16.mxu0 %vm7562_vm3, %v6375_v39  ;;  %v2504_v41 = vpack.c.bf16 %v8349_v63, %v8344_v30  ;;  %v2474_v50 = vrot.slane %v8317_v4, 1  ;;  %v2466_v40 = vrot.slane %v2380_v7, 1  ;;  %v2467_v28 = vrot.slane %v8314_v3, 1 }
 0x52f   :  { %3253 = vmatprep.subr.bf16.mxu0 %v7054_v26  ;;  %v6379_v15 = vpack.c.bf16 %v2421_v16, %v2418_v10  ;;  %v2424_v9 = vrot.slane %v8334_v36, 7  ;;  %v2455_v0 = vrot.slane %v8248_v14, 1  ;;  %v2472_v20 = vrot.slane %v8334_v36, 1  ;;  %v7063_v10 = vld [vmem:[#allocation2 + $0x814] ss:$8 sps:$4 sm:$0xff]  }
 0x530   :  { %v2519_v32 = vpack.c.bf16 %v2431_v34, %v2427_v33  ;;  %v2428_v22 = vrot.slane %v8336_v49, 7  ;;  %v8367_v21 = vsel %vm153_vm4, %v2470_v5, %v2474_v50  ;;  %v8370_v7 = vsel %vm153_vm4, %v2466_v40, %v2467_v28  ;;  %v7069_v5 = vld [vmem:[#allocation2 + $0x8f4] ss:$8 sps:$4 sm:$0xff]   ;;  %v7070_v16 = vld [vmem:[#allocation2 + $0x8e0] ss:$8 sps:$4 sm:$0xff]  }
 0x531   :  { %3227 = vmatmul.mubr.bf16.gmra.mxu1 %v2514_v12  ;;  %v2456_v3 = vrot.slane %v8250_v2, 1  ;;  %v2460_v14 = vrot.slane %v8256_v58, 1  ;;  %v2517_v26 = vpack.c.bf16 %v8367_v21, %v8356_v57  ;;  %v8381_v37 = vsel %vm153_vm4, %v2467_v28, %v2472_v20  ;;  %v7075_v33 = vld [vmem:[#allocation2 + $0x8d4] ss:$8 sps:$4 sm:$0xff]   ;;  %v7073_v34 = vld [vmem:[#allocation2 + $0x8d0] ss:$8 sps:$4 sm:$0xff]  }
 0x532   :  { %3254 = vmatpush1.bf16.msra.mxu0 %v7052_v27  ;;  %3236 = vmatprep.mubr.bf16.mxu1 %v2521_v38  ;;  %v2516_v39 = vpack.c.bf16 %v8381_v37, %v8370_v7  ;;  %v2520_v2 = vpack.c.bf16 %v8336_v49, %v8334_v36  ;;  %v2425_v58 = vsel %vm104_vm0, %v2420_v60, %v2424_v9  ;;  %v7061_v27 = vld [vmem:[#allocation2 + $0x810] ss:$8 sps:$4 sm:$0xff]   ;;  %v7072_v38 = vld [vmem:[#allocation2 + $0x8e4] ss:$8 sps:$4 sm:$0xff]   ;;  %v7076_v40 = vld [vmem:[#allocation2 + $0x8c0] ss:$8 sps:$4 sm:$0xff]  }
 0x533   :  { %3255 = vmatprep.subr.bf16.mxu0 %v7057_v47  ;;  %v2429_v62 = vsel %vm104_vm0, %v2424_v9, %v2428_v22  ;;  %v2457_v6 = vsel %vm153_vm4, %v2455_v0, %v2456_v3  ;;  %v2461_v43 = vsel %vm153_vm4, %v2456_v3, %v2460_v14  ;;  %v7067_v60 = vld [vmem:[#allocation2 + $0x8f0] ss:$8 sps:$4 sm:$0xff]   ;;  %v7081_v28 = vld [vmem:[#allocation2 + $0x8b4] ss:$8 sps:$4 sm:$0xff]   ;;  %v7082_v9 = vld [vmem:[#allocation2 + $0x8a0] ss:$8 sps:$4 sm:$0xff]  }
 0x534   :  { %v2518_v12 = vpack.c.bf16 %v2429_v62, %v2425_v58  ;;  %v2505_v47 = vpack.c.bf16 %v2461_v43, %v2457_v6  ;;  %v7087_v0 = vld [vmem:[#allocation2 + $0x894] ss:$8 sps:$4 sm:$0xff]   ;;  %v7090_v22 = vld [vmem:[#allocation2 + $0x884] ss:$8 sps:$4 sm:$0xff]   ;;  %v2464_v3 = vrot.slane %v8258_v48, 1  ;;  %v2462_v58 = vrot.slane %v8278_v1, 1 }
 0x535   :  { %6380 = vmatmul.mubr.msk.bf16.gmra.mxu0 %vm7562_vm3, %v6379_v15  ;;  %v7079_v15 = vld [vmem:[#allocation2 + $0x8b0] ss:$8 sps:$4 sm:$0xff]   ;;  %v2476_v63 = vrot.slane %v8336_v49, 1 }
 0x536   :  { %3256 = vmatpush1.bf16.msra.mxu0 %v7055_v55  ;;  %3163 = vmatprep.mubr.bf16.mxu0 %v2519_v32  ;;  %v7078_v55 = vld [vmem:[#allocation2 + $0x8c4] ss:$8 sps:$4 sm:$0xff]   ;;  %v7085_v32 = vld [vmem:[#allocation2 + $0x890] ss:$8 sps:$4 sm:$0xff]   ;;  %v2463_v48 = vsel %vm153_vm4, %v2458_v25, %v2462_v58 }
 0x537   :  { %3257 = vmatprep.subr.bf16.mxu0 %v7060_v42  ;;  %v7084_v42 = vld [vmem:[#allocation2 + $0x8a4] ss:$8 sps:$4 sm:$0xff]   ;;  %v6385_v62 = vpack.c.bf16 %v2462_v58, %v2463_v48  ;;  %v2477_v44 = vsel %vm153_vm4, %v2472_v20, %v2476_v63 }
 0x539   :  { %3237 = vmatmul.mubr.bf16.gmra.mxu1 %v2520_v2  ;;  %v2465_v2 = vsel %vm153_vm4, %v2460_v14, %v2464_v3  ;;  %v2478_v14 = vrot.slane %v8319_v24, 1  ;;  %v6391_v24 = vpack.c.bf16 %v2476_v63, %v2477_v44 }
 0x53a   :  { %3258 = vmatpush1.bf16.msra.mxu0 %v7058_v53  ;;  %v7088_v53 = vld [vmem:[#allocation2 + $0x880] ss:$8 sps:$4 sm:$0xff]  }
 0x53b   :  { %3259 = vmatprep.subr.bf16.mxu0 %v7063_v10  ;;  %v6382_v10 = vpack.c.bf16 %v2464_v3, %v2465_v2  ;;  %v2479_v1 = vsel %vm153_vm4, %v2474_v50, %v2478_v14 }
 0x53c   :  { %v6388_v30 = vpack.c.bf16 %v2478_v14, %v2479_v1 }
 0x53d   :  { %3164 = vmatmul.mubr.bf16.gmra.mxu0 %v2518_v12 }
 0x53e   :  { %3260 = vmatpush1.bf16.msra.mxu0 %v7061_v27  ;;  %3279 = vmatprep.mubr.bf16.mxu0 %v2505_v47 }
 0x53f   :  { %3261 = vmatprep.subr.bf16.mxu0 %v7066_v35 }
 0x542   :  { %3262 = vmatpush1.bf16.msra.mxu0 %v7064_v31 }
 0x543   :  { %3263 = vmatprep.subr.bf16.mxu0 %v7069_v5 }
 0x546   :  { %3264 = vmatpush2.bf16.msra.mxu0 %v7067_v60 }
 0x547   :  { %3265 = vmatprep.subr.bf16.mxu0 %v7072_v38 }
 0x54a   :  { %3266 = vmatpush2.bf16.msra.mxu0 %v7070_v16 }
 0x54b   :  { %3267 = vmatprep.subr.bf16.mxu0 %v7075_v33 }
 0x54e   :  { %3268 = vmatpush2.bf16.msra.mxu0 %v7073_v34 }
 0x54f   :  { %3269 = vmatprep.subr.bf16.mxu0 %v7078_v55 }
 0x552   :  { %3270 = vmatpush2.bf16.msra.mxu0 %v7076_v40 }
 0x553   :  { %3271 = vmatprep.subr.bf16.mxu0 %v7081_v28 }
 0x556   :  { %3272 = vmatpush2.bf16.msra.mxu0 %v7079_v15 }
 0x557   :  { %3273 = vmatprep.subr.bf16.mxu0 %v7084_v42 }
 0x55a   :  { %3274 = vmatpush2.bf16.msra.mxu0 %v7082_v9 }
 0x55b   :  { %3275 = vmatprep.subr.bf16.mxu0 %v7087_v0 }
 0x55e   :  { %3276 = vmatpush2.bf16.msra.mxu0 %v7085_v32 }
 0x55f   :  { %3277 = vmatprep.subr.bf16.mxu0 %v7090_v22 }
 0x562   :  { %3278 = vmatpush2.bf16.msra.mxu0 %v7088_v53 }
 0x565   :  { %3280 = vmatmul.mubr.bf16.vlgmr.msra.gmra.mxu0 %v2504_v41 }
 0x566   :  { %6383 = vmatprep.mubr.msk.bf16.mxu0 %vm7724_vm5, %v6382_v10 }
 0x56d   :  { %6386 = vmatmul.mubr.msk.bf16.gmra.mxu0 %vm7724_vm5, %v6385_v62 }
 0x56e   :  { %3299 = vmatprep.mubr.bf16.mxu0 %v2517_v26 }
 0x575   :  { %3300 = vmatmul.mubr.bf16.gmra.mxu0 %v2516_v39 }
 0x576   :  { %6389 = vmatprep.mubr.msk.bf16.mxu0 %vm7724_vm5, %v6388_v30 }
 0x57d   :  { %6392 = vmatmul.mubr.msk.bf16.gmra.mxu0 %vm7724_vm5, %v6391_v24 }
 0x5e1   :  { %v3208_v26 = vpop.f32.mrf.mxu1 }
 0x5e3   :  { %v3210_v39 = vpop.f32.mrf.mxu1 }
 0x5e5   :  { %v3135_v4 = vpop.f32.mrf.mxu0  ;;  %v3212_v43 = vpop.f32.mrf.mxu1 }
 0x5e6   :  { %v3209_v22 = vadd.f32 %v3208_v26, %v3135_v4 }
 0x5e7   :  { %v3137_v25 = vpop.f32.mrf.mxu0  ;;  %v3214_v27 = vpop.f32.mrf.mxu1 }
 0x5e8   :  { %v3211_v48 = vadd.f32 %v3210_v39, %v3137_v25 }
 0x5e9   :  { %v3139_v41 = vpop.f32.mrf.mxu0  ;;  %v3218_v12 = vpop.f32.mrf.mxu1 }
 0x5ea   :  { %v3213_v0 = vadd.f32 %v3212_v43, %v3139_v41 }
 0x5eb   :  { %v3141_v57 = vpop.f32.mrf.mxu0  ;;  %v3220_v47 = vpop.f32.mrf.mxu1 }
 0x5ec   :  { %v3215_v53 = vadd.f32 %v3214_v27, %v3141_v57 }
 0x5ed   :  { %v3145_v49 = vpop.f32.mrf.mxu0  ;;  %v3222_v5 = vpop.f32.mrf.mxu1 }
 0x5ee   :  { %v3219_v2 = vadd.f32 %v3218_v12, %v3145_v49 }
 0x5ef   :  { %v3147_v50 = vpop.f32.mrf.mxu0  ;;  %v3224_v38 = vpop.f32.mrf.mxu1 }
 0x5f0   :  { %v3221_v14 = vadd.f32 %v3220_v47, %v3147_v50 }
 0x5f1   :  { %v3149_v21 = vpop.f32.mrf.mxu0  ;;  %v3228_v33 = vpop.f32.mrf.mxu1 }
 0x5f2   :  { %v3223_v1 = vadd.f32 %v3222_v5, %v3149_v21 }
 0x5f3   :  { %v3151_v7 = vpop.f32.mrf.mxu0  ;;  %v3230_v40 = vpop.f32.mrf.mxu1 }
 0x5f4   :  { %v3225_v24 = vadd.f32 %v3224_v38, %v3151_v7 }
 0x5f5   :  { %v3155_v37 = vpop.f32.mrf.mxu0  ;;  %v3232_v42 = vpop.f32.mrf.mxu1 }
 0x5f6   :  { %v3229_v4 = vadd.f32 %v3228_v33, %v3155_v37 }
 0x5f7   :  { %v3157_v6 = vpop.f32.mrf.mxu0  ;;  %v3234_v3 = vpop.f32.mrf.mxu1 }
 0x5f8   :  { %v3231_v50 = vadd.f32 %v3230_v40, %v3157_v6 }
 0x5f9   :  { %v3159_v36 = vpop.f32.mrf.mxu0  ;;  %v3238_v41 = vpop.f32.mrf.mxu1 }
 0x5fa   :  { %v3233_v47 = vadd.f32 %v3232_v42, %v3159_v36 }
 0x5fb   :  { %v3161_v20 = vpop.f32.mrf.mxu0  ;;  %v3240_v5 = vpop.f32.mrf.mxu1 }
 0x5fd   :  { %v8422_v35 = vpop.f32.mrf.mxu0 }
 0x5ff   :  { %v8424_v31 = vpop.f32.mrf.mxu0 }
 0x601   :  { %v8426_v60 = vpop.f32.mrf.mxu0 }
 0x603   :  { %v8428_v16 = vpop.f32.mrf.mxu0 }
 0x625   :  { %v3281_v34 = vpop.f32.mrf.mxu0 }
 0x626   :  { %v8432_v62 = vadd.f32 %v3281_v34, %v3209_v22 }
 0x627   :  { %v3283_v55 = vpop.f32.mrf.mxu0 }
 0x628   :  { %v8438_v43 = vadd.f32 %v3283_v55, %v3211_v48  ;;  %v3346_v21 = vmul.f32 %v8432_v62, %v8432_v62  ;;  %v3242_v48 = vpop.f32.mrf.mxu1 }
 0x629   :  { %v3285_v28 = vpop.f32.mrf.mxu0 }
 0x62a   :  { %v8430_v10 = vadd.f32 %v3285_v28, %v3213_v0  ;;  %v3347_v38 = vmul.f32 %v8438_v43, %v8438_v43 }
 0x62b   :  { %v3287_v15 = vpop.f32.mrf.mxu0 }
 0x62c   :  { %v8434_v30 = vadd.f32 %v3287_v15, %v3215_v53  ;;  %v3348_v57 = vmul.f32 %v8430_v10, %v8430_v10  ;;  %v3320_v6 = vadd.f32 %v8430_v10, %v8432_v62  ;;  %v3235_v15 = vadd.f32 %v3234_v3, %v3161_v20 }
 0x62d   :  { %v3291_v9 = vpop.f32.mrf.mxu0 }
 0x62e   :  { %v8436_v63 = vadd.f32 %v3291_v9, %v3219_v2  ;;  %v3349_v39 = vmul.f32 %v8434_v30, %v8434_v30  ;;  %v3362_v33 = vadd.f32 %v3348_v57, %v3346_v21  ;;  %v3333_v36 = vadd.f32 %v8434_v30, %v8438_v43 }
 0x62f   :  { %v3293_v32 = vpop.f32.mrf.mxu0  ;;  %v3243_v21 = vadd.f32 %v3242_v48, %v8426_v60 }
 0x630   :  { %v8442_v49 = vadd.f32 %v3293_v32, %v3221_v14  ;;  %v3350_v7 = vmul.f32 %v8436_v63, %v8436_v63  ;;  %v3321_v42 = vadd.f32 %v3320_v6, %v8436_v63  ;;  %v3375_v0 = vadd.f32 %v3349_v39, %v3347_v38  ;;  %v3244_v38 = vpop.f32.mrf.mxu1 }
 0x631   :  { %v3295_v58 = vpop.f32.mrf.mxu0 }
 0x632   :  { %v8444_v25 = vadd.f32 %v3295_v58, %v3223_v1  ;;  %v3351_v34 = vmul.f32 %v8442_v49, %v8442_v49  ;;  %v3363_v32 = vadd.f32 %v3362_v33, %v3350_v7  ;;  %v3239_v58 = vadd.f32 %v3238_v41, %v8422_v35 }
 0x633   :  { %v3297_v44 = vpop.f32.mrf.mxu0  ;;  %v3334_v20 = vadd.f32 %v3333_v36, %v8442_v49 }
 0x634   :  { %v8452_v27 = vadd.f32 %v3297_v44, %v3225_v24  ;;  %v3352_v55 = vmul.f32 %v8444_v25, %v8444_v25  ;;  %v3322_v3 = vadd.f32 %v3321_v42, %v8444_v25  ;;  %v3376_v1 = vadd.f32 %v3375_v0, %v3351_v34 }
 0x635   :  { %v3301_v26 = vpop.f32.mrf.mxu0  ;;  %v3245_v34 = vadd.f32 %v3244_v38, %v8428_v16 }
 0x636   :  { %v8454_v37 = vadd.f32 %v3301_v26, %v3229_v4  ;;  %v3353_v22 = vmul.f32 %v8452_v27, %v8452_v27  ;;  %v3364_v44 = vadd.f32 %v3363_v32, %v3352_v55  ;;  %v3241_v26 = vadd.f32 %v3240_v5, %v8424_v31 }
 0x637   :  { %v3303_v12 = vpop.f32.mrf.mxu0  ;;  %v3335_v35 = vadd.f32 %v3334_v20, %v8452_v27 }
 0x638   :  { %v8464_v40 = vadd.f32 %v3303_v12, %v3231_v50  ;;  %v3354_v53 = vmul.f32 %v8454_v37, %v8454_v37  ;;  %v3323_v41 = vadd.f32 %v3322_v3, %v8454_v37  ;;  %v3377_v39 = vadd.f32 %v3376_v1, %v3353_v22 }
 0x639   :  { %v3305_v28 = vpop.f32.mrf.mxu0 }
 0x63a   :  { %v8469_v9 = vadd.f32 %v3305_v28, %v3233_v47  ;;  %v3355_v24 = vmul.f32 %v8464_v40, %v8464_v40  ;;  %v3365_v7 = vadd.f32 %v3364_v44, %v3354_v53  ;;  %v3336_v6 = vadd.f32 %v3335_v35, %v8464_v40 }
 0x63b   :  { %v3307_v2 = vpop.f32.mrf.mxu0 }
 0x63c   :  { %v8478_v14 = vadd.f32 %v3307_v2, %v3235_v15  ;;  %v3356_v4 = vmul.f32 %v8469_v9, %v8469_v9  ;;  %v3324_v33 = vadd.f32 %v3323_v41, %v8469_v9  ;;  %v3378_v55 = vadd.f32 %v3377_v39, %v3355_v24 }
 0x63d   :  { %v3311_v57 = vpop.f32.mrf.mxu0 }
 0x63e   :  { %v8487_v50 = vadd.f32 %v3311_v57, %v3239_v58  ;;  %v3357_v12 = vmul.f32 %v8478_v14, %v8478_v14  ;;  %v3366_v60 = vadd.f32 %v3365_v7, %v3356_v4  ;;  %v3337_v15 = vadd.f32 %v3336_v6, %v8478_v14 }
 0x63f   :  { %v3313_v47 = vpop.f32.mrf.mxu0 }
 0x640   :  { %v3358_v31 = vmul.f32 %v8487_v50, %v8487_v50  ;;  %v8496_v5 = vadd.f32 %v3313_v47, %v3241_v26  ;;  %v3325_v36 = vadd.f32 %v3324_v33, %v8487_v50  ;;  %v3379_v32 = vadd.f32 %v3378_v55, %v3357_v12 }
 0x641   :  { %v3315_v28 = vpop.f32.mrf.mxu0 }
 0x642   :  { %v3359_v42 = vmul.f32 %v8496_v5, %v8496_v5  ;;  %v8503_v0 = vadd.f32 %v3315_v28, %v3243_v21  ;;  %v3367_v22 = vadd.f32 %v3366_v60, %v3358_v31  ;;  %v3338_v2 = vadd.f32 %v3337_v15, %v8496_v5 }
 0x643   :  { %v3317_v53 = vpop.f32.mrf.mxu0 }
 0x644   :  { %v3326_v58 = vadd.f32 %v3325_v36, %v8503_v0  ;;  %v3360_v16 = vmul.f32 %v8503_v0, %v8503_v0  ;;  %v8509_v48 = vadd.f32 %v3317_v53, %v3245_v34  ;;  %v3380_v20 = vadd.f32 %v3379_v32, %v3359_v42 }
 0x646   :  { %v3327_v3 = vrot.slane %v3326_v58, 4  ;;  %v3368_v1 = vadd.f32 %v3367_v22, %v3360_v16  ;;  %v3339_v44 = vadd.f32 %v3338_v2, %v8509_v48  ;;  %v3361_v24 = vmul.f32 %v8509_v48, %v8509_v48  ;;  %v7091_v2 = vld [vmem:[#allocation2 + $0xa70] ss:$8 sps:$4 sm:$0xff]  }
 0x647   :  { %v7094_v16 = vld [vmem:[#allocation2 + $0x970] ss:$8 sps:$4 sm:$0xff]  }
 0x648   :  { %v3328_v4 = vadd.f32 %v3327_v3, %v3326_v58  ;;  %v3369_v57 = vrot.slane %v3368_v1, 4  ;;  %v3340_v26 = vrot.slane %v3339_v44, 4  ;;  %v3381_v35 = vadd.f32 %v3380_v20, %v3361_v24  ;;  %v7093_v58 = vld [vmem:[#allocation2 + $0xa74] ss:$8 sps:$4 sm:$0xff]   ;;  %v7099_v3 = vld [vmem:[#allocation2 + $0xa64] ss:$8 sps:$4 sm:$0xff]  }
 0x649   :  { %v7096_v20 = vld [vmem:[#allocation2 + $0x974] ss:$8 sps:$4 sm:$0xff]   ;;  %4338 = vmatprep.subr.bf16.mxu0 %v7093_v58  ;;  %v7100_v24 = vld [vmem:[#allocation2 + $0x960] ss:$8 sps:$4 sm:$0xff]   ;;  %v7138_v58 = vld [vmem:[#allocation2 + $0x904] ss:$8 sps:$4 sm:$0xff]  }
 0x64a   :  { %v3329_v41 = vrot.slane %v3328_v4, 2  ;;  %v3370_v21 = vadd.f32 %v3369_v57, %v3368_v1  ;;  %v3382_v39 = vrot.slane %v3381_v35, 4  ;;  %v3341_v47 = vadd.f32 %v3340_v26, %v3339_v44  ;;  %v7102_v1 = vld [vmem:[#allocation2 + $0x964] ss:$8 sps:$4 sm:$0xff]   ;;  %4339 = vmatpush1.bf16.msra.mxu0 %v7091_v2  ;;  %4265 = vmatprep.subr.bf16.mxu1 %v7096_v20  ;;  %v7097_v44 = vld [vmem:[#allocation2 + $0xa60] ss:$8 sps:$4 sm:$0xff]  }
 0x64b   :  { %4266 = vmatpush1.bf16.msra.mxu1 %v7094_v16  ;;  %4340 = vmatprep.subr.bf16.mxu0 %v7099_v3  ;;  %v7108_v57 = vld [vmem:[#allocation2 + $0x954] ss:$8 sps:$4 sm:$0xff]   ;;  %v7103_v26 = vld [vmem:[#allocation2 + $0xa50] ss:$8 sps:$4 sm:$0xff]   ;;  %v7135_v2 = vld [vmem:[#allocation2 + $0xa04] ss:$8 sps:$4 sm:$0xff]  }
 0x64c   :  { %v3330_v7 = vadd.f32 %v3329_v41, %v3328_v4  ;;  %v3371_v12 = vrot.slane %v3370_v21, 2  ;;  %v3383_v38 = vadd.f32 %v3382_v39, %v3381_v35  ;;  %v3342_v31 = vrot.slane %v3341_v47, 2  ;;  %v7105_v4 = vld [vmem:[#allocation2 + $0xa54] ss:$8 sps:$4 sm:$0xff]   ;;  %4267 = vmatprep.subr.bf16.mxu1 %v7102_v1  ;;  %v7106_v35 = vld [vmem:[#allocation2 + $0x950] ss:$8 sps:$4 sm:$0xff]  }
 0x64d   :  { %v7111_v41 = vld [vmem:[#allocation2 + $0xa44] ss:$8 sps:$4 sm:$0xff]   ;;  %v7109_v39 = vld [vmem:[#allocation2 + $0xa40] ss:$8 sps:$4 sm:$0xff]   ;;  %v7141_v3 = vld [vmem:[#allocation2 + $0xaf4] ss:$8 sps:$4 sm:$0xff]  }
 0x64e   :  { %v3331_v6 = vrot.slane %v3330_v7, 1  ;;  %v3372_v33 = vadd.f32 %v3371_v12, %v3370_v21  ;;  %v3384_v60 = vrot.slane %v3383_v38, 2  ;;  %v3343_v15 = vadd.f32 %v3342_v31, %v3341_v47  ;;  %4341 = vmatpush1.bf16.msra.mxu0 %v7097_v44  ;;  %v7114_v21 = vld [vmem:[#allocation2 + $0x944] ss:$8 sps:$4 sm:$0xff]   ;;  %v7117_v12 = vld [vmem:[#allocation2 + $0xa34] ss:$8 sps:$4 sm:$0xff]  }
 0x64f   :  { %4268 = vmatpush1.bf16.msra.mxu1 %v7100_v24  ;;  %4342 = vmatprep.subr.bf16.mxu0 %v7105_v4  ;;  %v7120_v47 = vld [vmem:[#allocation2 + $0x934] ss:$8 sps:$4 sm:$0xff]   ;;  %v7126_v31 = vld [vmem:[#allocation2 + $0x924] ss:$8 sps:$4 sm:$0xff]   ;;  %v7133_v16 = vld [vmem:[#allocation2 + $0xa00] ss:$8 sps:$4 sm:$0xff]  }
 0x650   :  { %v8514_v34 = vadd.f32 %v3331_v6, %v3330_v7  ;;  %v3373_v55 = vrot.slane %v3372_v33, 1  ;;  %v3385_v36 = vadd.f32 %v3384_v60, %v3383_v38  ;;  %v3344_v42 = vrot.slane %v3343_v15, 1  ;;  %4269 = vmatprep.subr.bf16.mxu1 %v7108_v57  ;;  %v7112_v7 = vld [vmem:[#allocation2 + $0x940] ss:$8 sps:$4 sm:$0xff]   ;;  %v7115_v38 = vld [vmem:[#allocation2 + $0xa30] ss:$8 sps:$4 sm:$0xff]  }
 0x651   :  { %v7118_v6 = vld [vmem:[#allocation2 + $0x930] ss:$8 sps:$4 sm:$0xff]   ;;  %v7124_v60 = vld [vmem:[#allocation2 + $0x920] ss:$8 sps:$4 sm:$0xff]   ;;  %v7144_v1 = vld [vmem:[#allocation2 + $0x9f4] ss:$8 sps:$4 sm:$0xff]  }
 0x652   :  { %3389 = vrot.lane.b32.xlu0 %v8514_v34, %s7486_s0  ;;  %v8518_v28 = vadd.f32 %v3373_v55, %v3372_v33  ;;  %v3386_v32 = vrot.slane %v3385_v36, 1  ;;  %v8530_v22 = vadd.f32 %v3344_v42, %v3343_v15  ;;  %4343 = vmatpush1.bf16.msra.mxu0 %v7103_v26  ;;  %v7123_v33 = vld [vmem:[#allocation2 + $0xa24] ss:$8 sps:$4 sm:$0xff]   ;;  %v7121_v55 = vld [vmem:[#allocation2 + $0xa20] ss:$8 sps:$4 sm:$0xff]  }
 0x653   :  { %4270 = vmatpush1.bf16.msra.mxu1 %v7106_v35  ;;  %4344 = vmatprep.subr.bf16.mxu0 %v7111_v41  ;;  %v7129_v15 = vld [vmem:[#allocation2 + $0xa14] ss:$8 sps:$4 sm:$0xff]   ;;  %v7127_v42 = vld [vmem:[#allocation2 + $0xa10] ss:$8 sps:$4 sm:$0xff]   ;;  %v7136_v20 = vld [vmem:[#allocation2 + $0x900] ss:$8 sps:$4 sm:$0xff]  }
 0x654   :  { %3394 = vrot.lane.b32.xlu1 %v8518_v28, %s7486_s0  ;;  %v8534_v53 = vadd.f32 %v3386_v32, %v3385_v36  ;;  %4271 = vmatprep.subr.bf16.mxu1 %v7114_v21  ;;  %v7132_v36 = vld [vmem:[#allocation2 + $0x914] ss:$8 sps:$4 sm:$0xff]   ;;  %v7130_v32 = vld [vmem:[#allocation2 + $0x910] ss:$8 sps:$4 sm:$0xff]   ;;  %v7147_v4 = vld [vmem:[#allocation2 + $0xae4] ss:$8 sps:$4 sm:$0xff]  }
 0x655   :  { %v7139_v44 = vld [vmem:[#allocation2 + $0xaf0] ss:$8 sps:$4 sm:$0xff]   ;;  %v7150_v57 = vld [vmem:[#allocation2 + $0x9e4] ss:$8 sps:$4 sm:$0xff]   ;;  %v7145_v26 = vld [vmem:[#allocation2 + $0xae0] ss:$8 sps:$4 sm:$0xff]  }
 0x656   :  { %3398 = vrot.lane.b32.xlu0 %v8514_v34, %s7483_s1  ;;  %4345 = vmatpush1.bf16.msra.mxu0 %v7109_v39  ;;  %v7142_v24 = vld [vmem:[#allocation2 + $0x9f0] ss:$8 sps:$4 sm:$0xff]   ;;  %v7148_v35 = vld [vmem:[#allocation2 + $0x9e0] ss:$8 sps:$4 sm:$0xff]   ;;  %v7153_v41 = vld [vmem:[#allocation2 + $0xad4] ss:$8 sps:$4 sm:$0xff]  }
 0x657   :  { %4272 = vmatpush1.bf16.msra.mxu1 %v7112_v7  ;;  %4346 = vmatprep.subr.bf16.mxu0 %v7117_v12  ;;  %v7156_v21 = vld [vmem:[#allocation2 + $0x9d4] ss:$8 sps:$4 sm:$0xff]   ;;  %v7151_v39 = vld [vmem:[#allocation2 + $0xad0] ss:$8 sps:$4 sm:$0xff]  }
 0x658   :  { %3402 = vrot.lane.b32.xlu1 %v8518_v28, %s7483_s1  ;;  %4273 = vmatprep.subr.bf16.mxu1 %v7120_v47  ;;  %v7154_v7 = vld [vmem:[#allocation2 + $0x9d0] ss:$8 sps:$4 sm:$0xff]  }
 0x65a   :  { %3406 = vrot.lane.b32.xlu0 %v8514_v34, %s7487_s17  ;;  %4347 = vmatpush1.bf16.msra.mxu0 %v7115_v38 }
 0x65b   :  { %4274 = vmatpush1.bf16.msra.mxu1 %v7118_v6  ;;  %4348 = vmatprep.subr.bf16.mxu0 %v7123_v33 }
 0x65c   :  { %3410 = vrot.lane.b32.xlu1 %v8518_v28, %s7487_s17  ;;  %4275 = vmatprep.subr.bf16.mxu1 %v7126_v31 }
 0x65e   :  { %3417 = vrot.lane.b32.xlu0 %v8530_v22, %s7486_s0  ;;  %4349 = vmatpush1.bf16.msra.mxu0 %v7121_v55 }
 0x65f   :  { %4276 = vmatpush1.bf16.msra.mxu1 %v7124_v60  ;;  %4350 = vmatprep.subr.bf16.mxu0 %v7129_v15 }
 0x660   :  { %3422 = vrot.lane.b32.xlu1 %v8534_v53, %s7486_s0  ;;  %4277 = vmatprep.subr.bf16.mxu1 %v7132_v36 }
 0x662   :  { %3426 = vrot.lane.b32.xlu0 %v8530_v22, %s7483_s1  ;;  %4351 = vmatpush1.bf16.msra.mxu0 %v7127_v42 }
 0x663   :  { %4278 = vmatpush1.bf16.msra.mxu1 %v7130_v32  ;;  %4352 = vmatprep.subr.bf16.mxu0 %v7135_v2 }
 0x664   :  { %3430 = vrot.lane.b32.xlu1 %v8534_v53, %s7483_s1  ;;  %4279 = vmatprep.subr.bf16.mxu1 %v7138_v58 }
 0x666   :  { %3434 = vrot.lane.b32.xlu0 %v8530_v22, %s7487_s17  ;;  %4353 = vmatpush1.bf16.msra.mxu0 %v7133_v16 }
 0x667   :  { %4280 = vmatpush1.bf16.msra.mxu1 %v7136_v20  ;;  %4354 = vmatprep.subr.bf16.mxu0 %v7141_v3 }
 0x668   :  { %3438 = vrot.lane.b32.xlu1 %v8534_v53, %s7487_s17  ;;  %4281 = vmatprep.subr.bf16.mxu1 %v7144_v1 }
 0x66a   :  { %4355 = vmatpush2.bf16.msra.mxu0 %v7139_v44 }
 0x66b   :  { %4282 = vmatpush2.bf16.msra.mxu1 %v7142_v24  ;;  %4356 = vmatprep.subr.bf16.mxu0 %v7147_v4 }
 0x66c   :  { %4283 = vmatprep.subr.bf16.mxu1 %v7150_v57 }
 0x66e   :  { %4357 = vmatpush2.bf16.msra.mxu0 %v7145_v26 }
 0x66f   :  { %4284 = vmatpush2.bf16.msra.mxu1 %v7148_v35  ;;  %4358 = vmatprep.subr.bf16.mxu0 %v7153_v41 }
 0x670   :  { %4285 = vmatprep.subr.bf16.mxu1 %v7156_v21 }
 0x672   :  { %4359 = vmatpush2.bf16.msra.mxu0 %v7151_v39 }
 0x673   :  { %4286 = vmatpush2.bf16.msra.mxu1 %v7154_v7 }
 0x6c4   :  { %v3390_v12 = vpop.permute.xlu0 %3389 }
 0x6c5   :  { %v3392_v6 = vadd.f32 %v3390_v12, %v8514_v34 }
 0x6c6   :  { %v3395_v47 = vpop.permute.xlu1 %3394 }
 0x6c7   :  { %v3397_v31 = vadd.f32 %v3395_v47, %v8518_v28 }
 0x6c8   :  { %v3399_v38 = vpop.permute.xlu0 %3398 }
 0x6c9   :  { %v3401_v55 = vadd.f32 %v3399_v38, %v3392_v6  ;;  %v7159_v38 = vld [vmem:[#allocation2 + $0xac4] ss:$8 sps:$4 sm:$0xff]  }
 0x6ca   :  { %v3403_v33 = vpop.permute.xlu1 %3402  ;;  %v7162_v6 = vld [vmem:[#allocation2 + $0x9c4] ss:$8 sps:$4 sm:$0xff]   ;;  %4360 = vmatprep.subr.bf16.mxu0 %v7159_v38 }
 0x6cb   :  { %v3405_v15 = vadd.f32 %v3403_v33, %v3397_v31  ;;  %4287 = vmatprep.subr.bf16.mxu1 %v7162_v6  ;;  %v7163_v33 = vld [vmem:[#allocation2 + $0xab0] ss:$8 sps:$4 sm:$0xff]   ;;  %v7165_v31 = vld [vmem:[#allocation2 + $0xab4] ss:$8 sps:$4 sm:$0xff]  }
 0x6cc   :  { %v3407_v60 = vpop.permute.xlu0 %3406 }
 0x6cd   :  { %v3409_v36 = vadd.f32 %v3407_v60, %v3401_v55  ;;  %v7166_v55 = vld [vmem:[#allocation2 + $0x9b0] ss:$8 sps:$4 sm:$0xff]   ;;  %v7168_v60 = vld [vmem:[#allocation2 + $0x9b4] ss:$8 sps:$4 sm:$0xff]  }
 0x6ce   :  { %v3411_v42 = vpop.permute.xlu1 %3410 }
 0x6cf   :  { %v3413_v32 = vadd.f32 %v3411_v42, %v3405_v15  ;;  %v3414_v58 = vadd.f32 %v3409_v36, %v8530_v22  ;;  %v7157_v22 = vld [vmem:[#allocation2 + $0xac0] ss:$8 sps:$4 sm:$0xff]  }
 0x6d0   :  { %v3418_v2 = vpop.permute.xlu0 %3417  ;;  %4361 = vmatpush2.bf16.msra.mxu0 %v7157_v22  ;;  %v3447_v15 = vld [vmem:[#allocation4 + $0x2] sm:$0x1] }
 0x6d1   :  { %v3415_v20 = vadd.f32 %v3413_v32, %v8534_v53  ;;  %v3420_v1 = vadd.f32 %v3418_v2, %v3414_v58  ;;  %v7160_v53 = vld [vmem:[#allocation2 + $0x9c0] ss:$8 sps:$4 sm:$0xff]   ;;  %4362 = vmatprep.subr.bf16.mxu0 %v7165_v31  ;;  %v7171_v32 = vld [vmem:[#allocation2 + $0xaa4] ss:$8 sps:$4 sm:$0xff]  }
 0x6d2   :  { %v3423_v16 = vpop.permute.xlu1 %3422  ;;  %4288 = vmatpush2.bf16.msra.mxu1 %v7160_v53  ;;  %v7169_v42 = vld [vmem:[#allocation2 + $0xaa0] ss:$8 sps:$4 sm:$0xff]  }
 0x6d3   :  { %v3425_v24 = vadd.f32 %v3423_v16, %v3415_v20  ;;  %4289 = vmatprep.subr.bf16.mxu1 %v7168_v60  ;;  %v7172_v58 = vld [vmem:[#allocation2 + $0x9a0] ss:$8 sps:$4 sm:$0xff]   ;;  %v7174_v16 = vld [vmem:[#allocation2 + $0x9a4] ss:$8 sps:$4 sm:$0xff]   ;;  %v7177_v20 = vld [vmem:[#allocation2 + $0xa94] ss:$8 sps:$4 sm:$0xff]  }
 0x6d4   :  { %v3427_v3 = vpop.permute.xlu0 %3426  ;;  %4363 = vmatpush2.bf16.msra.mxu0 %v7163_v33 }
 0x6d5   :  { %v3429_v34 = vadd.f32 %v3427_v3, %v3420_v1  ;;  %v3451_v3 = vld [vmem:[#allocation6 + $0x2] sm:$0x1]  ;;  %4364 = vmatprep.subr.bf16.mxu0 %v7171_v32  ;;  %v7180_v1 = vld [vmem:[#allocation2 + $0x994] ss:$8 sps:$4 sm:$0xff]  }
 0x6d6   :  { %v3431_v44 = vpop.permute.xlu1 %3430  ;;  %4290 = vmatpush2.bf16.msra.mxu1 %v7166_v55 }
 0x6d7   :  { %v3433_v57 = vadd.f32 %v3431_v44, %v3425_v24  ;;  %4291 = vmatprep.subr.bf16.mxu1 %v7174_v16  ;;  %v7175_v24 = vld [vmem:[#allocation2 + $0xa90] ss:$8 sps:$4 sm:$0xff]  }
 0x6d8   :  { %v3435_v4 = vpop.permute.xlu0 %3434  ;;  %4365 = vmatpush2.bf16.msra.mxu0 %v7169_v42 }
 0x6d9   :  { %v3437_v28 = vadd.f32 %v3435_v4, %v3429_v34  ;;  %4366 = vmatprep.subr.bf16.mxu0 %v7177_v20  ;;  %v7178_v4 = vld [vmem:[#allocation2 + $0x990] ss:$8 sps:$4 sm:$0xff]  }
 0x6da   :  { %v3439_v26 = vpop.permute.xlu1 %3438  ;;  %4292 = vmatpush2.bf16.msra.mxu1 %v7172_v58 }
 0x6db   :  { %v3442_v35 = vmul.f32 0.001953125, %v3437_v28  ;;  %v3441_v41 = vadd.f32 %v3439_v26, %v3433_v57  ;;  %v7183_v57 = vld [vmem:[#allocation2 + $0xa84] ss:$8 sps:$4 sm:$0xff]   ;;  %4293 = vmatprep.subr.bf16.mxu1 %v7180_v1  ;;  %v7181_v26 = vld [vmem:[#allocation2 + $0xa80] ss:$8 sps:$4 sm:$0xff]  }
 0x6dc   :  { %v7186_v28 = vld [vmem:[#allocation2 + $0x984] ss:$8 sps:$4 sm:$0xff]   ;;  %4367 = vmatpush2.bf16.msra.mxu0 %v7175_v24 }
 0x6dd   :  { %v3444_v21 = vmul.f32 %v3442_v35, %v3442_v35  ;;  %v3443_v39 = vmul.f32 0.001953125, %v3441_v41  ;;  %4368 = vmatprep.subr.bf16.mxu0 %v7183_v57  ;;  %v7184_v41 = vld [vmem:[#allocation2 + $0x980] ss:$8 sps:$4 sm:$0xff]  }
 0x6de   :  { %4294 = vmatpush2.bf16.msra.mxu1 %v7178_v4 }
 0x6df   :  { %v3445_v7 = vsub.f32 %v3443_v39, %v3444_v21  ;;  %4295 = vmatprep.subr.bf16.mxu1 %v7186_v28 }
 0x6e0   :  { %4369 = vmatpush2.bf16.msra.mxu0 %v7181_v26 }
 0x6e1   :  { %v3446_v12 = vmax.f32 %v3445_v7, 0.0 }
 0x6e2   :  { %4296 = vmatpush2.bf16.msra.mxu1 %v7184_v41 }
 0x6e3   :  { %v3448_v47 = vadd.f32 1e-05, %v3446_v12 }
 0x6e5   :  { %7385 = vrsqrt.f32 %v3448_v47 }
 0x6f2   :  { %v7386_v36 = vpop.eup %7385 }
 0x6f3   :  { %v3450_v2 = vmul.f32 %v7386_v36, %v3447_v15 }
 0x6f5   :  { %3458 = vrot.lane.b32.xlu1 %v3450_v2, %s7483_s1  ;;  %3455 = vrot.lane.b32.xlu0 %v3450_v2, %s7487_s17  ;;  %v3452_v44 = vmul.f32 %v3450_v2, %v3442_v35  ;;  %v7189_v35 = vld [vmem:[#allocation2 + $0xb74] ss:$8 sps:$4 sm:$0xff]  }
 0x6f6   :  { %4411 = vmatprep.subr.bf16.mxu1 %v7189_v35 }
 0x6f7   :  { %v3453_v34 = vsub.f32 %v3451_v3, %v3452_v44 }
 0x6f9   :  { %3461 = vrot.lane.b32.xlu0 %v3450_v2, %s7486_s0  ;;  %3468 = vrot.lane.b32.xlu1 %v3453_v34, %s7487_s17 }
 0x6fd   :  { %3471 = vrot.lane.b32.xlu0 %v3453_v34, %s7483_s1  ;;  %3474 = vrot.lane.b32.xlu1 %v3453_v34, %s7486_s0 }
 0x767   :  { %v3459_v21 = vpop.permute.xlu1 %3458  ;;  %v3456_v39 = vpop.permute.xlu0 %3455 }
 0x768   :  { %v3464_v7 = vsel %vm1165_vm6, %v3450_v2, %v3456_v39 }
 0x769   :  { %v3465_v12 = vsel %vm1167_vm7, %v3464_v7, %v3459_v21 }
 0x76b   :  { %v3462_v47 = vpop.permute.xlu0 %3461  ;;  %v3469_v22 = vpop.permute.xlu1 %3468 }
 0x76c   :  { %v3466_v38 = vsel %vm1169_vm8, %v3465_v12, %v3462_v47  ;;  %v3477_v6 = vsel %vm1165_vm6, %v3453_v34, %v3469_v22 }
 0x76d   :  { %v3483_v53 = vrot.slane %v3466_v38, %v7893_v8 }
 0x76f   :  { %v3472_v33 = vpop.permute.xlu0 %3471  ;;  %v3475_v31 = vpop.permute.xlu1 %3474  ;;  %v3485_v55 = vmul.f32 %v3483_v53, %v8438_v43  ;;  %v3487_v60 = vmul.f32 %v3483_v53, %v8434_v30  ;;  %v3484_v36 = vmul.f32 %v3483_v53, %v8432_v62  ;;  %v3486_v42 = vmul.f32 %v3483_v53, %v8430_v10 }
 0x770   :  { %v3478_v15 = vsel %vm1167_vm7, %v3477_v6, %v3472_v33  ;;  %v3489_v32 = vmul.f32 %v3483_v53, %v8442_v49  ;;  %v3491_v58 = vmul.f32 %v3483_v53, %v8452_v27  ;;  %v3488_v16 = vmul.f32 %v3483_v53, %v8436_v63 }
 0x771   :  { %v3479_v2 = vsel %vm1169_vm8, %v3478_v15, %v3475_v31  ;;  %v3490_v20 = vmul.f32 %v3483_v53, %v8444_v25  ;;  %v3493_v30 = vmul.f32 %v3483_v53, %v8464_v40  ;;  %v3495_v3 = vmul.f32 %v3483_v53, %v8478_v14  ;;  %v7187_v31 = vld [vmem:[#allocation2 + $0xb70] ss:$8 sps:$4 sm:$0xff]  }
 0x772   :  { %v8572_v43 = vrot.slane %v3479_v2, %v7893_v8  ;;  %v3492_v62 = vmul.f32 %v3483_v53, %v8454_v37  ;;  %v3494_v10 = vmul.f32 %v3483_v53, %v8469_v9  ;;  %v3497_v49 = vmul.f32 %v3483_v53, %v8496_v5 }
 0x773   :  { %v8580_v1 = vmul.f32 %v3483_v53, %v8509_v48  ;;  %v8583_v63 = vmul.f32 %v3483_v53, %v8487_v50 }
 0x774   :  { %v3505_v25 = vadd.f32 %v8572_v43, %v3485_v55  ;;  %v3507_v27 = vadd.f32 %v8572_v43, %v3487_v60  ;;  %v3504_v40 = vadd.f32 %v8572_v43, %v3484_v36  ;;  %v3506_v14 = vadd.f32 %v8572_v43, %v3486_v42 }
 0x775   :  { %v3509_v37 = vadd.f32 %v8572_v43, %v3489_v32  ;;  %v3511_v9 = vadd.f32 %v8572_v43, %v3491_v58  ;;  %v3508_v5 = vadd.f32 %v8572_v43, %v3488_v16  ;;  %v3510_v48 = vadd.f32 %v8572_v43, %v3490_v20  ;;  %v7192_v32 = vld [vmem:[#allocation2 + $0xb64] ss:$8 sps:$4 sm:$0xff]  }
 0x776   :  { %v3521_v44 = vadd.f32 %v3505_v25, %v7938_v19  ;;  %v3523_v50 = vadd.f32 %v3507_v27, %v7940_v45  ;;  %v3520_v24 = vadd.f32 %v3504_v40, %v7942_v54  ;;  %v3522_v34 = vadd.f32 %v3506_v14, %v7944_v46  ;;  %v7190_v14 = vld [vmem:[#allocation2 + $0xb60] ss:$8 sps:$4 sm:$0xff]  }
 0x777   :  { %v3525_v4 = vadd.f32 %v3509_v37, %v7946_v51  ;;  %v3527_v57 = vadd.f32 %v3511_v9, %v7948_v52  ;;  %v3524_v28 = vadd.f32 %v3508_v5, %v7950_v61  ;;  %v3526_v26 = vadd.f32 %v3510_v48, %v7963_v23  ;;  %v7195_v5 = vld [vmem:[#allocation2 + $0xb54] ss:$8 sps:$4 sm:$0xff]  }
 0x778   :  { %v8601_v41 = vmax.f32 %v3521_v44, 0.0  ;;  %v8603_v35 = vmax.f32 %v3523_v50, 0.0  ;;  %v8605_v21 = vmax.f32 %v3520_v24, 0.0  ;;  %v8607_v19 = vmax.f32 %v3522_v34, 0.0 }
 0x779   :  { %v8609_v45 = vmax.f32 %v3525_v4, 0.0  ;;  %v8611_v54 = vmax.f32 %v3527_v57, 0.0  ;;  %v8613_v46 = vmax.f32 %v3524_v28, 0.0  ;;  %v3498_v51 = vmul.f32 %v3483_v53, %v8503_v0 }
 0x77a   :  { %v3667_v52 = vpack.c.bf16 %v8603_v35, %v8601_v41  ;;  %v3666_v61 = vpack.c.bf16 %v8607_v19, %v8605_v21  ;;  %v3569_v23 = vrot.slane %v8601_v41, 7  ;;  %v3572_v39 = vrot.slane %v8603_v35, 7 }
 0x77b   :  { %v3568_v7 = vrot.slane %v8605_v21, 7  ;;  %v3570_v12 = vrot.slane %v8607_v19, 7  ;;  %v3576_v47 = vrot.slane %v8609_v45, 7  ;;  %v8625_v22 = vmax.f32 %v3526_v26, 0.0 }
 0x77c   :  { %4370 = vmatprep.mubr.bf16.mxu0 %v3667_v52  ;;  %v3673_v0 = vpack.c.bf16 %v8611_v54, %v8609_v45  ;;  %v3573_v38 = vsel %vm104_vm0, %v3569_v23, %v3572_v39  ;;  %v3580_v53 = vrot.slane %v8611_v54, 7  ;;  %v3513_v6 = vadd.f32 %v8572_v43, %v3493_v30 }
 0x77d   :  { %4371 = vmatmul.mubr.bf16.vlgmr.msra.gmra.mxu0 %v3666_v61  ;;  %v6491_v33 = vpack.c.bf16 %v3573_v38, %v3569_v23  ;;  %v3571_v55 = vsel %vm104_vm0, %v3568_v7, %v3570_v12  ;;  %v3577_v60 = vsel %vm104_vm0, %v3572_v39, %v3576_v47  ;;  %v3515_v15 = vadd.f32 %v8572_v43, %v3495_v3  ;;  %v7198_v23 = vld [vmem:[#allocation2 + $0xb44] ss:$8 sps:$4 sm:$0xff]  }
 0x77e   :  { %4380 = vmatprep.mubr.bf16.mxu0 %v3673_v0  ;;  %v6495_v36 = vpack.c.bf16 %v3571_v55, %v3568_v7  ;;  %v3581_v42 = vsel %vm104_vm0, %v3576_v47, %v3580_v53  ;;  %v3529_v2 = vadd.f32 %v3513_v6, %v7974_v17  ;;  %v3574_v58 = vrot.slane %v8613_v46, 7  ;;  %v9319_v47 = vld [vmem:[#allocation13_spill] sm:$0xff]  ;;  %v9320_v0 = vld [vmem:[#allocation14_spill] sm:$0xff] }
 0x77f   :  { %6492 = vmatprep.mubr.msk.bf16.mxu1 %vm7562_vm3, %v6491_v33  ;;  %v3671_v16 = vpack.c.bf16 %v3581_v42, %v3577_v60  ;;  %v3531_v20 = vadd.f32 %v3515_v15, %v7979_v29  ;;  %v3578_v30 = vrot.slane %v8625_v22, 7  ;;  %v3512_v25 = vadd.f32 %v8572_v43, %v3492_v62  ;;  %v7196_v53 = vld [vmem:[#allocation2 + $0xb40] ss:$8 sps:$4 sm:$0xff]   ;;  %v7201_v6 = vld [vmem:[#allocation2 + $0xb34] ss:$8 sps:$4 sm:$0xff]  }
 0x780   :  { %6496 = vmatmul.mubr.msk.bf16.vlgmr.msra.gmra.mxu1 %vm7562_vm3, %v6495_v36  ;;  %v3672_v3 = vpack.c.bf16 %v8625_v22, %v8613_v46  ;;  %v8647_v27 = vmax.f32 %v3529_v2, 0.0  ;;  %v3514_v17 = vadd.f32 %v8572_v43, %v3494_v10  ;;  %v3517_v40 = vadd.f32 %v8572_v43, %v3497_v49 }
 0x781   :  { %4412 = vmatpush1.bf16.msra.mxu1 %v7187_v31  ;;  %4307 = vmatprep.mubr.bf16.mxu1 %v3671_v16  ;;  %v8651_v29 = vmax.f32 %v3531_v20, 0.0  ;;  %v3575_v37 = vsel %vm104_vm0, %v3570_v12, %v3574_v58  ;;  %v3528_v62 = vadd.f32 %v3512_v25, %v7991_v11  ;;  %v3519_v9 = vadd.f32 %v8572_v43, %v8580_v1  ;;  %v9317_v11 = vld [vmem:[#allocation12_spill] sm:$0xff] }
 0x782   :  { %4413 = vmatprep.subr.bf16.mxu1 %v7192_v32  ;;  %v3579_v48 = vsel %vm104_vm0, %v3574_v58, %v3578_v30  ;;  %v3583_v10 = vrot.slane %v8647_v27, 7  ;;  %v3530_v49 = vadd.f32 %v3514_v17, %v7998_v56  ;;  %v3533_v44 = vadd.f32 %v3517_v40, %v8003_v18  ;;  %v7193_v18 = vld [vmem:[#allocation2 + $0xb50] ss:$8 sps:$4 sm:$0xff]   ;;  %v7204_v58 = vld [vmem:[#allocation2 + $0xb24] ss:$8 sps:$4 sm:$0xff]  }
 0x783   :  { %9315 = vst [vmem:[#allocation15_spill] sm:$0xff] %v8651_v29  ;;  %v3679_v50 = vpack.c.bf16 %v8651_v29, %v8647_v27  ;;  %v3586_v24 = vrot.slane %v8651_v29, 7  ;;  %v8664_v34 = vmax.f32 %v3528_v62, 0.0  ;;  %v3535_v4 = vadd.f32 %v3519_v9, %v9317_v11  ;;  %v7199_v32 = vld [vmem:[#allocation2 + $0xb30] ss:$8 sps:$4 sm:$0xff]  }
 0x784   :  { %v8667_v1 = vmax.f32 %v3530_v49, 0.0  ;;  %v8669_v57 = vmax.f32 %v3533_v44, 0.0  ;;  %v3516_v28 = vadd.f32 %v8572_v43, %v8583_v63  ;;  %v3518_v56 = vadd.f32 %v8572_v43, %v3498_v51  ;;  %v7202_v40 = vld [vmem:[#allocation2 + $0xb20] ss:$8 sps:$4 sm:$0xff]   ;;  %v7210_v44 = vld [vmem:[#allocation2 + $0xb04] ss:$8 sps:$4 sm:$0xff]  }
 0x785   :  { %9316 = vst [vmem:[#allocation16_spill] sm:$0xff] %v8664_v34  ;;  %4414 = vmatpush1.bf16.msra.mxu1 %v7190_v14  ;;  %4381 = vmatmul.mubr.bf16.gmra.mxu0 %v3672_v3  ;;  %v3587_v26 = vsel %vm104_vm0, %v3583_v10, %v3586_v24  ;;  %v8675_v52 = vmax.f32 %v3535_v4, 0.0  ;;  %v3670_v61 = vpack.c.bf16 %v3579_v48, %v3575_v37  ;;  %v3582_v39 = vrot.slane %v8664_v34, 7  ;;  %v7207_v14 = vld [vmem:[#allocation2 + $0xb14] ss:$8 sps:$4 sm:$0xff]  }
 0x786   :  { %9318 = vst [vmem:[#allocation12_spill] sm:$0xff] %v8667_v1  ;;  %4390 = vmatprep.mubr.bf16.mxu0 %v3679_v50  ;;  %4415 = vmatprep.subr.bf16.mxu1 %v7195_v5  ;;  %v6499_v7 = vpack.c.bf16 %v3587_v26, %v3583_v10  ;;  %v3584_v12 = vrot.slane %v8667_v1, 7  ;;  %v3532_v63 = vadd.f32 %v3516_v28, %v9319_v47  ;;  %v3590_v51 = vrot.slane %v8669_v57, 7  ;;  %v7205_v10 = vld [vmem:[#allocation2 + $0xb10] ss:$8 sps:$4 sm:$0xff]  }
 0x787   :  { %v3534_v43 = vadd.f32 %v3518_v56, %v9320_v0  ;;  %v3594_v38 = vrot.slane %v8675_v52, 7  ;;  %v3678_v33 = vpack.c.bf16 %v8667_v1, %v8664_v34  ;;  %v3685_v15 = vpack.c.bf16 %v8675_v52, %v8669_v57  ;;  %v7213_v11 = vld [vmem:[#allocation2 + $0xbf4] ss:$8 sps:$4 sm:$0xff]   ;;  %v7211_v4 = vld [vmem:[#allocation2 + $0xbf0] ss:$8 sps:$4 sm:$0xff]  }
 0x788   :  { %4308 = vmatmul.mubr.bf16.gmra.mxu1 %v3670_v61  ;;  %v3585_v31 = vsel %vm104_vm0, %v3582_v39, %v3584_v12  ;;  %v8688_v55 = vmax.f32 %v3532_v63, 0.0  ;;  %v3591_v36 = vsel %vm104_vm0, %v3586_v24, %v3590_v51  ;;  %v3619_v25 = vrot.slane %v8601_v41, 1  ;;  %v7208_v24 = vld [vmem:[#allocation2 + $0xb00] ss:$8 sps:$4 sm:$0xff]   ;;  %v7216_v28 = vld [vmem:[#allocation2 + $0xbe4] ss:$8 sps:$4 sm:$0xff]  }
 0x789   :  { %4416 = vmatpush1.bf16.msra.mxu1 %v7193_v18  ;;  %6500 = vmatprep.mubr.msk.bf16.mxu1 %vm7562_vm3, %v6499_v7  ;;  %v8690_v60 = vmax.f32 %v3534_v43, 0.0  ;;  %v3595_v42 = vsel %vm104_vm0, %v3590_v51, %v3594_v38  ;;  %v6503_v2 = vpack.c.bf16 %v3585_v31, %v3582_v39  ;;  %v3620_v3 = vrot.slane %v8603_v35, 1  ;;  %v7214_v56 = vld [vmem:[#allocation2 + $0xbe0] ss:$8 sps:$4 sm:$0xff]   ;;  %v7219_v18 = vld [vmem:[#allocation2 + $0xbd4] ss:$8 sps:$4 sm:$0xff]  }
 0x78a   :  { %4417 = vmatprep.subr.bf16.mxu1 %v7198_v23  ;;  %v3683_v16 = vpack.c.bf16 %v3595_v42, %v3591_v36  ;;  %v3588_v20 = vrot.slane %v8688_v55, 7  ;;  %v3624_v17 = vrot.slane %v8609_v45, 1  ;;  %v7217_v26 = vld [vmem:[#allocation2 + $0xbd0] ss:$8 sps:$4 sm:$0xff]   ;;  %v7222_v61 = vld [vmem:[#allocation2 + $0xbc4] ss:$8 sps:$4 sm:$0xff]  }
 0x78b   :  { %v3592_v30 = vrot.slane %v8690_v60, 7  ;;  %v3684_v37 = vpack.c.bf16 %v8690_v60, %v8688_v55  ;;  %v3621_v5 = vsel %vm153_vm4, %v3619_v25, %v3620_v3  ;;  %v7220_v23 = vld [vmem:[#allocation2 + $0xbc0] ss:$8 sps:$4 sm:$0xff]   ;;  %v7225_v39 = vld [vmem:[#allocation2 + $0xbb4] ss:$8 sps:$4 sm:$0xff]   ;;  %v3616_v51 = vrot.slane %v8605_v21, 1 }
 0x78c   :  { %v3589_v62 = vsel %vm104_vm0, %v3584_v12, %v3588_v20  ;;  %v3625_v48 = vsel %vm153_vm4, %v3620_v3, %v3624_v17  ;;  %v7223_v7 = vld [vmem:[#allocation2 + $0xbb0] ss:$8 sps:$4 sm:$0xff]   ;;  %v7228_v12 = vld [vmem:[#allocation2 + $0xba4] ss:$8 sps:$4 sm:$0xff]   ;;  %v7226_v47 = vld [vmem:[#allocation2 + $0xba0] ss:$8 sps:$4 sm:$0xff]  }
 0x78d   :  { %4418 = vmatpush1.bf16.msra.mxu1 %v7196_v53  ;;  %4391 = vmatmul.mubr.bf16.gmra.mxu0 %v3678_v33  ;;  %v3593_v9 = vsel %vm104_vm0, %v3588_v20, %v3592_v30  ;;  %v3669_v50 = vpack.c.bf16 %v3625_v48, %v3621_v5  ;;  %v7231_v63 = vld [vmem:[#allocation2 + $0xb94] ss:$8 sps:$4 sm:$0xff]   ;;  %v7229_v0 = vld [vmem:[#allocation2 + $0xb90] ss:$8 sps:$4 sm:$0xff]   ;;  %v7234_v43 = vld [vmem:[#allocation2 + $0xb84] ss:$8 sps:$4 sm:$0xff]  }
 0x78e   :  { %4400 = vmatprep.mubr.bf16.mxu0 %v3685_v15  ;;  %4419 = vmatprep.subr.bf16.mxu1 %v7201_v6  ;;  %v3682_v49 = vpack.c.bf16 %v3593_v9, %v3589_v62  ;;  %v3617_v38 = vrot.slane %v8607_v19, 1  ;;  %v3622_v53 = vrot.slane %v8613_v46, 1  ;;  %v3628_v6 = vrot.slane %v8611_v54, 1  ;;  %v7232_v33 = vld [vmem:[#allocation2 + $0xb80] ss:$8 sps:$4 sm:$0xff]  }
 0x78f   :  { %v3638_v20 = vrot.slane %v8669_v57, 1  ;;  %v3636_v62 = vrot.slane %v8688_v55, 1  ;;  %v3642_v9 = vrot.slane %v8675_v52, 1 }
 0x790   :  { %6504 = vmatmul.mubr.msk.bf16.gmra.mxu1 %vm7562_vm3, %v6503_v2  ;;  %v3618_v31 = vsel %vm153_vm4, %v3616_v51, %v3617_v38  ;;  %v3623_v15 = vsel %vm153_vm4, %v3617_v38, %v3622_v53  ;;  %v3629_v36 = vsel %vm153_vm4, %v3624_v17, %v3628_v6  ;;  %v3626_v2 = vrot.slane %v8625_v22, 1 }
 0x791   :  { %4420 = vmatpush1.bf16.msra.mxu1 %v7199_v32  ;;  %4327 = vmatprep.mubr.bf16.mxu1 %v3683_v16  ;;  %v3668_v42 = vpack.c.bf16 %v3623_v15, %v3618_v31  ;;  %v6506_v32 = vpack.c.bf16 %v3628_v6, %v3629_v36  ;;  %v3634_v16 = vrot.slane %v8651_v29, 1 }
 0x792   :  { %4421 = vmatprep.subr.bf16.mxu1 %v7204_v58  ;;  %v3633_v58 = vrot.slane %v8647_v27, 1  ;;  %v3627_v30 = vsel %vm153_vm4, %v3622_v53, %v3626_v2 }
 0x793   :  { %v3639_v3 = vsel %vm153_vm4, %v3634_v16, %v3638_v20  ;;  %v6509_v17 = vpack.c.bf16 %v3626_v2, %v3627_v30 }
 0x794   :  { %v3635_v25 = vsel %vm153_vm4, %v3633_v58, %v3634_v16 }
 0x795   :  { %4422 = vmatpush1.bf16.msra.mxu1 %v7202_v40  ;;  %4401 = vmatmul.mubr.bf16.gmra.mxu0 %v3684_v37  ;;  %v3681_v40 = vpack.c.bf16 %v3639_v3, %v3635_v25  ;;  %v3631_v37 = vrot.slane %v8667_v1, 1 }
 0x796   :  { %4423 = vmatprep.subr.bf16.mxu1 %v7207_v14  ;;  %v3630_v14 = vrot.slane %v8664_v34, 1 }
 0x797   :  { %v3637_v48 = vsel %vm153_vm4, %v3631_v37, %v3636_v62 }
 0x798   :  { %4328 = vmatmul.mubr.bf16.gmra.mxu1 %v3682_v49  ;;  %v3632_v5 = vsel %vm153_vm4, %v3630_v14, %v3631_v37 }
 0x799   :  { %4424 = vmatpush1.bf16.msra.mxu1 %v7205_v10  ;;  %4443 = vmatprep.mubr.bf16.mxu1 %v3669_v50  ;;  %v3643_v10 = vsel %vm153_vm4, %v3638_v20, %v3642_v9  ;;  %v3680_v49 = vpack.c.bf16 %v3637_v48, %v3632_v5  ;;  %v3640_v50 = vrot.slane %v8690_v60, 1 }
 0x79a   :  { %4425 = vmatprep.subr.bf16.mxu1 %v7210_v44  ;;  %v6512_v44 = vpack.c.bf16 %v3642_v9, %v3643_v10 }
 0x79d   :  { %4426 = vmatpush1.bf16.msra.mxu1 %v7208_v24  ;;  %v3641_v24 = vsel %vm153_vm4, %v3636_v62, %v3640_v50 }
 0x79e   :  { %4427 = vmatprep.subr.bf16.mxu1 %v7213_v11  ;;  %v6515_v11 = vpack.c.bf16 %v3640_v50, %v3641_v24 }
 0x7a1   :  { %4428 = vmatpush2.bf16.msra.mxu1 %v7211_v4 }
 0x7a2   :  { %4429 = vmatprep.subr.bf16.mxu1 %v7216_v28 }
 0x7a5   :  { %4430 = vmatpush2.bf16.msra.mxu1 %v7214_v56 }
 0x7a6   :  { %4431 = vmatprep.subr.bf16.mxu1 %v7219_v18 }
 0x7a9   :  { %4432 = vmatpush2.bf16.msra.mxu1 %v7217_v26 }
 0x7aa   :  { %4433 = vmatprep.subr.bf16.mxu1 %v7222_v61 }
 0x7ad   :  { %4434 = vmatpush2.bf16.msra.mxu1 %v7220_v23 }
 0x7ae   :  { %4435 = vmatprep.subr.bf16.mxu1 %v7225_v39 }
 0x7b1   :  { %4436 = vmatpush2.bf16.msra.mxu1 %v7223_v7 }
 0x7b2   :  { %4437 = vmatprep.subr.bf16.mxu1 %v7228_v12 }
 0x7b5   :  { %4438 = vmatpush2.bf16.msra.mxu1 %v7226_v47 }
 0x7b6   :  { %4439 = vmatprep.subr.bf16.mxu1 %v7231_v63 }
 0x7b9   :  { %4440 = vmatpush2.bf16.msra.mxu1 %v7229_v0 }
 0x7ba   :  { %4441 = vmatprep.subr.bf16.mxu1 %v7234_v43 }
 0x7bd   :  { %4442 = vmatpush2.bf16.msra.mxu1 %v7232_v33 }
 0x7c0   :  { %4444 = vmatmul.mubr.bf16.vlgmr.msra.gmra.mxu1 %v3668_v42 }
 0x7c1   :  { %6507 = vmatprep.mubr.msk.bf16.mxu1 %vm7724_vm5, %v6506_v32 }
 0x7c8   :  { %6510 = vmatmul.mubr.msk.bf16.gmra.mxu1 %vm7724_vm5, %v6509_v17 }
 0x7c9   :  { %4463 = vmatprep.mubr.bf16.mxu1 %v3681_v40 }
 0x7d0   :  { %4464 = vmatmul.mubr.bf16.gmra.mxu1 %v3680_v49 }
 0x7d1   :  { %6513 = vmatprep.mubr.msk.bf16.mxu1 %vm7724_vm5, %v6512_v44 }
 0x7d8   :  { %6516 = vmatmul.mubr.msk.bf16.gmra.mxu1 %vm7724_vm5, %v6515_v11 }
 0x83d   :  { %v4372_v7 = vpop.f32.mrf.mxu0 }
 0x83f   :  { %v4374_v47 = vpop.f32.mrf.mxu0 }
 0x840   :  { %v4299_v4 = vpop.f32.mrf.mxu1 }
 0x841   :  { %v4376_v0 = vpop.f32.mrf.mxu0  ;;  %v4373_v37 = vadd.f32 %v4372_v7, %v4299_v4 }
 0x842   :  { %v4301_v28 = vpop.f32.mrf.mxu1 }
 0x843   :  { %v4378_v51 = vpop.f32.mrf.mxu0  ;;  %v4375_v49 = vadd.f32 %v4374_v47, %v4301_v28 }
 0x844   :  { %v4303_v56 = vpop.f32.mrf.mxu1 }
 0x845   :  { %v4382_v53 = vpop.f32.mrf.mxu0  ;;  %v4377_v40 = vadd.f32 %v4376_v0, %v4303_v56 }
 0x846   :  { %v4305_v18 = vpop.f32.mrf.mxu1 }
 0x847   :  { %v4384_v33 = vpop.f32.mrf.mxu0  ;;  %v4379_v9 = vadd.f32 %v4378_v51, %v4305_v18 }
 0x848   :  { %v4309_v26 = vpop.f32.mrf.mxu1 }
 0x849   :  { %v4386_v15 = vpop.f32.mrf.mxu0  ;;  %v4383_v5 = vadd.f32 %v4382_v53, %v4309_v26 }
 0x84a   :  { %v4311_v61 = vpop.f32.mrf.mxu1 }
 0x84b   :  { %v4388_v42 = vpop.f32.mrf.mxu0  ;;  %v4385_v50 = vadd.f32 %v4384_v33, %v4311_v61 }
 0x84c   :  { %v4313_v23 = vpop.f32.mrf.mxu1 }
 0x84d   :  { %v4392_v2 = vpop.f32.mrf.mxu0  ;;  %v4387_v24 = vadd.f32 %v4386_v15, %v4313_v23 }
 0x84e   :  { %v4315_v39 = vpop.f32.mrf.mxu1 }
 0x84f   :  { %v4394_v20 = vpop.f32.mrf.mxu0  ;;  %v4389_v29 = vadd.f32 %v4388_v42, %v4315_v39 }
 0x850   :  { %v4319_v12 = vpop.f32.mrf.mxu1 }
 0x851   :  { %v4396_v3 = vpop.f32.mrf.mxu0  ;;  %v4393_v4 = vadd.f32 %v4392_v2, %v4319_v12 }
 0x852   :  { %v4321_v63 = vpop.f32.mrf.mxu1 }
 0x853   :  { %v4398_v62 = vpop.f32.mrf.mxu0  ;;  %v4395_v61 = vadd.f32 %v4394_v20, %v4321_v63 }
 0x854   :  { %v4323_v43 = vpop.f32.mrf.mxu1 }
 0x855   :  { %v4402_v56 = vpop.f32.mrf.mxu0  ;;  %v4397_v33 = vadd.f32 %v4396_v3, %v4323_v43 }
 0x856   :  { %v4325_v38 = vpop.f32.mrf.mxu1 }
 0x857   :  { %v4404_v15 = vpop.f32.mrf.mxu0  ;;  %v4399_v20 = vadd.f32 %v4398_v62, %v4325_v38 }
 0x858   :  { %v8740_v6 = vpop.f32.mrf.mxu1 }
 0x85a   :  { %v8742_v31 = vpop.f32.mrf.mxu1 }
 0x85c   :  { %v8744_v36 = vpop.f32.mrf.mxu1 }
 0x85e   :  { %v8746_v32 = vpop.f32.mrf.mxu1 }
 0x880   :  { %v4445_v58 = vpop.f32.mrf.mxu1 }
 0x881   :  { %v8750_v44 = vadd.f32 %v4445_v58, %v4373_v37 }
 0x882   :  { %v4447_v16 = vpop.f32.mrf.mxu1 }
 0x883   :  { %v8756_v0 = vadd.f32 %v4447_v16, %v4375_v49  ;;  %v4510_v23 = vmul.f32 %v8750_v44, %v8750_v44 }
 0x884   :  { %v4449_v30 = vpop.f32.mrf.mxu1 }
 0x885   :  { %v8748_v48 = vadd.f32 %v4449_v30, %v4377_v40  ;;  %v4511_v42 = vmul.f32 %v8756_v0, %v8756_v0 }
 0x886   :  { %v4451_v25 = vpop.f32.mrf.mxu1 }
 0x887   :  { %v8752_v11 = vadd.f32 %v4451_v25, %v4379_v9  ;;  %v4512_v18 = vmul.f32 %v8748_v48, %v8748_v48  ;;  %v4484_v63 = vadd.f32 %v8748_v48, %v8750_v44  ;;  %v4403_v9 = vadd.f32 %v4402_v56, %v8740_v6 }
 0x888   :  { %v4455_v17 = vpop.f32.mrf.mxu1 }
 0x889   :  { %v8754_v1 = vadd.f32 %v4455_v17, %v4383_v5  ;;  %v4513_v47 = vmul.f32 %v8752_v11, %v8752_v11  ;;  %v4526_v2 = vadd.f32 %v4512_v18, %v4510_v23  ;;  %v4497_v43 = vadd.f32 %v8752_v11, %v8756_v0  ;;  %v4406_v5 = vpop.f32.mrf.mxu0 }
 0x88a   :  { %v4457_v14 = vpop.f32.mrf.mxu1  ;;  %v4407_v23 = vadd.f32 %v4406_v5, %v8744_v36 }
 0x88b   :  { %v8760_v26 = vadd.f32 %v4457_v14, %v4385_v50  ;;  %v4514_v39 = vmul.f32 %v8754_v1, %v8754_v1  ;;  %v4485_v30 = vadd.f32 %v4484_v63, %v8754_v1  ;;  %v4539_v3 = vadd.f32 %v4513_v47, %v4511_v42  ;;  %v4408_v42 = vpop.f32.mrf.mxu0 }
 0x88c   :  { %v4459_v10 = vpop.f32.mrf.mxu1 }
 0x88d   :  { %v8762_v28 = vadd.f32 %v4459_v10, %v4387_v24  ;;  %v4515_v58 = vmul.f32 %v8760_v26, %v8760_v26  ;;  %v4527_v17 = vadd.f32 %v4526_v2, %v4514_v39  ;;  %v4498_v38 = vadd.f32 %v4497_v43, %v8760_v26 }
 0x88e   :  { %v4461_v34 = vpop.f32.mrf.mxu1 }
 0x88f   :  { %v8770_v51 = vadd.f32 %v4461_v34, %v4389_v29  ;;  %v4516_v16 = vmul.f32 %v8762_v28, %v8762_v28  ;;  %v4486_v62 = vadd.f32 %v4485_v30, %v8762_v28  ;;  %v4540_v49 = vadd.f32 %v4539_v3, %v4515_v58 }
 0x890   :  { %v4465_v7 = vpop.f32.mrf.mxu1  ;;  %v4409_v58 = vadd.f32 %v4408_v42, %v8746_v32 }
 0x891   :  { %v8772_v12 = vadd.f32 %v4465_v7, %v4393_v4  ;;  %v4517_v40 = vmul.f32 %v8770_v51, %v8770_v51  ;;  %v4528_v50 = vadd.f32 %v4527_v17, %v4516_v16  ;;  %v4405_v7 = vadd.f32 %v4404_v15, %v8742_v31 }
 0x892   :  { %v4467_v53 = vpop.f32.mrf.mxu1  ;;  %v4499_v6 = vadd.f32 %v4498_v38, %v8770_v51 }
 0x893   :  { %v8782_v29 = vadd.f32 %v4467_v53, %v4395_v61  ;;  %v4518_v14 = vmul.f32 %v8772_v12, %v8772_v12  ;;  %v4487_v56 = vadd.f32 %v4486_v62, %v8772_v12  ;;  %v4541_v47 = vadd.f32 %v4540_v49, %v4517_v40 }
 0x894   :  { %v4469_v34 = vpop.f32.mrf.mxu1 }
 0x895   :  { %v8787_v25 = vadd.f32 %v4469_v34, %v4397_v33  ;;  %v4519_v24 = vmul.f32 %v8782_v29, %v8782_v29  ;;  %v4529_v39 = vadd.f32 %v4528_v50, %v4518_v14  ;;  %v4500_v63 = vadd.f32 %v4499_v6, %v8782_v29 }
 0x896   :  { %v4471_v37 = vpop.f32.mrf.mxu1 }
 0x897   :  { %v8796_v10 = vadd.f32 %v4471_v37, %v4399_v20  ;;  %v4520_v4 = vmul.f32 %v8787_v25, %v8787_v25  ;;  %v4488_v2 = vadd.f32 %v4487_v56, %v8787_v25  ;;  %v4542_v16 = vadd.f32 %v4541_v47, %v4519_v24 }
 0x898   :  { %v4475_v18 = vpop.f32.mrf.mxu1 }
 0x899   :  { %v8805_v61 = vadd.f32 %v4475_v18, %v4403_v9  ;;  %v4521_v53 = vmul.f32 %v8796_v10, %v8796_v10  ;;  %v4530_v36 = vadd.f32 %v4529_v39, %v4520_v4  ;;  %v4501_v20 = vadd.f32 %v4500_v63, %v8796_v10 }
 0x89a   :  { %v4477_v33 = vpop.f32.mrf.mxu1 }
 0x89b   :  { %v4522_v31 = vmul.f32 %v8805_v61, %v8805_v61  ;;  %v8814_v15 = vadd.f32 %v4477_v33, %v4405_v7  ;;  %v4489_v43 = vadd.f32 %v4488_v2, %v8805_v61  ;;  %v4543_v17 = vadd.f32 %v4542_v16, %v4521_v53 }
 0x89c   :  { %v4479_v34 = vpop.f32.mrf.mxu1 }
 0x89d   :  { %v4523_v30 = vmul.f32 %v8814_v15, %v8814_v15  ;;  %v8821_v3 = vadd.f32 %v4479_v34, %v4407_v23  ;;  %v4531_v40 = vadd.f32 %v4530_v36, %v4522_v31  ;;  %v4502_v37 = vadd.f32 %v4501_v20, %v8814_v15 }
 0x89e   :  { %v4481_v14 = vpop.f32.mrf.mxu1 }
 0x89f   :  { %v4490_v9 = vadd.f32 %v4489_v43, %v8821_v3  ;;  %v4524_v32 = vmul.f32 %v8821_v3, %v8821_v3  ;;  %v8827_v5 = vadd.f32 %v4481_v14, %v4409_v58  ;;  %v4544_v38 = vadd.f32 %v4543_v17, %v4523_v30 }
 0x8a1   :  { %v4491_v62 = vrot.slane %v4490_v9, 4  ;;  %v4532_v49 = vadd.f32 %v4531_v40, %v4524_v32  ;;  %v4503_v50 = vadd.f32 %v4502_v37, %v8827_v5  ;;  %v4525_v24 = vmul.f32 %v8827_v5, %v8827_v5  ;;  %v7235_v37 = vld [vmem:[#allocation2 + $0xd70] ss:$8 sps:$4 sm:$0xff]  }
 0x8a2   :  { %v7238_v32 = vld [vmem:[#allocation2 + $0xc70] ss:$8 sps:$4 sm:$0xff]  }
 0x8a3   :  { %v4492_v4 = vadd.f32 %v4491_v62, %v4490_v9  ;;  %v4533_v18 = vrot.slane %v4532_v49, 4  ;;  %v4504_v7 = vrot.slane %v4503_v50, 4  ;;  %v4545_v6 = vadd.f32 %v4544_v38, %v4525_v24  ;;  %v7237_v9 = vld [vmem:[#allocation2 + $0xd74] ss:$8 sps:$4 sm:$0xff]   ;;  %v7243_v62 = vld [vmem:[#allocation2 + $0xd64] ss:$8 sps:$4 sm:$0xff]  }
 0x8a4   :  { %v7240_v38 = vld [vmem:[#allocation2 + $0xc74] ss:$8 sps:$4 sm:$0xff]   ;;  %5486 = vmatprep.subr.bf16.mxu1 %v7237_v9  ;;  %v7244_v24 = vld [vmem:[#allocation2 + $0xc60] ss:$8 sps:$4 sm:$0xff]   ;;  %v7282_v9 = vld [vmem:[#allocation2 + $0xc04] ss:$8 sps:$4 sm:$0xff]  }
 0x8a5   :  { %v4493_v56 = vrot.slane %v4492_v4, 2  ;;  %v4534_v23 = vadd.f32 %v4533_v18, %v4532_v49  ;;  %v4546_v47 = vrot.slane %v4545_v6, 4  ;;  %v4505_v33 = vadd.f32 %v4504_v7, %v4503_v50  ;;  %v7246_v49 = vld [vmem:[#allocation2 + $0xc64] ss:$8 sps:$4 sm:$0xff]   ;;  %5487 = vmatpush1.bf16.msra.mxu1 %v7235_v37  ;;  %5413 = vmatprep.subr.bf16.mxu0 %v7240_v38  ;;  %v7241_v50 = vld [vmem:[#allocation2 + $0xd60] ss:$8 sps:$4 sm:$0xff]  }
 0x8a6   :  { %5414 = vmatpush1.bf16.msra.mxu0 %v7238_v32  ;;  %5488 = vmatprep.subr.bf16.mxu1 %v7243_v62  ;;  %v7252_v18 = vld [vmem:[#allocation2 + $0xc54] ss:$8 sps:$4 sm:$0xff]   ;;  %v7247_v7 = vld [vmem:[#allocation2 + $0xd50] ss:$8 sps:$4 sm:$0xff]   ;;  %v7279_v37 = vld [vmem:[#allocation2 + $0xd04] ss:$8 sps:$4 sm:$0xff]  }
 0x8a7   :  { %v4494_v39 = vadd.f32 %v4493_v56, %v4492_v4  ;;  %v4535_v53 = vrot.slane %v4534_v23, 2  ;;  %v4547_v42 = vadd.f32 %v4546_v47, %v4545_v6  ;;  %v4506_v31 = vrot.slane %v4505_v33, 2  ;;  %v7249_v4 = vld [vmem:[#allocation2 + $0xd54] ss:$8 sps:$4 sm:$0xff]   ;;  %5415 = vmatprep.subr.bf16.mxu0 %v7246_v49  ;;  %v7250_v6 = vld [vmem:[#allocation2 + $0xc50] ss:$8 sps:$4 sm:$0xff]  }
 0x8a8   :  { %v7255_v56 = vld [vmem:[#allocation2 + $0xd44] ss:$8 sps:$4 sm:$0xff]   ;;  %v7253_v47 = vld [vmem:[#allocation2 + $0xd40] ss:$8 sps:$4 sm:$0xff]   ;;  %v7285_v62 = vld [vmem:[#allocation2 + $0xdf4] ss:$8 sps:$4 sm:$0xff]  }
 0x8a9   :  { %v4495_v63 = vrot.slane %v4494_v39, 1  ;;  %v4536_v2 = vadd.f32 %v4535_v53, %v4534_v23  ;;  %v4548_v36 = vrot.slane %v4547_v42, 2  ;;  %v4507_v20 = vadd.f32 %v4506_v31, %v4505_v33  ;;  %5489 = vmatpush1.bf16.msra.mxu1 %v7241_v50  ;;  %v7258_v23 = vld [vmem:[#allocation2 + $0xc44] ss:$8 sps:$4 sm:$0xff]   ;;  %v7261_v53 = vld [vmem:[#allocation2 + $0xd34] ss:$8 sps:$4 sm:$0xff]  }
 0x8aa   :  { %5416 = vmatpush1.bf16.msra.mxu0 %v7244_v24  ;;  %5490 = vmatprep.subr.bf16.mxu1 %v7249_v4  ;;  %v7264_v33 = vld [vmem:[#allocation2 + $0xc34] ss:$8 sps:$4 sm:$0xff]   ;;  %v7270_v31 = vld [vmem:[#allocation2 + $0xc24] ss:$8 sps:$4 sm:$0xff]   ;;  %v7277_v32 = vld [vmem:[#allocation2 + $0xd00] ss:$8 sps:$4 sm:$0xff]  }
 0x8ab   :  { %v8832_v58 = vadd.f32 %v4495_v63, %v4494_v39  ;;  %v4537_v16 = vrot.slane %v4536_v2, 1  ;;  %v4549_v43 = vadd.f32 %v4548_v36, %v4547_v42  ;;  %v4508_v30 = vrot.slane %v4507_v20, 1  ;;  %5417 = vmatprep.subr.bf16.mxu0 %v7252_v18  ;;  %v7256_v39 = vld [vmem:[#allocation2 + $0xc40] ss:$8 sps:$4 sm:$0xff]   ;;  %v7259_v42 = vld [vmem:[#allocation2 + $0xd30] ss:$8 sps:$4 sm:$0xff]  }
 0x8ac   :  { %v7262_v63 = vld [vmem:[#allocation2 + $0xc30] ss:$8 sps:$4 sm:$0xff]   ;;  %v7268_v36 = vld [vmem:[#allocation2 + $0xc20] ss:$8 sps:$4 sm:$0xff]   ;;  %v7288_v49 = vld [vmem:[#allocation2 + $0xcf4] ss:$8 sps:$4 sm:$0xff]  }
 0x8ad   :  { %4553 = vrot.lane.b32.xlu0 %v8832_v58, %s7486_s0  ;;  %v8836_v34 = vadd.f32 %v4537_v16, %v4536_v2  ;;  %v4550_v17 = vrot.slane %v4549_v43, 1  ;;  %v8848_v40 = vadd.f32 %v4508_v30, %v4507_v20  ;;  %5491 = vmatpush1.bf16.msra.mxu1 %v7247_v7  ;;  %v7267_v2 = vld [vmem:[#allocation2 + $0xd24] ss:$8 sps:$4 sm:$0xff]   ;;  %v7265_v16 = vld [vmem:[#allocation2 + $0xd20] ss:$8 sps:$4 sm:$0xff]  }
 0x8ae   :  { %5418 = vmatpush1.bf16.msra.mxu0 %v7250_v6  ;;  %5492 = vmatprep.subr.bf16.mxu1 %v7255_v56  ;;  %v7273_v20 = vld [vmem:[#allocation2 + $0xd14] ss:$8 sps:$4 sm:$0xff]   ;;  %v7271_v30 = vld [vmem:[#allocation2 + $0xd10] ss:$8 sps:$4 sm:$0xff]   ;;  %v7280_v38 = vld [vmem:[#allocation2 + $0xc00] ss:$8 sps:$4 sm:$0xff]  }
 0x8af   :  { %4558 = vrot.lane.b32.xlu1 %v8836_v34, %s7486_s0  ;;  %v8852_v14 = vadd.f32 %v4550_v17, %v4549_v43  ;;  %5419 = vmatprep.subr.bf16.mxu0 %v7258_v23  ;;  %v7276_v43 = vld [vmem:[#allocation2 + $0xc14] ss:$8 sps:$4 sm:$0xff]   ;;  %v7274_v17 = vld [vmem:[#allocation2 + $0xc10] ss:$8 sps:$4 sm:$0xff]   ;;  %v7291_v4 = vld [vmem:[#allocation2 + $0xde4] ss:$8 sps:$4 sm:$0xff]  }
 0x8b0   :  { %v7283_v50 = vld [vmem:[#allocation2 + $0xdf0] ss:$8 sps:$4 sm:$0xff]   ;;  %v7294_v18 = vld [vmem:[#allocation2 + $0xce4] ss:$8 sps:$4 sm:$0xff]   ;;  %v7289_v7 = vld [vmem:[#allocation2 + $0xde0] ss:$8 sps:$4 sm:$0xff]  }
 0x8b1   :  { %4562 = vrot.lane.b32.xlu0 %v8832_v58, %s7483_s1  ;;  %5493 = vmatpush1.bf16.msra.mxu1 %v7253_v47  ;;  %v7286_v24 = vld [vmem:[#allocation2 + $0xcf0] ss:$8 sps:$4 sm:$0xff]   ;;  %v7292_v6 = vld [vmem:[#allocation2 + $0xce0] ss:$8 sps:$4 sm:$0xff]   ;;  %v7297_v56 = vld [vmem:[#allocation2 + $0xdd4] ss:$8 sps:$4 sm:$0xff]  }
 0x8b2   :  { %5420 = vmatpush1.bf16.msra.mxu0 %v7256_v39  ;;  %5494 = vmatprep.subr.bf16.mxu1 %v7261_v53  ;;  %v7300_v23 = vld [vmem:[#allocation2 + $0xcd4] ss:$8 sps:$4 sm:$0xff]   ;;  %v7295_v47 = vld [vmem:[#allocation2 + $0xdd0] ss:$8 sps:$4 sm:$0xff]   ;;  %v7303_v53 = vld [vmem:[#allocation2 + $0xdc4] ss:$8 sps:$4 sm:$0xff]  }
 0x8b3   :  { %4566 = vrot.lane.b32.xlu1 %v8836_v34, %s7483_s1  ;;  %5421 = vmatprep.subr.bf16.mxu0 %v7264_v33  ;;  %v7298_v39 = vld [vmem:[#allocation2 + $0xcd0] ss:$8 sps:$4 sm:$0xff]   ;;  %v7301_v33 = vld [vmem:[#allocation2 + $0xdc0] ss:$8 sps:$4 sm:$0xff]  }
 0x8b5   :  { %4570 = vrot.lane.b32.xlu0 %v8832_v58, %s7487_s17  ;;  %5495 = vmatpush1.bf16.msra.mxu1 %v7259_v42 }
 0x8b6   :  { %5422 = vmatpush1.bf16.msra.mxu0 %v7262_v63  ;;  %5496 = vmatprep.subr.bf16.mxu1 %v7267_v2 }
 0x8b7   :  { %4574 = vrot.lane.b32.xlu1 %v8836_v34, %s7487_s17  ;;  %5423 = vmatprep.subr.bf16.mxu0 %v7270_v31 }
 0x8b9   :  { %4581 = vrot.lane.b32.xlu0 %v8848_v40, %s7486_s0  ;;  %5497 = vmatpush1.bf16.msra.mxu1 %v7265_v16 }
 0x8ba   :  { %5424 = vmatpush1.bf16.msra.mxu0 %v7268_v36  ;;  %5498 = vmatprep.subr.bf16.mxu1 %v7273_v20 }
 0x8bb   :  { %4586 = vrot.lane.b32.xlu1 %v8852_v14, %s7486_s0  ;;  %5425 = vmatprep.subr.bf16.mxu0 %v7276_v43 }
 0x8bd   :  { %4590 = vrot.lane.b32.xlu0 %v8848_v40, %s7483_s1  ;;  %5499 = vmatpush1.bf16.msra.mxu1 %v7271_v30 }
 0x8be   :  { %5426 = vmatpush1.bf16.msra.mxu0 %v7274_v17  ;;  %5500 = vmatprep.subr.bf16.mxu1 %v7279_v37 }
 0x8bf   :  { %4594 = vrot.lane.b32.xlu1 %v8852_v14, %s7483_s1  ;;  %5427 = vmatprep.subr.bf16.mxu0 %v7282_v9 }
 0x8c1   :  { %4598 = vrot.lane.b32.xlu0 %v8848_v40, %s7487_s17  ;;  %5501 = vmatpush1.bf16.msra.mxu1 %v7277_v32 }
 0x8c2   :  { %5428 = vmatpush1.bf16.msra.mxu0 %v7280_v38  ;;  %5502 = vmatprep.subr.bf16.mxu1 %v7285_v62 }
 0x8c3   :  { %4602 = vrot.lane.b32.xlu1 %v8852_v14, %s7487_s17  ;;  %5429 = vmatprep.subr.bf16.mxu0 %v7288_v49 }
 0x8c5   :  { %5503 = vmatpush2.bf16.msra.mxu1 %v7283_v50 }
 0x8c6   :  { %5430 = vmatpush2.bf16.msra.mxu0 %v7286_v24  ;;  %5504 = vmatprep.subr.bf16.mxu1 %v7291_v4 }
 0x8c7   :  { %5431 = vmatprep.subr.bf16.mxu0 %v7294_v18 }
 0x8c9   :  { %5505 = vmatpush2.bf16.msra.mxu1 %v7289_v7 }
 0x8ca   :  { %5432 = vmatpush2.bf16.msra.mxu0 %v7292_v6  ;;  %5506 = vmatprep.subr.bf16.mxu1 %v7297_v56 }
 0x8cb   :  { %5433 = vmatprep.subr.bf16.mxu0 %v7300_v23 }
 0x8cd   :  { %5507 = vmatpush2.bf16.msra.mxu1 %v7295_v47 }
 0x8ce   :  { %5434 = vmatpush2.bf16.msra.mxu0 %v7298_v39  ;;  %5508 = vmatprep.subr.bf16.mxu1 %v7303_v53 }
 0x8d1   :  { %5509 = vmatpush2.bf16.msra.mxu1 %v7301_v33 }
 0x91f   :  { %v4554_v42 = vpop.permute.xlu0 %4553 }
 0x920   :  { %v4556_v31 = vadd.f32 %v4554_v42, %v8832_v58 }
 0x921   :  { %v4559_v63 = vpop.permute.xlu1 %4558 }
 0x922   :  { %v4561_v36 = vadd.f32 %v4559_v63, %v8836_v34 }
 0x923   :  { %v4563_v2 = vpop.permute.xlu0 %4562 }
 0x924   :  { %v4565_v20 = vadd.f32 %v4563_v2, %v4556_v31  ;;  %v7306_v2 = vld [vmem:[#allocation2 + $0xcc4] ss:$8 sps:$4 sm:$0xff]   ;;  %v7309_v31 = vld [vmem:[#allocation2 + $0xdb4] ss:$8 sps:$4 sm:$0xff]  }
 0x925   :  { %v4567_v16 = vpop.permute.xlu1 %4566  ;;  %5435 = vmatprep.subr.bf16.mxu0 %v7306_v2  ;;  %5510 = vmatprep.subr.bf16.mxu1 %v7309_v31 }
 0x926   :  { %v4569_v30 = vadd.f32 %v4567_v16, %v4561_v36  ;;  %v7310_v16 = vld [vmem:[#allocation2 + $0xcb0] ss:$8 sps:$4 sm:$0xff]   ;;  %v7312_v36 = vld [vmem:[#allocation2 + $0xcb4] ss:$8 sps:$4 sm:$0xff]  }
 0x927   :  { %v4571_v43 = vpop.permute.xlu0 %4570 }
 0x928   :  { %v4573_v17 = vadd.f32 %v4571_v43, %v4565_v20  ;;  %v7313_v20 = vld [vmem:[#allocation2 + $0xda0] ss:$8 sps:$4 sm:$0xff]   ;;  %v7315_v43 = vld [vmem:[#allocation2 + $0xda4] ss:$8 sps:$4 sm:$0xff]  }
 0x929   :  { %v4575_v37 = vpop.permute.xlu1 %4574 }
 0x92a   :  { %v4577_v9 = vadd.f32 %v4575_v37, %v4569_v30  ;;  %v4578_v38 = vadd.f32 %v4573_v17, %v8848_v40  ;;  %v7304_v40 = vld [vmem:[#allocation2 + $0xcc0] ss:$8 sps:$4 sm:$0xff]  }
 0x92b   :  { %v4582_v32 = vpop.permute.xlu0 %4581  ;;  %5436 = vmatpush2.bf16.msra.mxu0 %v7304_v40  ;;  %v4611_v30 = vld [vmem:[#allocation4 + $0x3] sm:$0x1] }
 0x92c   :  { %v4579_v49 = vadd.f32 %v4577_v9, %v8852_v14  ;;  %v4584_v24 = vadd.f32 %v4582_v32, %v4578_v38  ;;  %v7307_v14 = vld [vmem:[#allocation2 + $0xdb0] ss:$8 sps:$4 sm:$0xff]   ;;  %5437 = vmatprep.subr.bf16.mxu0 %v7312_v36  ;;  %v7316_v37 = vld [vmem:[#allocation2 + $0xca0] ss:$8 sps:$4 sm:$0xff]   ;;  %v7318_v9 = vld [vmem:[#allocation2 + $0xca4] ss:$8 sps:$4 sm:$0xff]  }
 0x92d   :  { %v4587_v62 = vpop.permute.xlu1 %4586  ;;  %5511 = vmatpush2.bf16.msra.mxu1 %v7307_v14  ;;  %v7319_v38 = vld [vmem:[#allocation2 + $0xd90] ss:$8 sps:$4 sm:$0xff]  }
 0x92e   :  { %v4589_v18 = vadd.f32 %v4587_v62, %v4579_v49  ;;  %5512 = vmatprep.subr.bf16.mxu1 %v7315_v43  ;;  %v7321_v62 = vld [vmem:[#allocation2 + $0xd94] ss:$8 sps:$4 sm:$0xff]  }
 0x92f   :  { %v4591_v50 = vpop.permute.xlu0 %4590  ;;  %5438 = vmatpush2.bf16.msra.mxu0 %v7310_v16  ;;  %v7324_v49 = vld [vmem:[#allocation2 + $0xc94] ss:$8 sps:$4 sm:$0xff]  }
 0x930   :  { %v4593_v58 = vadd.f32 %v4591_v50, %v4584_v24  ;;  %v4615_v50 = vld [vmem:[#allocation6 + $0x3] sm:$0x1]  ;;  %5439 = vmatprep.subr.bf16.mxu0 %v7318_v9  ;;  %v7327_v24 = vld [vmem:[#allocation2 + $0xd84] ss:$8 sps:$4 sm:$0xff]  }
 0x931   :  { %v4595_v4 = vpop.permute.xlu1 %4594  ;;  %5513 = vmatpush2.bf16.msra.mxu1 %v7313_v20 }
 0x932   :  { %v4597_v6 = vadd.f32 %v4595_v4, %v4589_v18  ;;  %5514 = vmatprep.subr.bf16.mxu1 %v7321_v62  ;;  %v7322_v18 = vld [vmem:[#allocation2 + $0xc90] ss:$8 sps:$4 sm:$0xff]  }
 0x933   :  { %v4599_v7 = vpop.permute.xlu0 %4598  ;;  %5440 = vmatpush2.bf16.msra.mxu0 %v7316_v37 }
 0x934   :  { %v4601_v34 = vadd.f32 %v4599_v7, %v4593_v58  ;;  %5441 = vmatprep.subr.bf16.mxu0 %v7324_v49  ;;  %v7325_v7 = vld [vmem:[#allocation2 + $0xd80] ss:$8 sps:$4 sm:$0xff]  }
 0x935   :  { %v4603_v56 = vpop.permute.xlu1 %4602  ;;  %5515 = vmatpush2.bf16.msra.mxu1 %v7319_v38 }
 0x936   :  { %v4606_v23 = vmul.f32 0.001953125, %v4601_v34  ;;  %v4605_v47 = vadd.f32 %v4603_v56, %v4597_v6  ;;  %v7330_v6 = vld [vmem:[#allocation2 + $0xc84] ss:$8 sps:$4 sm:$0xff]   ;;  %5516 = vmatprep.subr.bf16.mxu1 %v7327_v24  ;;  %v7328_v34 = vld [vmem:[#allocation2 + $0xc80] ss:$8 sps:$4 sm:$0xff]  }
 0x937   :  { %5442 = vmatpush2.bf16.msra.mxu0 %v7322_v18  ;;  %v7333_v56 = vld [vmem:[#allocation2 + $0xe74] ss:$8 sps:$4 sm:$0xff]  }
 0x938   :  { %v4608_v39 = vmul.f32 %v4606_v23, %v4606_v23  ;;  %v4607_v53 = vmul.f32 0.001953125, %v4605_v47  ;;  %5443 = vmatprep.subr.bf16.mxu0 %v7330_v6 }
 0x939   :  { %5517 = vmatpush2.bf16.msra.mxu1 %v7325_v7 }
 0x93a   :  { %v4609_v33 = vsub.f32 %v4607_v53, %v4608_v39 }
 0x93b   :  { %5444 = vmatpush2.bf16.msra.mxu0 %v7328_v34 }
 0x93c   :  { %v4610_v42 = vmax.f32 %v4609_v33, 0.0  ;;  %5559 = vmatprep.subr.bf16.mxu0 %v7333_v56 }
 0x93e   :  { %v4612_v63 = vadd.f32 1e-05, %v4610_v42 }
 0x940   :  { %7387 = vrsqrt.f32 %v4612_v63 }
 0x94d   :  { %v7388_v17 = vpop.eup %7387 }
 0x94e   :  { %v4614_v32 = vmul.f32 %v7388_v17, %v4611_v30 }
 0x950   :  { %4622 = vrot.lane.b32.xlu1 %v4614_v32, %s7483_s1  ;;  %4619 = vrot.lane.b32.xlu0 %v4614_v32, %s7487_s17  ;;  %v4616_v4 = vmul.f32 %v4614_v32, %v4606_v23 }
 0x952   :  { %v4617_v58 = vsub.f32 %v4615_v50, %v4616_v4 }
 0x954   :  { %4625 = vrot.lane.b32.xlu0 %v4614_v32, %s7486_s0  ;;  %4632 = vrot.lane.b32.xlu1 %v4617_v58, %s7487_s17 }
 0x958   :  { %4635 = vrot.lane.b32.xlu0 %v4617_v58, %s7483_s1  ;;  %4638 = vrot.lane.b32.xlu1 %v4617_v58, %s7486_s0 }
 0x9c2   :  { %v4623_v23 = vpop.permute.xlu1 %4622  ;;  %v4620_v47 = vpop.permute.xlu0 %4619 }
 0x9c3   :  { %v4628_v39 = vsel %vm1165_vm6, %v4614_v32, %v4620_v47 }
 0x9c4   :  { %v4629_v53 = vsel %vm1167_vm7, %v4628_v39, %v4623_v23 }
 0x9c6   :  { %v4626_v33 = vpop.permute.xlu0 %4625  ;;  %v4633_v42 = vpop.permute.xlu1 %4632 }
 0x9c7   :  { %v4630_v63 = vsel %vm1169_vm8, %v4629_v53, %v4626_v33  ;;  %v4641_v2 = vsel %vm1165_vm6, %v4617_v58, %v4633_v42 }
 0x9c8   :  { %v8878_v40 = vrot.slane %v4630_v63, %v7893_v8 }
 0x9ca   :  { %v4636_v14 = vpop.permute.xlu0 %4635  ;;  %v4639_v31 = vpop.permute.xlu1 %4638  ;;  %v4649_v20 = vmul.f32 %v8878_v40, %v8756_v0  ;;  %v4651_v30 = vmul.f32 %v8878_v40, %v8752_v11  ;;  %v4648_v17 = vmul.f32 %v8878_v40, %v8750_v44  ;;  %v4650_v37 = vmul.f32 %v8878_v40, %v8748_v48 }
 0x9cb   :  { %v4642_v16 = vsel %vm1167_vm7, %v4641_v2, %v4636_v14  ;;  %v4653_v9 = vmul.f32 %v8878_v40, %v8760_v26  ;;  %v4655_v32 = vmul.f32 %v8878_v40, %v8770_v51  ;;  %v4652_v0 = vmul.f32 %v8878_v40, %v8754_v1 }
 0x9cc   :  { %v4643_v36 = vsel %vm1169_vm8, %v4642_v16, %v4639_v31  ;;  %v4654_v38 = vmul.f32 %v8878_v40, %v8762_v28  ;;  %v4657_v7 = vmul.f32 %v8878_v40, %v8782_v29  ;;  %v4659_v6 = vmul.f32 %v8878_v40, %v8796_v10 }
 0x9cd   :  { %v8886_v43 = vrot.slane %v4643_v36, %v7893_v8  ;;  %v4656_v47 = vmul.f32 %v8878_v40, %v8772_v12  ;;  %v4658_v31 = vmul.f32 %v8878_v40, %v8787_v25  ;;  %v4661_v16 = vmul.f32 %v8878_v40, %v8814_v15 }
 0x9ce   :  { %v4663_v25 = vmul.f32 %v8878_v40, %v8827_v5 }
 0x9cf   :  { %v4669_v11 = vadd.f32 %v8886_v43, %v4649_v20  ;;  %v4671_v62 = vadd.f32 %v8886_v43, %v4651_v30  ;;  %v4668_v44 = vadd.f32 %v8886_v43, %v4648_v17  ;;  %v4670_v48 = vadd.f32 %v8886_v43, %v4650_v37  ;;  %v7331_v20 = vld [vmem:[#allocation2 + $0xe70] ss:$8 sps:$4 sm:$0xff]  }
 0x9d0   :  { %v4673_v49 = vadd.f32 %v8886_v43, %v4653_v9  ;;  %v4675_v26 = vadd.f32 %v8886_v43, %v4655_v32  ;;  %v4672_v51 = vadd.f32 %v8886_v43, %v4652_v0  ;;  %v4674_v50 = vadd.f32 %v8886_v43, %v4654_v38  ;;  %v7336_v0 = vld [vmem:[#allocation2 + $0xe64] ss:$8 sps:$4 sm:$0xff]  }
 0x9d1   :  { %v8910_v1 = vmax.f32 %v4669_v11, 0.0  ;;  %v8912_v24 = vmax.f32 %v4671_v62, 0.0  ;;  %v8914_v28 = vmax.f32 %v4668_v44, 0.0  ;;  %v8916_v4 = vmax.f32 %v4670_v48, 0.0 }
 0x9d2   :  { %v8918_v18 = vmax.f32 %v4673_v49, 0.0  ;;  %v8920_v58 = vmax.f32 %v4675_v26, 0.0  ;;  %v8929_v23 = vmax.f32 %v4672_v51, 0.0  ;;  %v8937_v33 = vmax.f32 %v4674_v50, 0.0  ;;  %v7334_v50 = vld [vmem:[#allocation2 + $0xe60] ss:$8 sps:$4 sm:$0xff]  }
 0x9d3   :  { %v4815_v34 = vpack.c.bf16 %v8912_v24, %v8910_v1  ;;  %v4718_v56 = vrot.slane %v8916_v4, 7  ;;  %v4814_v39 = vpack.c.bf16 %v8916_v4, %v8914_v28  ;;  %v4717_v53 = vrot.slane %v8910_v1, 7 }
 0x9d4   :  { %v4720_v29 = vrot.slane %v8912_v24, 7  ;;  %v4821_v10 = vpack.c.bf16 %v8920_v58, %v8918_v18  ;;  %v4716_v42 = vrot.slane %v8914_v28, 7  ;;  %v4724_v63 = vrot.slane %v8918_v18, 7 }
 0x9d5   :  { %5518 = vmatprep.mubr.bf16.mxu1 %v4815_v34  ;;  %v4728_v2 = vrot.slane %v8920_v58, 7  ;;  %v4677_v14 = vadd.f32 %v8886_v43, %v4657_v7  ;;  %v4679_v38 = vadd.f32 %v8886_v43, %v4659_v6  ;;  %v4722_v11 = vrot.slane %v8929_v23, 7 }
 0x9d6   :  { %5519 = vmatmul.mubr.bf16.vlgmr.msra.gmra.mxu1 %v4814_v39  ;;  %v4721_v12 = vsel %vm104_vm0, %v4717_v53, %v4720_v29  ;;  %v4719_v30 = vsel %vm104_vm0, %v4716_v42, %v4718_v56  ;;  %v4725_v17 = vsel %vm104_vm0, %v4720_v29, %v4724_v63  ;;  %v4726_v62 = vrot.slane %v8937_v33, 7 }
 0x9d7   :  { %5528 = vmatprep.mubr.bf16.mxu1 %v4821_v10  ;;  %v6615_v36 = vpack.c.bf16 %v4721_v12, %v4717_v53  ;;  %v4729_v37 = vsel %vm104_vm0, %v4724_v63, %v4728_v2  ;;  %v6619_v9 = vpack.c.bf16 %v4719_v30, %v4716_v42  ;;  %v8958_v15 = vmax.f32 %v4677_v14, 0.0  ;;  %v7342_v30 = vld [vmem:[#allocation2 + $0xe44] ss:$8 sps:$4 sm:$0xff]  }
 0x9d8   :  { %v4819_v32 = vpack.c.bf16 %v4729_v37, %v4725_v17  ;;  %v4676_v44 = vadd.f32 %v8886_v43, %v4656_v47  ;;  %v8965_v48 = vmax.f32 %v4679_v38, 0.0  ;;  %v4678_v49 = vadd.f32 %v8886_v43, %v4658_v31  ;;  %v7339_v47 = vld [vmem:[#allocation2 + $0xe54] ss:$8 sps:$4 sm:$0xff]  }
 0x9d9   :  { %6616 = vmatprep.mubr.msk.bf16.mxu0 %vm7562_vm3, %v6615_v36  ;;  %v4681_v5 = vadd.f32 %v8886_v43, %v4661_v16  ;;  %v4683_v26 = vadd.f32 %v8886_v43, %v4663_v25  ;;  %v4765_v51 = vrot.slane %v8916_v4, 1  ;;  %v4770_v7 = vrot.slane %v8929_v23, 1  ;;  %v7337_v16 = vld [vmem:[#allocation2 + $0xe50] ss:$8 sps:$4 sm:$0xff]  }
 0x9da   :  { %6620 = vmatmul.mubr.msk.bf16.vlgmr.msra.gmra.mxu0 %vm7562_vm3, %v6619_v9  ;;  %v4820_v6 = vpack.c.bf16 %v8937_v33, %v8929_v23  ;;  %v4731_v34 = vrot.slane %v8958_v15, 7  ;;  %v4723_v39 = vsel %vm104_vm0, %v4718_v56, %v4722_v11  ;;  %v4734_v53 = vrot.slane %v8965_v48, 7 }
 0x9db   :  { %5560 = vmatpush1.bf16.msra.mxu0 %v7331_v20  ;;  %5455 = vmatprep.mubr.bf16.mxu0 %v4819_v32  ;;  %v4692_v29 = vmax.f32 %v4676_v44, 0.0  ;;  %v8977_v10 = vmax.f32 %v4678_v49, 0.0  ;;  %v4827_v4 = vpack.c.bf16 %v8965_v48, %v8958_v15  ;;  %v4727_v42 = vsel %vm104_vm0, %v4722_v11, %v4726_v62  ;;  %v7345_v11 = vld [vmem:[#allocation2 + $0xe34] ss:$8 sps:$4 sm:$0xff]  }
 0x9dc   :  { %5561 = vmatprep.subr.bf16.mxu0 %v7336_v0  ;;  %v8982_v63 = vmax.f32 %v4681_v5, 0.0  ;;  %v8984_v2 = vmax.f32 %v4683_v26, 0.0  ;;  %v4735_v12 = vsel %vm104_vm0, %v4731_v34, %v4734_v53  ;;  %v4660_v56 = vmul.f32 %v8878_v40, %v8805_v61 }
 0x9dd   :  { %v4764_v14 = vrot.slane %v8914_v28, 1  ;;  %v8993_v31 = vsel %vm153_vm4, %v4765_v51, %v4770_v7  ;;  %v4662_v36 = vmul.f32 %v8878_v40, %v8821_v3  ;;  %v4818_v20 = vpack.c.bf16 %v4727_v42, %v4723_v39  ;;  %v7340_v3 = vld [vmem:[#allocation2 + $0xe40] ss:$8 sps:$4 sm:$0xff]  }
 0x9de   :  { %5529 = vmatmul.mubr.bf16.gmra.mxu1 %v4820_v6  ;;  %v4730_v17 = vrot.slane %v4692_v29, 7  ;;  %v4732_v37 = vrot.slane %v8977_v10, 7  ;;  %v4680_v61 = vadd.f32 %v8886_v43, %v4660_v56  ;;  %v6623_v28 = vpack.c.bf16 %v4735_v12, %v4731_v34  ;;  %v7343_v6 = vld [vmem:[#allocation2 + $0xe30] ss:$8 sps:$4 sm:$0xff]   ;;  %v7348_v12 = vld [vmem:[#allocation2 + $0xe24] ss:$8 sps:$4 sm:$0xff]  }
 0x9df   :  { %5562 = vmatpush1.bf16.msra.mxu0 %v7334_v50  ;;  %5538 = vmatprep.mubr.bf16.mxu1 %v4827_v4  ;;  %v4738_v9 = vrot.slane %v8982_v63, 7  ;;  %v4742_v32 = vrot.slane %v8984_v2, 7  ;;  %v4682_v0 = vadd.f32 %v8886_v43, %v4662_v36  ;;  %v4826_v40 = vpack.c.bf16 %v8977_v10, %v4692_v29 }
 0x9e0   :  { %5563 = vmatprep.subr.bf16.mxu0 %v7339_v47  ;;  %v9006_v38 = vsel %vm153_vm4, %v4764_v14, %v4765_v51  ;;  %v4833_v25 = vpack.c.bf16 %v8984_v2, %v8982_v63  ;;  %v4733_v62 = vsel %vm104_vm0, %v4730_v17, %v4732_v37  ;;  %v9011_v44 = vmax.f32 %v4680_v61, 0.0 }
 0x9e1   :  { %v4816_v43 = vpack.c.bf16 %v8993_v31, %v9006_v38  ;;  %v4739_v49 = vsel %vm104_vm0, %v4734_v53, %v4738_v9  ;;  %v4743_v5 = vsel %vm104_vm0, %v4738_v9, %v4742_v32  ;;  %v9017_v26 = vmax.f32 %v4682_v0, 0.0  ;;  %v7349_v32 = vld [vmem:[#allocation2 + $0xe10] ss:$8 sps:$4 sm:$0xff]  }
 0x9e2   :  { %5456 = vmatmul.mubr.bf16.gmra.mxu0 %v4818_v20  ;;  %v4781_v51 = vrot.slane %v8958_v15, 1  ;;  %v4782_v50 = vrot.slane %v8965_v48, 1  ;;  %v4767_v34 = vrot.slane %v8910_v1, 1  ;;  %v4786_v47 = vrot.slane %v8982_v63, 1 }
 0x9e3   :  { %5564 = vmatpush1.bf16.msra.mxu0 %v7337_v16  ;;  %6624 = vmatprep.mubr.msk.bf16.mxu0 %vm7562_vm3, %v6623_v28  ;;  %v4778_v39 = vrot.slane %v4692_v29, 1  ;;  %v4779_v4 = vrot.slane %v8977_v10, 1  ;;  %v6627_v53 = vpack.c.bf16 %v4733_v62, %v4730_v17  ;;  %v4831_v42 = vpack.c.bf16 %v4743_v5, %v4739_v49  ;;  %v7360_v62 = vld [vmem:[#allocation2 + $0xee4] ss:$8 sps:$4 sm:$0xff]   ;;  %v7358_v49 = vld [vmem:[#allocation2 + $0xee0] ss:$8 sps:$4 sm:$0xff]  }
 0x9e4   :  { %5565 = vmatprep.subr.bf16.mxu0 %v7342_v30  ;;  %v9025_v56 = vsel %vm153_vm4, %v4781_v51, %v4782_v50  ;;  %v4784_v15 = vrot.slane %v9011_v44, 1  ;;  %v4736_v48 = vrot.slane %v9011_v44, 7  ;;  %v4740_v14 = vrot.slane %v9017_v26, 7  ;;  %v7346_v30 = vld [vmem:[#allocation2 + $0xe20] ss:$8 sps:$4 sm:$0xff]  }
 0x9e5   :  { %v9033_v1 = vsel %vm153_vm4, %v4782_v50, %v4786_v47  ;;  %v9036_v29 = vsel %vm153_vm4, %v4778_v39, %v4779_v4  ;;  %v4768_v10 = vrot.slane %v8912_v24, 1  ;;  %v4772_v16 = vrot.slane %v8918_v18, 1  ;;  %v7351_v24 = vld [vmem:[#allocation2 + $0xe14] ss:$8 sps:$4 sm:$0xff]   ;;  %v7361_v51 = vld [vmem:[#allocation2 + $0xed0] ss:$8 sps:$4 sm:$0xff]  }
 0x9e6   :  { %5539 = vmatmul.mubr.bf16.gmra.mxu1 %v4826_v40  ;;  %v4829_v36 = vpack.c.bf16 %v9033_v1, %v9025_v56  ;;  %v9047_v20 = vsel %vm153_vm4, %v4779_v4, %v4784_v15  ;;  %v4832_v59 = vpack.c.bf16 %v9017_v26, %v9011_v44  ;;  %v4737_v18 = vsel %vm104_vm0, %v4732_v37, %v4736_v48  ;;  %v7355_v37 = vld [vmem:[#allocation2 + $0xef0] ss:$8 sps:$4 sm:$0xff]   ;;  %v7363_v5 = vld [vmem:[#allocation2 + $0xed4] ss:$8 sps:$4 sm:$0xff]   ;;  %v7366_v50 = vld [vmem:[#allocation2 + $0xec4] ss:$8 sps:$4 sm:$0xff]  }
 0x9e7   :  { %5566 = vmatpush1.bf16.msra.mxu0 %v7340_v3  ;;  %5548 = vmatprep.mubr.bf16.mxu1 %v4833_v25  ;;  %v4828_v17 = vpack.c.bf16 %v9047_v20, %v9036_v29  ;;  %v4741_v61 = vsel %vm104_vm0, %v4736_v48, %v4740_v14  ;;  %v4769_v28 = vsel %vm153_vm4, %v4767_v34, %v4768_v10  ;;  %v7354_v3 = vld [vmem:[#allocation2 + $0xe04] ss:$8 sps:$4 sm:$0xff]   ;;  %v7352_v25 = vld [vmem:[#allocation2 + $0xe00] ss:$8 sps:$4 sm:$0xff]   ;;  %v7369_v34 = vld [vmem:[#allocation2 + $0xeb4] ss:$8 sps:$4 sm:$0xff]  }
 0x9e8   :  { %5567 = vmatprep.subr.bf16.mxu0 %v7345_v11  ;;  %v4773_v9 = vsel %vm153_vm4, %v4768_v10, %v4772_v16  ;;  %v4830_v0 = vpack.c.bf16 %v4741_v61, %v4737_v18  ;;  %v7357_v11 = vld [vmem:[#allocation2 + $0xef4] ss:$8 sps:$4 sm:$0xff]   ;;  %v7367_v39 = vld [vmem:[#allocation2 + $0xeb0] ss:$8 sps:$4 sm:$0xff]   ;;  %v7372_v4 = vld [vmem:[#allocation2 + $0xea4] ss:$8 sps:$4 sm:$0xff]  }
 0x9e9   :  { %v4817_v40 = vpack.c.bf16 %v4773_v9, %v4769_v28  ;;  %v7378_v48 = vld [vmem:[#allocation2 + $0xe84] ss:$8 sps:$4 sm:$0xff]   ;;  %v4776_v14 = vrot.slane %v8920_v58, 1  ;;  %v7376_v10 = vld [vmem:[#allocation2 + $0xe80] ss:$8 sps:$4 sm:$0xff]   ;;  %v4788_v31 = vrot.slane %v9017_v26, 1 }
 0x9ea   :  { %6628 = vmatmul.mubr.msk.bf16.gmra.mxu0 %vm7562_vm3, %v6627_v53  ;;  %v7370_v53 = vld [vmem:[#allocation2 + $0xea0] ss:$8 sps:$4 sm:$0xff]  }
 0x9eb   :  { %5568 = vmatpush1.bf16.msra.mxu0 %v7343_v6  ;;  %5475 = vmatprep.mubr.bf16.mxu0 %v4831_v42  ;;  %v7364_v6 = vld [vmem:[#allocation2 + $0xec0] ss:$8 sps:$4 sm:$0xff]   ;;  %v7375_v42 = vld [vmem:[#allocation2 + $0xe94] ss:$8 sps:$4 sm:$0xff]   ;;  %v4789_v23 = vsel %vm153_vm4, %v4784_v15, %v4788_v31 }
 0x9ec   :  { %5569 = vmatprep.subr.bf16.mxu0 %v7348_v12  ;;  %v7373_v12 = vld [vmem:[#allocation2 + $0xe90] ss:$8 sps:$4 sm:$0xff]  }
 0x9ee   :  { %5549 = vmatmul.mubr.bf16.gmra.mxu1 %v4832_v59  ;;  %v4774_v59 = vrot.slane %v8937_v33, 1 }
 0x9ef   :  { %5570 = vmatpush1.bf16.msra.mxu0 %v7346_v30  ;;  %v4777_v30 = vsel %vm153_vm4, %v4772_v16, %v4776_v14  ;;  %v4790_v16 = vrot.slane %v8984_v2, 1 }
 0x9f0   :  { %5571 = vmatprep.subr.bf16.mxu0 %v7351_v24  ;;  %v6630_v24 = vpack.c.bf16 %v4776_v14, %v4777_v30  ;;  %v4775_v58 = vsel %vm153_vm4, %v4770_v7, %v4774_v59  ;;  %v6639_v7 = vpack.c.bf16 %v4788_v31, %v4789_v23 }
 0x9f1   :  { %v6633_v18 = vpack.c.bf16 %v4774_v59, %v4775_v58  ;;  %v4791_v33 = vsel %vm153_vm4, %v4786_v47, %v4790_v16 }
 0x9f2   :  { %5476 = vmatmul.mubr.bf16.gmra.mxu0 %v4830_v0  ;;  %v6636_v38 = vpack.c.bf16 %v4790_v16, %v4791_v33 }
 0x9f3   :  { %5572 = vmatpush1.bf16.msra.mxu0 %v7349_v32  ;;  %5591 = vmatprep.mubr.bf16.mxu0 %v4817_v40 }
 0x9f4   :  { %5573 = vmatprep.subr.bf16.mxu0 %v7354_v3 }
 0x9f7   :  { %5574 = vmatpush1.bf16.msra.mxu0 %v7352_v25 }
 0x9f8   :  { %5575 = vmatprep.subr.bf16.mxu0 %v7357_v11 }
 0x9fb   :  { %5576 = vmatpush2.bf16.msra.mxu0 %v7355_v37 }
 0x9fc   :  { %5577 = vmatprep.subr.bf16.mxu0 %v7360_v62 }
 0x9ff   :  { %5578 = vmatpush2.bf16.msra.mxu0 %v7358_v49 }
 0xa00   :  { %5579 = vmatprep.subr.bf16.mxu0 %v7363_v5 }
 0xa03   :  { %5580 = vmatpush2.bf16.msra.mxu0 %v7361_v51 }
 0xa04   :  { %5581 = vmatprep.subr.bf16.mxu0 %v7366_v50 }
 0xa07   :  { %5582 = vmatpush2.bf16.msra.mxu0 %v7364_v6 }
 0xa08   :  { %5583 = vmatprep.subr.bf16.mxu0 %v7369_v34 }
 0xa0b   :  { %5584 = vmatpush2.bf16.msra.mxu0 %v7367_v39 }
 0xa0c   :  { %5585 = vmatprep.subr.bf16.mxu0 %v7372_v4 }
 0xa0f   :  { %5586 = vmatpush2.bf16.msra.mxu0 %v7370_v53 }
 0xa10   :  { %5587 = vmatprep.subr.bf16.mxu0 %v7375_v42 }
 0xa13   :  { %5588 = vmatpush2.bf16.msra.mxu0 %v7373_v12 }
 0xa14   :  { %5589 = vmatprep.subr.bf16.mxu0 %v7378_v48 }
 0xa17   :  { %5590 = vmatpush2.bf16.msra.mxu0 %v7376_v10 }
 0xa1a   :  { %5592 = vmatmul.mubr.bf16.vlgmr.msra.gmra.mxu0 %v4816_v43 }
 0xa1b   :  { %6631 = vmatprep.mubr.msk.bf16.mxu0 %vm7724_vm5, %v6630_v24 }
 0xa22   :  { %6634 = vmatmul.mubr.msk.bf16.gmra.mxu0 %vm7724_vm5, %v6633_v18 }
 0xa23   :  { %5611 = vmatprep.mubr.bf16.mxu0 %v4829_v36 }
 0xa2a   :  { %5612 = vmatmul.mubr.bf16.gmra.mxu0 %v4828_v17 }
 0xa2b   :  { %6637 = vmatprep.mubr.msk.bf16.mxu0 %vm7724_vm5, %v6636_v38 }
 0xa32   :  { %6640 = vmatmul.mubr.msk.bf16.gmra.mxu0 %vm7724_vm5, %v6639_v7 }
 0xa96   :  { %v5520_v36 = vpop.f32.mrf.mxu1 }
 0xa98   :  { %v5522_v17 = vpop.f32.mrf.mxu1 }
 0xa9a   :  { %v5447_v63 = vpop.f32.mrf.mxu0  ;;  %v5524_v28 = vpop.f32.mrf.mxu1 }
 0xa9b   :  { %v5521_v42 = vadd.f32 %v5520_v36, %v5447_v63 }
 0xa9c   :  { %v5449_v2 = vpop.f32.mrf.mxu0  ;;  %v5526_v9 = vpop.f32.mrf.mxu1 }
 0xa9d   :  { %v5523_v59 = vadd.f32 %v5522_v17, %v5449_v2 }
 0xa9e   :  { %v5451_v43 = vpop.f32.mrf.mxu0  ;;  %v5530_v32 = vpop.f32.mrf.mxu1 }
 0xa9f   :  { %v5525_v4 = vadd.f32 %v5524_v28, %v5451_v43 }
 0xaa0   :  { %v5453_v26 = vpop.f32.mrf.mxu0  ;;  %v5532_v13 = vpop.f32.mrf.mxu1 }
 0xaa1   :  { %v5527_v48 = vadd.f32 %v5526_v9, %v5453_v26 }
 0xaa2   :  { %v5457_v47 = vpop.f32.mrf.mxu0  ;;  %v5534_v40 = vpop.f32.mrf.mxu1 }
 0xaa3   :  { %v5531_v14 = vadd.f32 %v5530_v32, %v5457_v47 }
 0xaa4   :  { %v5459_v56 = vpop.f32.mrf.mxu0  ;;  %v5536_v11 = vpop.f32.mrf.mxu1 }
 0xaa5   :  { %v5533_v58 = vadd.f32 %v5532_v13, %v5459_v56 }
 0xaa6   :  { %v5461_v1 = vpop.f32.mrf.mxu0  ;;  %v5540_v62 = vpop.f32.mrf.mxu1 }
 0xaa7   :  { %v5535_v18 = vadd.f32 %v5534_v40, %v5461_v1 }
 0xaa8   :  { %v5463_v29 = vpop.f32.mrf.mxu0  ;;  %v5542_v51 = vpop.f32.mrf.mxu1 }
 0xaa9   :  { %v5537_v38 = vadd.f32 %v5536_v11, %v5463_v29 }
 0xaaa   :  { %v5467_v20 = vpop.f32.mrf.mxu0  ;;  %v5544_v34 = vpop.f32.mrf.mxu1 }
 0xaab   :  { %v5541_v63 = vadd.f32 %v5540_v62, %v5467_v20 }
 0xaac   :  { %v5469_v61 = vpop.f32.mrf.mxu0  ;;  %v5546_v12 = vpop.f32.mrf.mxu1 }
 0xaad   :  { %v5543_v56 = vadd.f32 %v5542_v51, %v5469_v61 }
 0xaae   :  { %v5471_v44 = vpop.f32.mrf.mxu0  ;;  %v5550_v23 = vpop.f32.mrf.mxu1 }
 0xaaf   :  { %v5545_v9 = vadd.f32 %v5544_v34, %v5471_v44 }
 0xab0   :  { %v5473_v15 = vpop.f32.mrf.mxu0  ;;  %v5552_v32 = vpop.f32.mrf.mxu1 }
 0xab1   :  { %v5547_v51 = vadd.f32 %v5546_v12, %v5473_v15 }
 0xab2   :  { %v9088_v0 = vpop.f32.mrf.mxu0 }
 0xab4   :  { %v9090_v3 = vpop.f32.mrf.mxu0 }
 0xab6   :  { %v9092_v25 = vpop.f32.mrf.mxu0 }
 0xab8   :  { %v9094_v37 = vpop.f32.mrf.mxu0 }
 0xada   :  { %v5593_v49 = vpop.f32.mrf.mxu0 }
 0xadb   :  { %v9098_v24 = vadd.f32 %v5593_v49, %v5521_v42 }
 0xadc   :  { %v5595_v5 = vpop.f32.mrf.mxu0 }
 0xadd   :  { %v9104_v7 = vadd.f32 %v5595_v5, %v5523_v59  ;;  %v5658_v1 = vmul.f32 %v9098_v24, %v9098_v24 }
 0xade   :  { %v5597_v50 = vpop.f32.mrf.mxu0 }
 0xadf   :  { %v9096_v10 = vadd.f32 %v5597_v50, %v5525_v4  ;;  %v5659_v13 = vmul.f32 %v9104_v7, %v9104_v7 }
 0xae0   :  { %v5599_v6 = vpop.f32.mrf.mxu0 }
 0xae1   :  { %v9100_v16 = vadd.f32 %v5599_v6, %v5527_v48  ;;  %v5660_v43 = vmul.f32 %v9096_v10, %v9096_v10  ;;  %v5632_v61 = vadd.f32 %v9096_v10, %v9098_v24  ;;  %v5551_v48 = vadd.f32 %v5550_v23, %v9088_v0 }
 0xae2   :  { %v5603_v39 = vpop.f32.mrf.mxu0 }
 0xae3   :  { %v9102_v33 = vadd.f32 %v5603_v39, %v5531_v14  ;;  %v5661_v36 = vmul.f32 %v9100_v16, %v9100_v16  ;;  %v5674_v40 = vadd.f32 %v5660_v43, %v5658_v1  ;;  %v5645_v44 = vadd.f32 %v9100_v16, %v9104_v7  ;;  %v5554_v14 = vpop.f32.mrf.mxu1 }
 0xae4   :  { %v5605_v53 = vpop.f32.mrf.mxu0 }
 0xae5   :  { %v9108_v26 = vadd.f32 %v5605_v53, %v5533_v58  ;;  %v5662_v29 = vmul.f32 %v9102_v33, %v9102_v33  ;;  %v5633_v50 = vadd.f32 %v5632_v61, %v9102_v33  ;;  %v5687_v34 = vadd.f32 %v5661_v36, %v5659_v13 }
 0xae6   :  { %v5607_v30 = vpop.f32.mrf.mxu0 }
 0xae7   :  { %v9110_v2 = vadd.f32 %v5607_v30, %v5535_v18  ;;  %v5663_v11 = vmul.f32 %v9108_v26, %v9108_v26  ;;  %v5675_v39 = vadd.f32 %v5674_v40, %v5662_v29  ;;  %v5646_v15 = vadd.f32 %v5645_v44, %v9108_v26 }
 0xae8   :  { %v5609_v31 = vpop.f32.mrf.mxu0 }
 0xae9   :  { %v9118_v17 = vadd.f32 %v5609_v31, %v5537_v38  ;;  %v5664_v62 = vmul.f32 %v9110_v2, %v9110_v2  ;;  %v5634_v12 = vadd.f32 %v5633_v50, %v9110_v2  ;;  %v5688_v59 = vadd.f32 %v5687_v34, %v5663_v11 }
 0xaea   :  { %v5613_v47 = vpop.f32.mrf.mxu0 }
 0xaeb   :  { %v9120_v20 = vadd.f32 %v5613_v47, %v5541_v63  ;;  %v5665_v4 = vmul.f32 %v9118_v17, %v9118_v17  ;;  %v5676_v58 = vadd.f32 %v5675_v39, %v5664_v62  ;;  %v5553_v63 = vadd.f32 %v5552_v32, %v9090_v3 }
 0xaec   :  { %v5615_v28 = vpop.f32.mrf.mxu0  ;;  %v5647_v0 = vadd.f32 %v5646_v15, %v9118_v17  ;;  %v5555_v47 = vadd.f32 %v5554_v14, %v9092_v25 }
 0xaed   :  { %v9130_v49 = vadd.f32 %v5615_v28, %v5543_v56  ;;  %v5666_v53 = vmul.f32 %v9120_v20, %v9120_v20  ;;  %v5635_v23 = vadd.f32 %v5634_v12, %v9120_v20  ;;  %v5689_v56 = vadd.f32 %v5688_v59, %v5665_v4  ;;  %v5556_v28 = vpop.f32.mrf.mxu1 }
 0xaee   :  { %v5617_v5 = vpop.f32.mrf.mxu0  ;;  %v5557_v61 = vadd.f32 %v5556_v28, %v9094_v37 }
 0xaef   :  { %v9135_v6 = vadd.f32 %v5617_v5, %v5545_v9  ;;  %v5667_v18 = vmul.f32 %v9130_v49, %v9130_v49  ;;  %v5677_v1 = vadd.f32 %v5676_v58, %v5666_v53  ;;  %v5648_v9 = vadd.f32 %v5647_v0, %v9130_v49 }
 0xaf0   :  { %v5619_v42 = vpop.f32.mrf.mxu0 }
 0xaf1   :  { %v9144_v30 = vadd.f32 %v5619_v42, %v5547_v51  ;;  %v5668_v31 = vmul.f32 %v9135_v6, %v9135_v6  ;;  %v5636_v13 = vadd.f32 %v5635_v23, %v9135_v6  ;;  %v5690_v40 = vadd.f32 %v5689_v56, %v5667_v18 }
 0xaf2   :  { %v5623_v38 = vpop.f32.mrf.mxu0 }
 0xaf3   :  { %v9153_v43 = vadd.f32 %v5623_v38, %v5551_v48  ;;  %v5669_v36 = vmul.f32 %v9144_v30, %v9144_v30  ;;  %v5678_v25 = vadd.f32 %v5677_v1, %v5668_v31  ;;  %v5649_v62 = vadd.f32 %v5648_v9, %v9144_v30 }
 0xaf4   :  { %v5625_v29 = vpop.f32.mrf.mxu0 }
 0xaf5   :  { %v5670_v3 = vmul.f32 %v9153_v43, %v9153_v43  ;;  %v9162_v32 = vadd.f32 %v5625_v29, %v5553_v63  ;;  %v5637_v5 = vadd.f32 %v5636_v13, %v9153_v43  ;;  %v5691_v50 = vadd.f32 %v5690_v40, %v5669_v36 }
 0xaf6   :  { %v5627_v11 = vpop.f32.mrf.mxu0 }
 0xaf7   :  { %v5671_v51 = vmul.f32 %v9162_v32, %v9162_v32  ;;  %v9169_v44 = vadd.f32 %v5627_v11, %v5555_v47  ;;  %v5679_v34 = vadd.f32 %v5678_v25, %v5670_v3  ;;  %v5650_v4 = vadd.f32 %v5649_v62, %v9162_v32 }
 0xaf8   :  { %v5629_v39 = vpop.f32.mrf.mxu0 }
 0xaf9   :  { %v5638_v53 = vadd.f32 %v5637_v5, %v9169_v44  ;;  %v5672_v37 = vmul.f32 %v9169_v44, %v9169_v44  ;;  %v9175_v42 = vadd.f32 %v5629_v39, %v5557_v61  ;;  %v5692_v48 = vadd.f32 %v5691_v50, %v5671_v51 }
 0xafb   :  { %v5639_v14 = vrot.slane %v5638_v53, 4  ;;  %v5680_v15 = vadd.f32 %v5679_v34, %v5672_v37  ;;  %v5651_v12 = vadd.f32 %v5650_v4, %v9175_v42  ;;  %v5673_v59 = vmul.f32 %v9175_v42, %v9175_v42 }
 0xafd   :  { %v5640_v58 = vadd.f32 %v5639_v14, %v5638_v53  ;;  %v5681_v18 = vrot.slane %v5680_v15, 4  ;;  %v5652_v31 = vrot.slane %v5651_v12, 4  ;;  %v5693_v38 = vadd.f32 %v5692_v48, %v5673_v59 }
 0xaff   :  { %v5641_v63 = vrot.slane %v5640_v58, 2  ;;  %v5682_v0 = vadd.f32 %v5681_v18, %v5680_v15  ;;  %v5694_v23 = vrot.slane %v5693_v38, 4  ;;  %v5653_v1 = vadd.f32 %v5652_v31, %v5651_v12 }
 0xb01   :  { %v5642_v47 = vadd.f32 %v5641_v63, %v5640_v58  ;;  %v5683_v56 = vrot.slane %v5682_v0, 2  ;;  %v5695_v36 = vadd.f32 %v5694_v23, %v5693_v38  ;;  %v5654_v9 = vrot.slane %v5653_v1, 2 }
 0xb03   :  { %v5643_v29 = vrot.slane %v5642_v47, 1  ;;  %v5684_v28 = vadd.f32 %v5683_v56, %v5682_v0  ;;  %v5696_v61 = vrot.slane %v5695_v36, 2  ;;  %v5655_v25 = vadd.f32 %v5654_v9, %v5653_v1 }
 0xb05   :  { %v5644_v13 = vadd.f32 %v5643_v29, %v5642_v47  ;;  %v5685_v3 = vrot.slane %v5684_v28, 1  ;;  %v5697_v11 = vadd.f32 %v5696_v61, %v5695_v36  ;;  %v5656_v62 = vrot.slane %v5655_v25, 1 }
 0xb07   :  { %5701 = vrot.lane.b32.xlu0 %v5644_v13, %s7486_s0  ;;  %v5686_v40 = vadd.f32 %v5685_v3, %v5684_v28  ;;  %v5698_v5 = vrot.slane %v5697_v11, 1  ;;  %v5657_v51 = vadd.f32 %v5656_v62, %v5655_v25 }
 0xb09   :  { %5706 = vrot.lane.b32.xlu1 %v5686_v40, %s7486_s0  ;;  %v5699_v50 = vadd.f32 %v5698_v5, %v5697_v11 }
 0xb0b   :  { %5710 = vrot.lane.b32.xlu0 %v5644_v13, %s7483_s1 }
 0xb0d   :  { %5714 = vrot.lane.b32.xlu1 %v5686_v40, %s7483_s1 }
 0xb0f   :  { %5718 = vrot.lane.b32.xlu0 %v5644_v13, %s7487_s17 }
 0xb11   :  { %5722 = vrot.lane.b32.xlu1 %v5686_v40, %s7487_s17 }
 0xb13   :  { %5729 = vrot.lane.b32.xlu0 %v5657_v51, %s7486_s0 }
 0xb15   :  { %5734 = vrot.lane.b32.xlu1 %v5699_v50, %s7486_s0 }
 0xb17   :  { %5738 = vrot.lane.b32.xlu0 %v5657_v51, %s7483_s1 }
 0xb19   :  { %5742 = vrot.lane.b32.xlu1 %v5699_v50, %s7483_s1 }
 0xb1b   :  { %5746 = vrot.lane.b32.xlu0 %v5657_v51, %s7487_s17 }
 0xb1d   :  { %5750 = vrot.lane.b32.xlu1 %v5699_v50, %s7487_s17 }
 0xb79   :  { %v5702_v34 = vpop.permute.xlu0 %5701 }
 0xb7a   :  { %v5704_v53 = vadd.f32 %v5702_v34, %v5644_v13 }
 0xb7b   :  { %v5707_v39 = vpop.permute.xlu1 %5706 }
 0xb7c   :  { %v5709_v48 = vadd.f32 %v5707_v39, %v5686_v40  ;;  %v5763_v39 = vld [vmem:[#allocation6 + $0x4] sm:$0x1] }
 0xb7d   :  { %v5711_v4 = vpop.permute.xlu0 %5710 }
 0xb7e   :  { %v5713_v14 = vadd.f32 %v5711_v4, %v5704_v53 }
 0xb7f   :  { %v5715_v37 = vpop.permute.xlu1 %5714 }
 0xb80   :  { %v5717_v12 = vadd.f32 %v5715_v37, %v5709_v48  ;;  %v7488_v37 = vmov 0  }
 0xb81   :  { %v5719_v15 = vpop.permute.xlu0 %5718  ;;  %5924 = vmatprep.mubr.bf16.mxu1 %v7488_v37 }
 0xb82   :  { %v5721_v59 = vadd.f32 %v5719_v15, %v5713_v14 }
 0xb83   :  { %v5723_v58 = vpop.permute.xlu1 %5722 }
 0xb84   :  { %v5725_v18 = vadd.f32 %v5723_v58, %v5717_v12  ;;  %v5726_v38 = vadd.f32 %v5721_v59, %v5657_v51  ;;  %v5759_v51 = vld [vmem:[#allocation4 + $0x4] sm:$0x1] }
 0xb85   :  { %v5730_v31 = vpop.permute.xlu0 %5729 }
 0xb86   :  { %v5727_v0 = vadd.f32 %v5725_v18, %v5699_v50  ;;  %v5732_v47 = vadd.f32 %v5730_v31, %v5726_v38 }
 0xb87   :  { %v5735_v63 = vpop.permute.xlu1 %5734 }
 0xb88   :  { %v5737_v1 = vadd.f32 %v5735_v63, %v5727_v0 }
 0xb89   :  { %v5739_v23 = vpop.permute.xlu0 %5738 }
 0xb8a   :  { %v5741_v36 = vadd.f32 %v5739_v23, %v5732_v47 }
 0xb8b   :  { %v5743_v56 = vpop.permute.xlu1 %5742 }
 0xb8c   :  { %v5745_v28 = vadd.f32 %v5743_v56, %v5737_v1 }
 0xb8d   :  { %v5747_v29 = vpop.permute.xlu0 %5746 }
 0xb8e   :  { %v5749_v9 = vadd.f32 %v5747_v29, %v5741_v36 }
 0xb8f   :  { %v5751_v13 = vpop.permute.xlu1 %5750 }
 0xb90   :  { %v5754_v3 = vmul.f32 0.001953125, %v5749_v9  ;;  %v5753_v61 = vadd.f32 %v5751_v13, %v5745_v28 }
 0xb92   :  { %v5756_v40 = vmul.f32 %v5754_v3, %v5754_v3  ;;  %v5755_v25 = vmul.f32 0.001953125, %v5753_v61 }
 0xb94   :  { %v5757_v11 = vsub.f32 %v5755_v25, %v5756_v40 }
 0xb96   :  { %v5758_v62 = vmax.f32 %v5757_v11, 0.0 }
 0xb98   :  { %v5760_v5 = vadd.f32 1e-05, %v5758_v62 }
 0xb9a   :  { %7389 = vrsqrt.f32 %v5760_v5 }
 0xba7   :  { %v7390_v34 = vpop.eup %7389 }
 0xba8   :  { %v5762_v50 = vmul.f32 %v7390_v34, %v5759_v51 }
 0xbaa   :  { %5770 = vrot.lane.b32.xlu1 %v5762_v50, %s7483_s1  ;;  %5767 = vrot.lane.b32.xlu0 %v5762_v50, %s7487_s17  ;;  %v5764_v4 = vmul.f32 %v5762_v50, %v5754_v3 }
 0xbac   :  { %v5765_v53 = vsub.f32 %v5763_v39, %v5764_v4 }
 0xbae   :  { %5773 = vrot.lane.b32.xlu0 %v5762_v50, %s7486_s0  ;;  %5780 = vrot.lane.b32.xlu1 %v5765_v53, %s7487_s17 }
 0xbb2   :  { %5783 = vrot.lane.b32.xlu0 %v5765_v53, %s7483_s1  ;;  %5786 = vrot.lane.b32.xlu1 %v5765_v53, %s7486_s0 }
 0xc1c   :  { %v5771_v48 = vpop.permute.xlu1 %5770  ;;  %v5768_v14 = vpop.permute.xlu0 %5767 }
 0xc1d   :  { %v5776_v15 = vsel %vm1165_vm6, %v5762_v50, %v5768_v14 }
 0xc1e   :  { %v5777_v12 = vsel %vm1167_vm7, %v5776_v15, %v5771_v48 }
 0xc20   :  { %v5774_v59 = vpop.permute.xlu0 %5773  ;;  %v5781_v58 = vpop.permute.xlu1 %5780 }
 0xc21   :  { %v5778_v18 = vsel %vm1169_vm8, %v5777_v12, %v5774_v59  ;;  %v5789_v38 = vsel %vm1165_vm6, %v5765_v53, %v5781_v58 }
 0xc22   :  { %v5795_v31 = vrot.slane %v5778_v18, %v7893_v8 }
 0xc24   :  { %v5784_v63 = vpop.permute.xlu0 %5783  ;;  %v5787_v0 = vpop.permute.xlu1 %5786  ;;  %v5801_v23 = vmul.f32 %v5795_v31, %v9108_v26  ;;  %v5803_v47 = vmul.f32 %v5795_v31, %v9118_v17  ;;  %v5800_v56 = vmul.f32 %v5795_v31, %v9102_v33  ;;  %v5802_v36 = vmul.f32 %v5795_v31, %v9110_v2 }
 0xc25   :  { %v5790_v1 = vsel %vm1167_vm7, %v5789_v38, %v5784_v63  ;;  %v5797_v29 = vmul.f32 %v5795_v31, %v9104_v7  ;;  %v5799_v28 = vmul.f32 %v5795_v31, %v9100_v16  ;;  %v5796_v13 = vmul.f32 %v5795_v31, %v9098_v24 }
 0xc26   :  { %v5791_v9 = vsel %vm1169_vm8, %v5790_v1, %v5787_v0  ;;  %v5798_v3 = vmul.f32 %v5795_v31, %v9096_v10  ;;  %v5809_v26 = vmul.f32 %v5795_v31, %v9162_v32  ;;  %v5811_v33 = vmul.f32 %v5795_v31, %v9175_v42 }
 0xc27   :  { %v5815_v17 = vrot.slane %v5791_v9, %v7893_v8  ;;  %v5808_v61 = vmul.f32 %v5795_v31, %v9153_v43  ;;  %v5810_v2 = vmul.f32 %v5795_v31, %v9169_v44  ;;  %v5805_v7 = vmul.f32 %v5795_v31, %v9130_v49  ;;  %v9322_v9 = vld [vmem:[#allocation16_spill] sm:$0xff] }
 0xc28   :  { %v5807_v16 = vmul.f32 %v5795_v31, %v9144_v30  ;;  %v5804_v40 = vmul.f32 %v5795_v31, %v9120_v20  ;;  %v5806_v24 = vmul.f32 %v5795_v31, %v9135_v6 }
 0xc29   :  { %v5821_v25 = vadd.f32 %v5815_v17, %v5801_v23  ;;  %v5823_v10 = vadd.f32 %v5815_v17, %v5803_v47  ;;  %v5820_v11 = vadd.f32 %v5815_v17, %v5800_v56  ;;  %v5822_v32 = vadd.f32 %v5815_v17, %v5802_v36  ;;  %v9321_v36 = vld [vmem:[#allocation15_spill] sm:$0xff] }
 0xc2a   :  { %v5817_v62 = vadd.f32 %v5815_v17, %v5797_v29  ;;  %v5819_v8 = vadd.f32 %v5815_v17, %v5799_v28  ;;  %v5816_v5 = vadd.f32 %v5815_v17, %v5796_v13  ;;  %v5818_v42 = vadd.f32 %v5815_v17, %v5798_v3  ;;  %v9323_v13 = vld [vmem:[#allocation12_spill] sm:$0xff] }
 0xc2b   :  { %v5837_v43 = vadd.f32 %v5821_v25, %v8609_v45  ;;  %v5839_v44 = vadd.f32 %v5823_v10, %v8611_v54  ;;  %v5836_v49 = vadd.f32 %v5820_v11, %v8613_v46  ;;  %v5838_v30 = vadd.f32 %v5822_v32, %v8625_v22 }
 0xc2c   :  { %v5833_v20 = vadd.f32 %v5817_v62, %v8601_v41  ;;  %v5835_v6 = vadd.f32 %v5819_v8, %v8603_v35  ;;  %v5832_v51 = vadd.f32 %v5816_v5, %v8605_v21  ;;  %v5834_v34 = vadd.f32 %v5818_v42, %v8607_v19 }
 0xc2d   :  { %v5853_v50 = vmax.f32 %v5837_v43, 0.0  ;;  %v5855_v39 = vmax.f32 %v5839_v44, 0.0  ;;  %v5852_v4 = vmax.f32 %v5836_v49, 0.0  ;;  %v5854_v53 = vmax.f32 %v5838_v30, 0.0 }
 0xc2e   :  { %v5849_v48 = vmax.f32 %v5833_v20, 0.0  ;;  %v5851_v45 = vmax.f32 %v5835_v6, 0.0  ;;  %v5848_v14 = vmax.f32 %v5832_v51, 0.0  ;;  %v5850_v54 = vmax.f32 %v5834_v34, 0.0 }
 0xc2f   :  { %v5867_v15 = vpack.c.bf16 %v5855_v39, %v5853_v50  ;;  %v5866_v46 = vpack.c.bf16 %v5854_v53, %v5852_v4  ;;  %v5829_v12 = vadd.f32 %v5815_v17, %v5809_v26  ;;  %v5831_v22 = vadd.f32 %v5815_v17, %v5811_v33  ;;  %v7379_v33 = vld [vmem:[#allocation7] sm:$0xff]  }
 0xc30   :  { %v5865_v59 = vpack.c.bf16 %v5851_v45, %v5849_v48  ;;  %v5864_v41 = vpack.c.bf16 %v5850_v54, %v5848_v14  ;;  %v5828_v58 = vadd.f32 %v5815_v17, %v5808_v61  ;;  %v5830_v35 = vadd.f32 %v5815_v17, %v5810_v2 }
 0xc31   :  { %5904 = vmatprep.subr.bf16.mxu1 %v5867_v15  ;;  %v5845_v21 = vadd.f32 %v5829_v12, %v8669_v57  ;;  %v5847_v19 = vadd.f32 %v5831_v22, %v8675_v52  ;;  %v5825_v18 = vadd.f32 %v5815_v17, %v5805_v7  ;;  %v5827_v31 = vadd.f32 %v5815_v17, %v5807_v16  ;;  %v7380_v16 = vld [vmem:[#allocation7 + $0x8] sm:$0xff]  }
 0xc32   :  { %5905 = vmatpush1.bf16.msra.mxu1 %v5866_v46  ;;  %v5844_v38 = vadd.f32 %v5828_v58, %v8688_v55  ;;  %v5846_v63 = vadd.f32 %v5830_v35, %v8690_v60  ;;  %v5824_v0 = vadd.f32 %v5815_v17, %v5804_v40  ;;  %v5826_v23 = vadd.f32 %v5815_v17, %v5806_v24 }
 0xc33   :  { %5906 = vmatprep.subr.bf16.mxu1 %v5865_v59  ;;  %v5861_v47 = vmax.f32 %v5845_v21, 0.0  ;;  %v5863_v56 = vmax.f32 %v5847_v19, 0.0  ;;  %v5841_v1 = vadd.f32 %v5825_v18, %v8647_v27  ;;  %v5843_v29 = vadd.f32 %v5827_v31, %v9321_v36 }
 0xc34   :  { %v5860_v28 = vmax.f32 %v5844_v38, 0.0  ;;  %v5862_v57 = vmax.f32 %v5846_v63, 0.0  ;;  %v5840_v52 = vadd.f32 %v5824_v0, %v9322_v9  ;;  %v5842_v3 = vadd.f32 %v5826_v23, %v9323_v13 }
 0xc35   :  { %v5871_v26 = vpack.c.bf16 %v5863_v56, %v5861_v47  ;;  %v5857_v55 = vmax.f32 %v5841_v1, 0.0  ;;  %v5859_v61 = vmax.f32 %v5843_v29, 0.0 }
 0xc36   :  { %5907 = vmatpush1.bf16.msra.mxu1 %v5864_v41  ;;  %v5870_v60 = vpack.c.bf16 %v5862_v57, %v5860_v28  ;;  %v5856_v17 = vmax.f32 %v5840_v52, 0.0  ;;  %v5858_v2 = vmax.f32 %v5842_v3, 0.0 }
 0xc37   :  { %5965 = vmatprep.subr.bf16.mxu1 %v5871_v26  ;;  %v5869_v27 = vpack.c.bf16 %v5859_v61, %v5857_v55 }
 0xc38   :  { %v5868_v7 = vpack.c.bf16 %v5858_v2, %v5856_v17 }
 0xc39   :  { %6643 = vmatmul.mubr.msk.bf16.vlgmr.msra.gmra.mxu1 %vm1165_vm6, %v7379_v33 }
 0xc3a   :  { %5966 = vmatpush1.bf16.msra.mxu1 %v5870_v60  ;;  %5934 = vmatprep.mubr.bf16.mxu1 %v7488_v37 }
 0xc3b   :  { %5967 = vmatprep.subr.bf16.mxu1 %v5869_v27 }
 0xc3e   :  { %5968 = vmatpush1.bf16.msra.mxu1 %v5868_v7 }
 0xc41   :  { %6644 = vmatmul.mubr.msk.bf16.gmra.mxu1 %vm1165_vm6, %v7380_v16 }
 0xc42   :  { %5985 = vmatprep.mubr.bf16.mxu1 %v7488_v37 }
 0xc49   :  { %6645 = vmatmul.mubr.msk.bf16.vlgmr.msra.gmra.mxu1 %vm1165_vm6, %v7379_v33 }
 0xc4a   :  { %5995 = vmatprep.mubr.bf16.mxu1 %v7488_v37 }
 0xc51   :  { %6646 = vmatmul.mubr.msk.bf16.gmra.mxu1 %vm1165_vm6, %v7380_v16 }
 0xcf9   :  { %v5926_v40 = vpop.f32.mrf.mxu1 }
 0xcfa   :  { %5945 = vst [vmem:[%s9299_s5] sm:$0xff] %v5926_v40 }
 0xcfb   :  { %v5928_v24 = vpop.f32.mrf.mxu1 }
 0xcfc   :  { %5946 = vst [vmem:[%s9299_s5 + $0x8] sm:$0xff] %v5928_v24 }
 0xcfd   :  { %v5930_v25 = vpop.f32.mrf.mxu1 }
 0xcfe   :  { %5947 = vst [vmem:[%s9299_s5 + $0x10] sm:$0xff] %v5930_v25 }
 0xcff   :  { %v5932_v10 = vpop.f32.mrf.mxu1 }
 0xd00   :  { %5948 = vst [vmem:[%s9299_s5 + $0x18] sm:$0xff] %v5932_v10 }
 0xd01   :  { %v5936_v37 = vpop.f32.mrf.mxu1 }
 0xd02   :  { %5949 = vst [vmem:[%s9299_s5 + $0x20] sm:$0xff] %v5936_v37 }
 0xd03   :  { %v5938_v11 = vpop.f32.mrf.mxu1 }
 0xd04   :  { %5950 = vst [vmem:[%s9299_s5 + $0x28] sm:$0xff] %v5938_v11 }
 0xd05   :  { %v5940_v32 = vpop.f32.mrf.mxu1 }
 0xd06   :  { %5951 = vst [vmem:[%s9299_s5 + $0x30] sm:$0xff] %v5940_v32 }
 0xd07   :  { %v5942_v62 = vpop.f32.mrf.mxu1 }
 0xd08   :  { %5952 = vst [vmem:[%s9299_s5 + $0x38] sm:$0xff] %v5942_v62 }
 0xd09   :  { %v5987_v8 = vpop.f32.mrf.mxu1 }
 0xd0a   :  { %6006 = vst [vmem:[%s9299_s5 + $0x40] sm:$0xff] %v5987_v8 }
 0xd0b   :  { %v5989_v5 = vpop.f32.mrf.mxu1 }
 0xd0c   :  { %6007 = vst [vmem:[%s9299_s5 + $0x48] sm:$0xff] %v5989_v5 }
 0xd0d   :  { %v5991_v42 = vpop.f32.mrf.mxu1 }
 0xd0e   :  { %6008 = vst [vmem:[%s9299_s5 + $0x50] sm:$0xff] %v5991_v42 }
 0xd0f   :  { %v5993_v43 = vpop.f32.mrf.mxu1 }
 0xd10   :  { %6009 = vst [vmem:[%s9299_s5 + $0x58] sm:$0xff] %v5993_v43 }
 0xd11   :  { %v5997_v44 = vpop.f32.mrf.mxu1 }
 0xd12   :  { %6010 = vst [vmem:[%s9299_s5 + $0x60] sm:$0xff] %v5997_v44 }
 0xd13   :  { %v5999_v49 = vpop.f32.mrf.mxu1 }
 0xd14   :  { %6011 = vst [vmem:[%s9299_s5 + $0x68] sm:$0xff] %v5999_v49 }
 0xd15   :  { %v6001_v30 = vpop.f32.mrf.mxu1 }
 0xd16   :  { %6012 = vst [vmem:[%s9299_s5 + $0x70] sm:$0xff] %v6001_v30 }
 0xd17   :  { %v6003_v20 = vpop.f32.mrf.mxu1 }
 0xd18   :  { %6013 = vst [vmem:[%s9299_s5 + $0x78] sm:$0xff] %v6003_v20 }
 0xd19   :  { %6018 = vsyncpa [#allocation3], 1 }
 0xd1a   :  { %6019 = vsyncpa [#allocation5], 1 }
 0xd1b   :  { %6020 = vsyncpa [#allocation8], 1 }

</bundles_post_ra>
